<compile_context>
chip_gen: v6e
topology: v6e:2x2x1
jax: 0.10.0
libtpu: 0.0.40
codegen_flags: <defaults>
</compile_context>

<pallas_src>
import numpy as np
import jax
import jax.numpy as jnp
from jax.experimental import pallas as pl
from jax.experimental.pallas import tpu as pltpu


LANE = 128      # vreg lane width: feature dims zero-padded to multiples of this
N_LAYERS = 5


def _round_up(x, m):
    return (x + m - 1) // m * m


def _pad2(a, rows, cols):
    return jnp.pad(a, ((0, rows - a.shape[0]), (0, cols - a.shape[1])))


# --------------------------------------------------------------------------- #
# Fused kernel: 5x (aggregate -> Linear -> ReLU -> BN) -> pool -> fc -> ReLU
# --------------------------------------------------------------------------- #
def fused_gin_kernel(a_ref, x_ref, w_ref, b_ref, t_ref, p_ref, wf_ref, bfc_ref,
                     o_ref, h_ref):
    """Whole forward pass in one kernel invocation (everything VMEM-resident).

    a_ref  : (N, N)            bf16  A_hat = A + I (exact small-integer counts)
    x_ref  : (N, D)            f32   input node features (zero-padded lanes)
    w_ref  : (5, D, D)         f32   per-layer Linear weight with BN scale folded
    b_ref  : (5, 1, D)         f32   per-layer Linear bias  with BN scale folded
    t_ref  : (5, 1, D)         f32   per-layer BN shift (beta - mean*scale)
    p_ref  : (G, N)            f32   global_add_pool matrix (graph x node)
    wf_ref : (D, F)            f32   fc1_xd weight ;  bfc_ref : (1, F) bias
    o_ref  : (G, F)            f32   output
    h_ref  : (N, D)            f32   VMEM scratch holding h between layers
    """
    h_ref[...] = x_ref[...]
    for l in range(N_LAYERS):                        # unrolled at trace time
        # (A + I) @ h on the bf16 MXU path; f32 accumulation.  A_hat is exact in
        # bf16; rounding h to bf16 costs ~1e-3 relative per layer.
        agg = jnp.dot(a_ref[...], h_ref[...].astype(jnp.bfloat16),
                      preferred_element_type=jnp.float32)
        # GINConv MLP (Linear + ReLU); BN scale is pre-folded into W and b, so
        # only the additive BN shift remains after the ReLU.
        z = jnp.dot(agg, w_ref[l], preferred_element_type=jnp.float32) + b_ref[l]
        h_ref[...] = jnp.maximum(z, 0.0) + t_ref[l]
    # global_add_pool + fc1_xd + ReLU (Dropout(0.2) is identity at inference).
    pooled = jnp.dot(p_ref[...], h_ref[...], preferred_element_type=jnp.float32)
    y = jnp.dot(pooled, wf_ref[...], preferred_element_type=jnp.float32) + bfc_ref[...]
    o_ref[...] = jnp.maximum(y, 0.0)


@jax.jit
def gin_conv_layer_forward(a_hat_bf16, x, w_stack, b_stack, t_stack, p, wf, bfc):
    n = a_hat_bf16.shape[0]
    d = w_stack.shape[2]
    g = p.shape[0]
    f_out = wf.shape[1]

    def full(shape):
        return pl.BlockSpec(shape, lambda i, _s=len(shape): (0,) * _s)

    flops = (N_LAYERS * (2 * n * n * d + 2 * n * d * d)
             + 2 * g * n * d + 2 * g * d * f_out)
    bytes_accessed = (n * n * 2 + n * d * 4 + N_LAYERS * d * d * 4
                      + 2 * N_LAYERS * d * 4 + g * n * 4
                      + d * f_out * 4 + f_out * 4 + g * f_out * 4)

    return pl.pallas_call(
        fused_gin_kernel,
        out_shape=jax.ShapeDtypeStruct((g, f_out), jnp.float32),
        grid_spec=pltpu.PrefetchScalarGridSpec(
            num_scalar_prefetch=0,
            grid=(1,),                                  # single fused invocation
            in_specs=[
                full((n, n)),                           # A_hat (bf16)
                full((n, d)),                           # x
                full((N_LAYERS, d, d)),                 # stacked folded weights
                full((N_LAYERS, 1, d)),                 # stacked folded biases
                full((N_LAYERS, 1, d)),                 # stacked BN shifts
                full((g, n)),                           # pooling matrix
                full((d, f_out)),                       # fc weight
                full((1, f_out)),                       # fc bias
            ],
            out_specs=full((g, f_out)),
            scratch_shapes=[pltpu.VMEM((n, d), jnp.float32)],   # resident h
        ),
        compiler_params=pltpu.CompilerParams(
            dimension_semantics=("arbitrary",),
            vmem_limit_bytes=32 * 1024 * 1024,   # total footprint ~1.5 MiB; well
                                                 # inside v7x's 64 MiB per-TC VMEM
        ),
        cost_estimate=pl.CostEstimate(flops=flops, transcendentals=0,
                                      bytes_accessed=bytes_accessed),
    )(a_hat_bf16, x, w_stack, b_stack, t_stack, p, wf, bfc)


# --------------------------------------------------------------------------- #
# Parameters & pure-JAX references
# --------------------------------------------------------------------------- #
def build_params(key, f_in, hid, f_out):
    ks = jax.random.split(key, 10)

    def lin(kw, kb, fan_in, fan_out):  # PyTorch Linear default init
        bound = 1.0 / np.sqrt(fan_in)
        w = jax.random.uniform(kw, (fan_in, fan_out), jnp.float32, -bound, bound)
        b = jax.random.uniform(kb, (1, fan_out), jnp.float32, -bound, bound)
        return w, b

    ws, bs = [], []
    w1, b1 = lin(ks[0], ks[1], f_in, hid)
    ws.append(w1); bs.append(b1)
    for l in range(4):
        w, b = lin(jax.random.fold_in(ks[2], l), jax.random.fold_in(ks[3], l), hid, hid)
        ws.append(w); bs.append(b)
    wf, bf = lin(ks[4], ks[5], hid, f_out)
    # BatchNorm1d running stats (inference), folded to per-channel scale/shift
    gamma = 1.0 + 0.1 * jax.random.normal(ks[6], (5, hid), jnp.float32)
    beta = 0.1 * jax.random.normal(ks[7], (5, hid), jnp.float32)
    rmean = 0.1 * jax.random.normal(ks[8], (5, hid), jnp.float32)
    rvar = 1.0 + 0.1 * jax.random.uniform(ks[9], (5, hid), jnp.float32)
    bns = gamma / jnp.sqrt(rvar + 1e-5)
    bnb = beta - rmean * bns
    return ws, bs, bns, bnb, wf, bf


def reference(a_hat, p, x, ws, bs, bns, bnb, wf, bfc, *, agg_dtype=jnp.float32):
    """Pure-JAX module reference.  agg_dtype=bf16 mirrors the kernel numerics."""
    h = x
    for l in range(N_LAYERS):
        agg = jnp.dot(a_hat.astype(agg_dtype), h.astype(agg_dtype),
                      preferred_element_type=jnp.float32)
        z = jnp.dot(agg, ws[l], preferred_element_type=jnp.float32) + bs[l]
        h = jnp.maximum(z, 0.0) * bns[l][None, :] + bnb[l][None, :]
    pooled = jnp.dot(p, h, preferred_element_type=jnp.float32)
    return jnp.maximum(jnp.dot(pooled, wf, preferred_element_type=jnp.float32) + bfc, 0.0)


# --------------------------------------------------------------------------- #
if __name__ == "__main__":
    key = jax.random.PRNGKey(0)
    k_param, k_x = jax.random.split(key, 2)

    # Logical problem: 16 graphs of 16 nodes each (block-diagonal adjacency).
    NPG, G = 16, 16
    N = NPG * G                       # 256 nodes
    F_IN, HID, F_OUT = 16, 32, 16

    x = jax.random.normal(k_x, (N, F_IN), jnp.float32)
    batch = jnp.repeat(jnp.arange(G, dtype=jnp.int32), NPG)

    # edge_index: ring within each graph (both directions) + deterministic chords
    src, dst = [], []
    for g in range(G):
        base = g * NPG
        for i in range(NPG):
            j = (i + 1) % NPG
            src += [base + i, base + j]
            dst += [base + j, base + i]
        for (i, j) in [(0, 5), (3, 9), (7, 12)]:
            src += [base + i, base + j]
            dst += [base + j, base + i]
    edge_index = jnp.array([src, dst], dtype=jnp.int32)

    # Dense adjacency A[dst, src] += 1 (A @ x == PyG scatter-add message passing),
    # with the GIN eps=0 self loop folded: A_hat = A + I.
    A = jnp.zeros((N, N), jnp.float32).at[edge_index[1], edge_index[0]].add(1.0)
    A_hat = A + jnp.eye(N, dtype=jnp.float32)
    assert float(A_hat.max()) <= 256.0          # bf16-exact edge multiplicities
    P = (batch[None, :] == jnp.arange(G)[:, None]).astype(jnp.float32)

    ws, bs, bns, bnb, wf, bf = build_params(k_param, F_IN, HID, F_OUT)

    # ---- fold BN scale into W, b (valid since relu(z*s)=relu(z)*s for s>0) ----
    assert float(jnp.min(bns)) > 0.0
    ws_f = [ws[l] * bns[l][None, :] for l in range(N_LAYERS)]
    bs_f = [bs[l] * bns[l][None, :] for l in range(N_LAYERS)]

    # ---- pad to lane-dense / MXU-friendly shapes (zero padding is exact) -----
    F_IN_P = _round_up(F_IN, LANE)
    HID_P = _round_up(HID, LANE)
    F_OUT_P = _round_up(F_OUT, LANE)
    assert F_IN_P == HID_P            # required for the (5, D, D) weight stack
    G_P = _round_up(G, 8)

    a_hat_p = A_hat.astype(jnp.bfloat16)                      # exact integer counts
    x_p = _pad2(x, N, HID_P)
    p_p = _pad2(P, G_P, N)
    w_stack = jnp.stack([_pad2(ws_f[0], HID_P, HID_P)]
                        + [_pad2(ws_f[l], HID_P, HID_P) for l in range(1, N_LAYERS)])
    b_stack = jnp.stack([_pad2(bs_f[l], 1, HID_P) for l in range(N_LAYERS)])
    t_stack = jnp.stack([_pad2(bnb[l:l + 1], 1, HID_P) for l in range(N_LAYERS)])
    wf_p = _pad2(wf, HID_P, F_OUT_P)
    bf_p = _pad2(bf, 1, F_OUT_P)

    out_p = gin_conv_layer_forward(a_hat_p, x_p, w_stack, b_stack, t_stack,
                                   p_p, wf_p, bf_p)
    out_p = jax.block_until_ready(out_p)
    out = np.asarray(out_p)[:G, :F_OUT]          # drop zero padding

    # 1) Structural check against a reference mirroring the kernel's bf16
    #    aggregation path (tight tolerance).
    ref_mirror = np.asarray(reference(A_hat, P, x, ws, bs, bns, bnb, wf, bf,
                                      agg_dtype=jnp.bfloat16))
    np.testing.assert_allclose(out, ref_mirror, rtol=1e-3, atol=1e-3)
    # 2) Fidelity check against the full-f32 module reference (loose tolerance,
    #    since h is rounded to bf16 for the aggregation matmul inside the kernel).
    ref_f32 = np.asarray(reference(A_hat, P, x, ws, bs, bns, bnb, wf, bf))
    np.testing.assert_allclose(out, ref_f32, rtol=5e-2, atol=5e-2)

    print("KERNEL_OK")
</pallas_src>

<mosaic_0001>
module attributes {stable_mosaic.version = 11 : i64} {
  func.func @fused_gin_kernel(%arg0: i32, %arg1: memref<256x256xbf16, #tpu.memory_space<vmem>>, %arg2: memref<256x128xf32, #tpu.memory_space<vmem>>, %arg3: memref<5x128x128xf32, #tpu.memory_space<vmem>>, %arg4: memref<5x1x128xf32, #tpu.memory_space<vmem>>, %arg5: memref<5x1x128xf32, #tpu.memory_space<vmem>>, %arg6: memref<16x256xf32, #tpu.memory_space<vmem>>, %arg7: memref<128x128xf32, #tpu.memory_space<vmem>>, %arg8: memref<1x128xf32, #tpu.memory_space<vmem>>, %arg9: memref<16x128xf32, #tpu.memory_space<vmem>>, %arg10: memref<256x128xf32, #tpu.memory_space<vmem>>) attributes {dimension_semantics = [#tpu.dimension_semantics<arbitrary>], iteration_bounds = array<i64: 1>, scalar_prefetch = 0 : i64, scratch_operands = 1 : i64, tpu.core_type = #tpu.core_type<tc>, window_params = [{pipeline_mode = #tpu.pipeline_mode<synchronous>, transform_indices = @transform_0, window_bounds = array<i64: 256, 256>}, {pipeline_mode = #tpu.pipeline_mode<synchronous>, transform_indices = @transform_1, window_bounds = array<i64: 256, 128>}, {pipeline_mode = #tpu.pipeline_mode<synchronous>, transform_indices = @transform_2, window_bounds = array<i64: 5, 128, 128>}, {pipeline_mode = #tpu.pipeline_mode<synchronous>, transform_indices = @transform_3, window_bounds = array<i64: 5, 1, 128>}, {pipeline_mode = #tpu.pipeline_mode<synchronous>, transform_indices = @transform_4, window_bounds = array<i64: 5, 1, 128>}, {pipeline_mode = #tpu.pipeline_mode<synchronous>, transform_indices = @transform_5, window_bounds = array<i64: 16, 256>}, {pipeline_mode = #tpu.pipeline_mode<synchronous>, transform_indices = @transform_6, window_bounds = array<i64: 128, 128>}, {pipeline_mode = #tpu.pipeline_mode<synchronous>, transform_indices = @transform_7, window_bounds = array<i64: 1, 128>}, {pipeline_mode = #tpu.pipeline_mode<synchronous>, transform_indices = @transform_8, window_bounds = array<i64: 16, 128>}]} {
    %c0 = arith.constant 0 : index
    %c0_0 = arith.constant 0 : index
    %0 = vector.load %arg2[%c0, %c0_0] : memref<256x128xf32, #tpu.memory_space<vmem>>, vector<256x128xf32>
    %c0_1 = arith.constant 0 : index
    %c0_2 = arith.constant 0 : index
    %1 = vector.load %arg10[%c0_1, %c0_2] : memref<256x128xf32, #tpu.memory_space<vmem>>, vector<256x128xf32>
    tpu.vector_store %arg10[%c0_1, %c0_2], %0 {strides = array<i32>} : memref<256x128xf32, #tpu.memory_space<vmem>>, vector<256x128xf32>,
    %c0_3 = arith.constant 0 : index
    %c0_4 = arith.constant 0 : index
    %2 = vector.load %arg1[%c0_3, %c0_4] : memref<256x256xbf16, #tpu.memory_space<vmem>>, vector<256x256xbf16>
    %c0_5 = arith.constant 0 : index
    %c0_6 = arith.constant 0 : index
    %3 = vector.load %arg10[%c0_5, %c0_6] : memref<256x128xf32, #tpu.memory_space<vmem>>, vector<256x128xf32>
    %4 = arith.truncf %3 : vector<256x128xf32> to vector<256x128xbf16>
    %cst = arith.constant dense<0.000000e+00> : vector<256x128xf32>
    %5 = tpu.matmul %2, %4, %cst {dimension_numbers = #tpu.dot_dimension_numbers<[1], [0], [0], [1], [0, 0, 1, 1], [], []>} : vector<256x256xbf16>, vector<256x128xbf16>, vector<256x128xf32> -> vector<256x128xf32>
    %c0_7 = arith.constant 0 : index
    %c0_8 = arith.constant 0 : index
    %c0_9 = arith.constant 0 : index
    %6 = vector.load %arg3[%c0_7, %c0_8, %c0_9] : memref<5x128x128xf32, #tpu.memory_space<vmem>>, vector<1x128x128xf32>
    %7 = vector.shape_cast %6 : vector<1x128x128xf32> to vector<128x128xf32>
    %cst_10 = arith.constant dense<0.000000e+00> : vector<256x128xf32>
    %8 = tpu.matmul %5, %7, %cst_10 {dimension_numbers = #tpu.dot_dimension_numbers<[1], [0], [0], [1], [0, 0, 1, 1], [], []>} : vector<256x128xf32>, vector<128x128xf32>, vector<256x128xf32> -> vector<256x128xf32>
    %c0_11 = arith.constant 0 : index
    %c0_12 = arith.constant 0 : index
    %c0_13 = arith.constant 0 : index
    %9 = vector.load %arg4[%c0_11, %c0_12, %c0_13] : memref<5x1x128xf32, #tpu.memory_space<vmem>>, vector<1x1x128xf32>
    %10 = vector.shape_cast %9 : vector<1x1x128xf32> to vector<1x128xf32>
    %11 = vector.broadcast %10 : vector<1x128xf32> to vector<256x128xf32>
    %12 = arith.addf %8, %11 : vector<256x128xf32>
    %cst_14 = arith.constant 0.000000e+00 : f32
    %13 = vector.broadcast %cst_14 : f32 to vector<256x128xf32>
    %14 = arith.maximumf %12, %13 : vector<256x128xf32>
    %c0_15 = arith.constant 0 : index
    %c0_16 = arith.constant 0 : index
    %c0_17 = arith.constant 0 : index
    %15 = vector.load %arg5[%c0_15, %c0_16, %c0_17] : memref<5x1x128xf32, #tpu.memory_space<vmem>>, vector<1x1x128xf32>
    %16 = vector.shape_cast %15 : vector<1x1x128xf32> to vector<1x128xf32>
    %17 = vector.broadcast %16 : vector<1x128xf32> to vector<256x128xf32>
    %18 = arith.addf %14, %17 : vector<256x128xf32>
    %c0_18 = arith.constant 0 : index
    %c0_19 = arith.constant 0 : index
    %19 = vector.load %arg10[%c0_18, %c0_19] : memref<256x128xf32, #tpu.memory_space<vmem>>, vector<256x128xf32>
    tpu.vector_store %arg10[%c0_18, %c0_19], %18 {strides = array<i32>} : memref<256x128xf32, #tpu.memory_space<vmem>>, vector<256x128xf32>,
    %c0_20 = arith.constant 0 : index
    %c0_21 = arith.constant 0 : index
    %20 = vector.load %arg1[%c0_20, %c0_21] : memref<256x256xbf16, #tpu.memory_space<vmem>>, vector<256x256xbf16>
    %c0_22 = arith.constant 0 : index
    %c0_23 = arith.constant 0 : index
    %21 = vector.load %arg10[%c0_22, %c0_23] : memref<256x128xf32, #tpu.memory_space<vmem>>, vector<256x128xf32>
    %22 = arith.truncf %21 : vector<256x128xf32> to vector<256x128xbf16>
    %cst_24 = arith.constant dense<0.000000e+00> : vector<256x128xf32>
    %23 = tpu.matmul %20, %22, %cst_24 {dimension_numbers = #tpu.dot_dimension_numbers<[1], [0], [0], [1], [0, 0, 1, 1], [], []>} : vector<256x256xbf16>, vector<256x128xbf16>, vector<256x128xf32> -> vector<256x128xf32>
    %c1 = arith.constant 1 : index
    %c0_25 = arith.constant 0 : index
    %c0_26 = arith.constant 0 : index
    %24 = vector.load %arg3[%c1, %c0_25, %c0_26] : memref<5x128x128xf32, #tpu.memory_space<vmem>>, vector<1x128x128xf32>
    %25 = vector.shape_cast %24 : vector<1x128x128xf32> to vector<128x128xf32>
    %cst_27 = arith.constant dense<0.000000e+00> : vector<256x128xf32>
    %26 = tpu.matmul %23, %25, %cst_27 {dimension_numbers = #tpu.dot_dimension_numbers<[1], [0], [0], [1], [0, 0, 1, 1], [], []>} : vector<256x128xf32>, vector<128x128xf32>, vector<256x128xf32> -> vector<256x128xf32>
    %c1_28 = arith.constant 1 : index
    %c0_29 = arith.constant 0 : index
    %c0_30 = arith.constant 0 : index
    %27 = vector.load %arg4[%c1_28, %c0_29, %c0_30] : memref<5x1x128xf32, #tpu.memory_space<vmem>>, vector<1x1x128xf32>
    %28 = vector.shape_cast %27 : vector<1x1x128xf32> to vector<1x128xf32>
    %29 = vector.broadcast %28 : vector<1x128xf32> to vector<256x128xf32>
    %30 = arith.addf %26, %29 : vector<256x128xf32>
    %cst_31 = arith.constant 0.000000e+00 : f32
    %31 = vector.broadcast %cst_31 : f32 to vector<256x128xf32>
    %32 = arith.maximumf %30, %31 : vector<256x128xf32>
    %c1_32 = arith.constant 1 : index
    %c0_33 = arith.constant 0 : index
    %c0_34 = arith.constant 0 : index
    %33 = vector.load %arg5[%c1_32, %c0_33, %c0_34] : memref<5x1x128xf32, #tpu.memory_space<vmem>>, vector<1x1x128xf32>
    %34 = vector.shape_cast %33 : vector<1x1x128xf32> to vector<1x128xf32>
    %35 = vector.broadcast %34 : vector<1x128xf32> to vector<256x128xf32>
    %36 = arith.addf %32, %35 : vector<256x128xf32>
    %c0_35 = arith.constant 0 : index
    %c0_36 = arith.constant 0 : index
    %37 = vector.load %arg10[%c0_35, %c0_36] : memref<256x128xf32, #tpu.memory_space<vmem>>, vector<256x128xf32>
    tpu.vector_store %arg10[%c0_35, %c0_36], %36 {strides = array<i32>} : memref<256x128xf32, #tpu.memory_space<vmem>>, vector<256x128xf32>,
    %c0_37 = arith.constant 0 : index
    %c0_38 = arith.constant 0 : index
    %38 = vector.load %arg1[%c0_37, %c0_38] : memref<256x256xbf16, #tpu.memory_space<vmem>>, vector<256x256xbf16>
    %c0_39 = arith.constant 0 : index
    %c0_40 = arith.constant 0 : index
    %39 = vector.load %arg10[%c0_39, %c0_40] : memref<256x128xf32, #tpu.memory_space<vmem>>, vector<256x128xf32>
    %40 = arith.truncf %39 : vector<256x128xf32> to vector<256x128xbf16>
    %cst_41 = arith.constant dense<0.000000e+00> : vector<256x128xf32>
    %41 = tpu.matmul %38, %40, %cst_41 {dimension_numbers = #tpu.dot_dimension_numbers<[1], [0], [0], [1], [0, 0, 1, 1], [], []>} : vector<256x256xbf16>, vector<256x128xbf16>, vector<256x128xf32> -> vector<256x128xf32>
    %c2 = arith.constant 2 : index
    %c0_42 = arith.constant 0 : index
    %c0_43 = arith.constant 0 : index
    %42 = vector.load %arg3[%c2, %c0_42, %c0_43] : memref<5x128x128xf32, #tpu.memory_space<vmem>>, vector<1x128x128xf32>
    %43 = vector.shape_cast %42 : vector<1x128x128xf32> to vector<128x128xf32>
    %cst_44 = arith.constant dense<0.000000e+00> : vector<256x128xf32>
    %44 = tpu.matmul %41, %43, %cst_44 {dimension_numbers = #tpu.dot_dimension_numbers<[1], [0], [0], [1], [0, 0, 1, 1], [], []>} : vector<256x128xf32>, vector<128x128xf32>, vector<256x128xf32> -> vector<256x128xf32>
    %c2_45 = arith.constant 2 : index
    %c0_46 = arith.constant 0 : index
    %c0_47 = arith.constant 0 : index
    %45 = vector.load %arg4[%c2_45, %c0_46, %c0_47] : memref<5x1x128xf32, #tpu.memory_space<vmem>>, vector<1x1x128xf32>
    %46 = vector.shape_cast %45 : vector<1x1x128xf32> to vector<1x128xf32>
    %47 = vector.broadcast %46 : vector<1x128xf32> to vector<256x128xf32>
    %48 = arith.addf %44, %47 : vector<256x128xf32>
    %cst_48 = arith.constant 0.000000e+00 : f32
    %49 = vector.broadcast %cst_48 : f32 to vector<256x128xf32>
    %50 = arith.maximumf %48, %49 : vector<256x128xf32>
    %c2_49 = arith.constant 2 : index
    %c0_50 = arith.constant 0 : index
    %c0_51 = arith.constant 0 : index
    %51 = vector.load %arg5[%c2_49, %c0_50, %c0_51] : memref<5x1x128xf32, #tpu.memory_space<vmem>>, vector<1x1x128xf32>
    %52 = vector.shape_cast %51 : vector<1x1x128xf32> to vector<1x128xf32>
    %53 = vector.broadcast %52 : vector<1x128xf32> to vector<256x128xf32>
    %54 = arith.addf %50, %53 : vector<256x128xf32>
    %c0_52 = arith.constant 0 : index
    %c0_53 = arith.constant 0 : index
    %55 = vector.load %arg10[%c0_52, %c0_53] : memref<256x128xf32, #tpu.memory_space<vmem>>, vector<256x128xf32>
    tpu.vector_store %arg10[%c0_52, %c0_53], %54 {strides = array<i32>} : memref<256x128xf32, #tpu.memory_space<vmem>>, vector<256x128xf32>,
    %c0_54 = arith.constant 0 : index
    %c0_55 = arith.constant 0 : index
    %56 = vector.load %arg1[%c0_54, %c0_55] : memref<256x256xbf16, #tpu.memory_space<vmem>>, vector<256x256xbf16>
    %c0_56 = arith.constant 0 : index
    %c0_57 = arith.constant 0 : index
    %57 = vector.load %arg10[%c0_56, %c0_57] : memref<256x128xf32, #tpu.memory_space<vmem>>, vector<256x128xf32>
    %58 = arith.truncf %57 : vector<256x128xf32> to vector<256x128xbf16>
    %cst_58 = arith.constant dense<0.000000e+00> : vector<256x128xf32>
    %59 = tpu.matmul %56, %58, %cst_58 {dimension_numbers = #tpu.dot_dimension_numbers<[1], [0], [0], [1], [0, 0, 1, 1], [], []>} : vector<256x256xbf16>, vector<256x128xbf16>, vector<256x128xf32> -> vector<256x128xf32>
    %c3 = arith.constant 3 : index
    %c0_59 = arith.constant 0 : index
    %c0_60 = arith.constant 0 : index
    %60 = vector.load %arg3[%c3, %c0_59, %c0_60] : memref<5x128x128xf32, #tpu.memory_space<vmem>>, vector<1x128x128xf32>
    %61 = vector.shape_cast %60 : vector<1x128x128xf32> to vector<128x128xf32>
    %cst_61 = arith.constant dense<0.000000e+00> : vector<256x128xf32>
    %62 = tpu.matmul %59, %61, %cst_61 {dimension_numbers = #tpu.dot_dimension_numbers<[1], [0], [0], [1], [0, 0, 1, 1], [], []>} : vector<256x128xf32>, vector<128x128xf32>, vector<256x128xf32> -> vector<256x128xf32>
    %c3_62 = arith.constant 3 : index
    %c0_63 = arith.constant 0 : index
    %c0_64 = arith.constant 0 : index
    %63 = vector.load %arg4[%c3_62, %c0_63, %c0_64] : memref<5x1x128xf32, #tpu.memory_space<vmem>>, vector<1x1x128xf32>
    %64 = vector.shape_cast %63 : vector<1x1x128xf32> to vector<1x128xf32>
    %65 = vector.broadcast %64 : vector<1x128xf32> to vector<256x128xf32>
    %66 = arith.addf %62, %65 : vector<256x128xf32>
    %cst_65 = arith.constant 0.000000e+00 : f32
    %67 = vector.broadcast %cst_65 : f32 to vector<256x128xf32>
    %68 = arith.maximumf %66, %67 : vector<256x128xf32>
    %c3_66 = arith.constant 3 : index
    %c0_67 = arith.constant 0 : index
    %c0_68 = arith.constant 0 : index
    %69 = vector.load %arg5[%c3_66, %c0_67, %c0_68] : memref<5x1x128xf32, #tpu.memory_space<vmem>>, vector<1x1x128xf32>
    %70 = vector.shape_cast %69 : vector<1x1x128xf32> to vector<1x128xf32>
    %71 = vector.broadcast %70 : vector<1x128xf32> to vector<256x128xf32>
    %72 = arith.addf %68, %71 : vector<256x128xf32>
    %c0_69 = arith.constant 0 : index
    %c0_70 = arith.constant 0 : index
    %73 = vector.load %arg10[%c0_69, %c0_70] : memref<256x128xf32, #tpu.memory_space<vmem>>, vector<256x128xf32>
    tpu.vector_store %arg10[%c0_69, %c0_70], %72 {strides = array<i32>} : memref<256x128xf32, #tpu.memory_space<vmem>>, vector<256x128xf32>,
    %c0_71 = arith.constant 0 : index
    %c0_72 = arith.constant 0 : index
    %74 = vector.load %arg1[%c0_71, %c0_72] : memref<256x256xbf16, #tpu.memory_space<vmem>>, vector<256x256xbf16>
    %c0_73 = arith.constant 0 : index
    %c0_74 = arith.constant 0 : index
    %75 = vector.load %arg10[%c0_73, %c0_74] : memref<256x128xf32, #tpu.memory_space<vmem>>, vector<256x128xf32>
    %76 = arith.truncf %75 : vector<256x128xf32> to vector<256x128xbf16>
    %cst_75 = arith.constant dense<0.000000e+00> : vector<256x128xf32>
    %77 = tpu.matmul %74, %76, %cst_75 {dimension_numbers = #tpu.dot_dimension_numbers<[1], [0], [0], [1], [0, 0, 1, 1], [], []>} : vector<256x256xbf16>, vector<256x128xbf16>, vector<256x128xf32> -> vector<256x128xf32>
    %c4 = arith.constant 4 : index
    %c0_76 = arith.constant 0 : index
    %c0_77 = arith.constant 0 : index
    %78 = vector.load %arg3[%c4, %c0_76, %c0_77] : memref<5x128x128xf32, #tpu.memory_space<vmem>>, vector<1x128x128xf32>
    %79 = vector.shape_cast %78 : vector<1x128x128xf32> to vector<128x128xf32>
    %cst_78 = arith.constant dense<0.000000e+00> : vector<256x128xf32>
    %80 = tpu.matmul %77, %79, %cst_78 {dimension_numbers = #tpu.dot_dimension_numbers<[1], [0], [0], [1], [0, 0, 1, 1], [], []>} : vector<256x128xf32>, vector<128x128xf32>, vector<256x128xf32> -> vector<256x128xf32>
    %c4_79 = arith.constant 4 : index
    %c0_80 = arith.constant 0 : index
    %c0_81 = arith.constant 0 : index
    %81 = vector.load %arg4[%c4_79, %c0_80, %c0_81] : memref<5x1x128xf32, #tpu.memory_space<vmem>>, vector<1x1x128xf32>
    %82 = vector.shape_cast %81 : vector<1x1x128xf32> to vector<1x128xf32>
    %83 = vector.broadcast %82 : vector<1x128xf32> to vector<256x128xf32>
    %84 = arith.addf %80, %83 : vector<256x128xf32>
    %cst_82 = arith.constant 0.000000e+00 : f32
    %85 = vector.broadcast %cst_82 : f32 to vector<256x128xf32>
    %86 = arith.maximumf %84, %85 : vector<256x128xf32>
    %c4_83 = arith.constant 4 : index
    %c0_84 = arith.constant 0 : index
    %c0_85 = arith.constant 0 : index
    %87 = vector.load %arg5[%c4_83, %c0_84, %c0_85] : memref<5x1x128xf32, #tpu.memory_space<vmem>>, vector<1x1x128xf32>
    %88 = vector.shape_cast %87 : vector<1x1x128xf32> to vector<1x128xf32>
    %89 = vector.broadcast %88 : vector<1x128xf32> to vector<256x128xf32>
    %90 = arith.addf %86, %89 : vector<256x128xf32>
    %c0_86 = arith.constant 0 : index
    %c0_87 = arith.constant 0 : index
    %91 = vector.load %arg10[%c0_86, %c0_87] : memref<256x128xf32, #tpu.memory_space<vmem>>, vector<256x128xf32>
    tpu.vector_store %arg10[%c0_86, %c0_87], %90 {strides = array<i32>} : memref<256x128xf32, #tpu.memory_space<vmem>>, vector<256x128xf32>,
    %c0_88 = arith.constant 0 : index
    %c0_89 = arith.constant 0 : index
    %92 = vector.load %arg6[%c0_88, %c0_89] : memref<16x256xf32, #tpu.memory_space<vmem>>, vector<16x256xf32>
    %c0_90 = arith.constant 0 : index
    %c0_91 = arith.constant 0 : index
    %93 = vector.load %arg10[%c0_90, %c0_91] : memref<256x128xf32, #tpu.memory_space<vmem>>, vector<256x128xf32>
    %cst_92 = arith.constant dense<0.000000e+00> : vector<16x128xf32>
    %94 = tpu.matmul %92, %93, %cst_92 {dimension_numbers = #tpu.dot_dimension_numbers<[1], [0], [0], [1], [0, 0, 1, 1], [], []>} : vector<16x256xf32>, vector<256x128xf32>, vector<16x128xf32> -> vector<16x128xf32>
    %c0_93 = arith.constant 0 : index
    %c0_94 = arith.constant 0 : index
    %95 = vector.load %arg7[%c0_93, %c0_94] : memref<128x128xf32, #tpu.memory_space<vmem>>, vector<128x128xf32>
    %cst_95 = arith.constant dense<0.000000e+00> : vector<16x128xf32>
    %96 = tpu.matmul %94, %95, %cst_95 {dimension_numbers = #tpu.dot_dimension_numbers<[1], [0], [0], [1], [0, 0, 1, 1], [], []>} : vector<16x128xf32>, vector<128x128xf32>, vector<16x128xf32> -> vector<16x128xf32>
    %c0_96 = arith.constant 0 : index
    %c0_97 = arith.constant 0 : index
    %97 = vector.load %arg8[%c0_96, %c0_97] : memref<1x128xf32, #tpu.memory_space<vmem>>, vector<1x128xf32>
    %98 = vector.broadcast %97 : vector<1x128xf32> to vector<16x128xf32>
    %99 = arith.addf %96, %98 : vector<16x128xf32>
    %cst_98 = arith.constant 0.000000e+00 : f32
    %100 = vector.broadcast %cst_98 : f32 to vector<16x128xf32>
    %101 = arith.maximumf %99, %100 : vector<16x128xf32>
    %c0_99 = arith.constant 0 : index
    %c0_100 = arith.constant 0 : index
    %102 = vector.load %arg9[%c0_99, %c0_100] : memref<16x128xf32, #tpu.memory_space<vmem>>, vector<16x128xf32>
    tpu.vector_store %arg9[%c0_99, %c0_100], %101 {strides = array<i32>} : memref<16x128xf32, #tpu.memory_space<vmem>>, vector<16x128xf32>,
    return
  }
  func.func @transform_0(%arg0: i32) -> (i32, i32) {
    %c0_i32 = arith.constant 0 : i32
    %c0_i32_0 = arith.constant 0 : i32
    %c0_i32_1 = arith.constant 0 : i32
    return %c0_i32, %c0_i32_0 : i32, i32
  }
  func.func @transform_1(%arg0: i32) -> (i32, i32) {
    %c0_i32 = arith.constant 0 : i32
    %c0_i32_0 = arith.constant 0 : i32
    %c0_i32_1 = arith.constant 0 : i32
    return %c0_i32, %c0_i32_0 : i32, i32
  }
  func.func @transform_2(%arg0: i32) -> (i32, i32, i32) {
    %c0_i32 = arith.constant 0 : i32
    %c0_i32_0 = arith.constant 0 : i32
    %c0_i32_1 = arith.constant 0 : i32
    %c0_i32_2 = arith.constant 0 : i32
    return %c0_i32, %c0_i32_0, %c0_i32_1 : i32, i32, i32
  }
  func.func @transform_3(%arg0: i32) -> (i32, i32, i32) {
    %c0_i32 = arith.constant 0 : i32
    %c0_i32_0 = arith.constant 0 : i32
    %c0_i32_1 = arith.constant 0 : i32
    %c0_i32_2 = arith.constant 0 : i32
    return %c0_i32, %c0_i32_0, %c0_i32_1 : i32, i32, i32
  }
  func.func @transform_4(%arg0: i32) -> (i32, i32, i32) {
    %c0_i32 = arith.constant 0 : i32
    %c0_i32_0 = arith.constant 0 : i32
    %c0_i32_1 = arith.constant 0 : i32
    %c0_i32_2 = arith.constant 0 : i32
    return %c0_i32, %c0_i32_0, %c0_i32_1 : i32, i32, i32
  }
  func.func @transform_5(%arg0: i32) -> (i32, i32) {
    %c0_i32 = arith.constant 0 : i32
    %c0_i32_0 = arith.constant 0 : i32
    %c0_i32_1 = arith.constant 0 : i32
    return %c0_i32, %c0_i32_0 : i32, i32
  }
  func.func @transform_6(%arg0: i32) -> (i32, i32) {
    %c0_i32 = arith.constant 0 : i32
    %c0_i32_0 = arith.constant 0 : i32
    %c0_i32_1 = arith.constant 0 : i32
    return %c0_i32, %c0_i32_0 : i32, i32
  }
  func.func @transform_7(%arg0: i32) -> (i32, i32) {
    %c0_i32 = arith.constant 0 : i32
    %c0_i32_0 = arith.constant 0 : i32
    %c0_i32_1 = arith.constant 0 : i32
    return %c0_i32, %c0_i32_0 : i32, i32
  }
  func.func @transform_8(%arg0: i32) -> (i32, i32) {
    %c0_i32 = arith.constant 0 : i32
    %c0_i32_0 = arith.constant 0 : i32
    %c0_i32_1 = arith.constant 0 : i32
    return %c0_i32, %c0_i32_0 : i32, i32
  }
}

</mosaic_0001>

<bundles_post_ra>
// kernel: gin_conv_layer_forward.1
= control target key start
LH: loop header
LB: loop body
LE: loop exit
PB: predicated region body
PF: predicated region fallthrough
CT: control target
= control target key end

     0   :  { %13 = vsyncpa [#allocation4], 0  ;;  %s6898_s0 = inlined_call_operand.hbm [shape: bf16[256,256], index: 0, kind: input, shape index: {}]   ;;  %s6899_s1 = inlined_call_operand.hbm [shape: f32[256,128], index: 1, kind: input, shape index: {}]   ;;  %s6900_s2 = inlined_call_operand.hbm [shape: f32[5,128,128], index: 2, kind: input, shape index: {}]   ;;  %s6901_s3 = inlined_call_operand.vmem [shape: f32[5,1,128], index: 3, kind: input, shape index: {}]   ;;  %s6902_s4 = inlined_call_operand.hbm [shape: f32[5,1,128], index: 4, kind: input, shape index: {}]   ;;  %s6903_s5 = inlined_call_operand.hbm [shape: f32[16,256], index: 5, kind: input, shape index: {}]   ;;  %s6904_s6 = inlined_call_operand.hbm [shape: f32[128,128], index: 6, kind: input, shape index: {}]   ;;  %s6905_s7 = inlined_call_operand.vmem [shape: f32[1,128], index: 7, kind: input, shape index: {}]   ;;  %s6906_s8 = inlined_call_operand.hbm [shape: f32[16,128], index: 8, kind: output, shape index: {}]  }
   0x1   :  { %14 = vsyncpa [#allocation7], 0 }
   0x2   :  { %15 = vsyncpa [#allocation10], 0 }
   0x3   :  { %16 = vsyncpa [#allocation13], 0 }
   0x4   :  { %17 = vsyncpa [#allocation5], 0  ;;  %s5954_s27 = smov [#allocation6]   ;;  %s5955_s29 = smov [#allocation9]  }
   0x5   :  { %s35_s28 = sshll.u32 %s5954_s27, 4  ;;  %s61_s30 = sshll.u32 %s5955_s29, 4  ;;  %s36_s28 = int_to_ptr.vmem [resolvable:$true] %s35_s28  ;;  %s62_s30 = int_to_ptr.vmem [resolvable:$true] %s61_s30 }
   0x6   :  { %s5812_s9 = scalar_lea.vmem %s36_s28, 4096  ;;  %p5817_p1 = scmp.lt.s32.totalorder %s36_s28, %s36_s28 }
   0x7   :  { %p5813_p0 = scmp.ne.s32.totalorder %s36_s28, %s5812_s9  ;;  %p5818_p2 = scmp.lt.s32.totalorder %s5812_s9, %s5812_s9 }
   0x9   :  { %p5819_p3 = por %p5818_p2, %p5817_p1 }
   0xb   :  { %p5820_p4 = pnand %p5819_p3, %p5813_p0 }
   0xd   :  { %5823 = shalt.err (!%p5820_p4)
}
   0xe   :  { %s5956_s10 = smov 128   ;;  %s5957_s11 = smov 8  }
   0xf   :  { %41 = dma.hbm_to_vmem [thread:$0]  %s6899_s1, 4096, %s36_s28, [#allocation7], %s5956_s10, %s5956_s10, %s5957_s11  }
  0x10   :  { %s5832_s14 = scalar_lea.vmem %s62_s30, 80  ;;  %s5836_s15 = scalar_lea.vmem %s62_s30, 96 }
  0x11   :  { %p5833_p5 = scmp.ne.s32.totalorder %s62_s30, %s5832_s14  ;;  %p5837_p6 = scmp.lt.s32.totalorder %s62_s30, %s62_s30 }
  0x12   :  { %p5838_p7 = scmp.lt.s32.totalorder %s5836_s15, %s5832_s14 }
  0x14   :  { %p5839_p8 = por %p5838_p7, %p5837_p6 }
  0x16   :  { %p5840_p9 = pnand %p5839_p8, %p5833_p5 }
  0x18   :  { %5843 = shalt.err (!%p5840_p9)
}
  0x19   :  { %s5958_s16 = smov 16   ;;  %s5959_s17 = smov 1  }
  0x1a   :  { %67 = dma.hbm_to_vmem [thread:$0]  %s6902_s4, 80, %s62_s30, [#allocation10], %s5958_s16, %s5958_s16, %s5959_s17  }
  0x1b   :  { %s5960_s20 = smov [#allocation3]   ;;  %s5961_s22 = smov [#allocation8]  }
  0x1c   :  { %s23_s21 = sshll.u32 %s5960_s20, 4  ;;  %s47_s1 = sshll.u32 %s5961_s22, 4  ;;  %s24_s21 = int_to_ptr.vmem [resolvable:$true] %s23_s21  ;;  %s48_s1 = int_to_ptr.vmem [resolvable:$true] %s47_s1 }
  0x1d   :  { %s5852_s23 = scalar_lea.vmem %s24_s21, 4096  ;;  %p5857_p11 = scmp.lt.s32.totalorder %s24_s21, %s24_s21 }
  0x1e   :  { %p5853_p10 = scmp.ne.s32.totalorder %s24_s21, %s5852_s23  ;;  %p5858_p12 = scmp.lt.s32.totalorder %s5852_s23, %s5852_s23 }
  0x20   :  { %p5859_p13 = por %p5858_p12, %p5857_p11 }
  0x22   :  { %p5860_p0 = pnand %p5859_p13, %p5853_p10 }
  0x24   :  { %5863 = shalt.err (!%p5860_p0)
}
  0x25   :  { %29 = dma.hbm_to_vmem [thread:$0]  %s6898_s0, 4096, %s24_s21, [#allocation4], %s5956_s10, %s5956_s10, %s5957_s11  }
  0x26   :  { %s5872_s4 = scalar_lea.vmem %s48_s1, 10240  ;;  %p5877_p2 = scmp.lt.s32.totalorder %s48_s1, %s48_s1 }
  0x27   :  { %p5873_p1 = scmp.ne.s32.totalorder %s48_s1, %s5872_s4  ;;  %p5878_p3 = scmp.lt.s32.totalorder %s5872_s4, %s5872_s4 }
  0x29   :  { %p5879_p4 = por %p5878_p3, %p5877_p2 }
  0x2b   :  { %p5880_p5 = pnand %p5879_p4, %p5873_p1 }
  0x2d   :  { %5883 = shalt.err (!%p5880_p5)
}
  0x2e   :  { %53 = dma.hbm_to_vmem [thread:$0]  %s6900_s2, 10240, %s48_s1, [#allocation7], %s5956_s10, %s5956_s10, %s5957_s11  }
  0x2f   :  { %s5962_s28 = smov [#allocation11]   ;;  %s5963_s30 = smov [#allocation12]  }
  0x30   :  { %s73_s29 = sshll.u32 %s5962_s28, 4  ;;  %s85_s9 = sshll.u32 %s5963_s30, 4  ;;  %s74_s29 = int_to_ptr.vmem [resolvable:$true] %s73_s29  ;;  %s86_s9 = int_to_ptr.vmem [resolvable:$true] %s85_s9 }
  0x31   :  { %s5892_s0 = scalar_lea.vmem %s74_s29, 512  ;;  %p5897_p7 = scmp.lt.s32.totalorder %s74_s29, %s74_s29 }
  0x32   :  { %p5893_p6 = scmp.ne.s32.totalorder %s74_s29, %s5892_s0  ;;  %p5898_p8 = scmp.lt.s32.totalorder %s5892_s0, %s5892_s0 }
  0x34   :  { %p5899_p9 = por %p5898_p8, %p5897_p7 }
  0x36   :  { %p5900_p10 = pnand %p5899_p9, %p5893_p6 }
  0x38   :  { %5903 = shalt.err (!%p5900_p10)
}
  0x39   :  { %s5964_s12 = smov 256   ;;  %s5912_s2 = scalar_lea.vmem %s86_s9, 2048 }
  0x3a   :  { %79 = dma.hbm_to_vmem [thread:$0]  %s6903_s5, 512, %s74_s29, [#allocation10], %s5964_s12, %s5964_s12, %s5958_s16  }
  0x3b   :  { %p5913_p11 = scmp.ne.s32.totalorder %s86_s9, %s5912_s2  ;;  %p5917_p12 = scmp.lt.s32.totalorder %s86_s9, %s86_s9 }
  0x3c   :  { %p5918_p13 = scmp.lt.s32.totalorder %s5912_s2, %s5912_s2 }
  0x3e   :  { %p5919_p0 = por %p5918_p13, %p5917_p12 }
  0x40   :  { %p5920_p1 = pnand %p5919_p0, %p5913_p11 }
  0x42   :  { %5923 = shalt.err (!%p5920_p1)
}
  0x43   :  { %91 = dma.hbm_to_vmem [thread:$0]  %s6904_s6, 2048, %s86_s9, [#allocation13], %s5956_s10, %s5956_s10, %s5957_s11  }
  0x44   :  { %5944 = dma.done.wait [#allocation4], 4096  }
  0x45   :  { %5945 = vsyncadd [#allocation4], 4294963200 }
  0x46   :  { %5946 = dma.done.wait [#allocation7], 14336  }
  0x47   :  { %5947 = vsyncadd [#allocation7], 4294952960 }
  0x48   :  { %5948 = dma.done.wait [#allocation10], 592  }
  0x49   :  { %5949 = vsyncadd [#allocation10], 4294966704 }
  0x4a   :  { %5950 = dma.done.wait [#allocation13], 2048  }
  0x4b   :  { %5951 = vsyncadd [#allocation13], 4294965248  ;;  %v143_v0 = vld [vmem:[#allocation6 + $0xf0] sm:$0xff]  ;;  %v144_v1 = vld [vmem:[#allocation6 + $0xf8] sm:$0xff]  ;;  %s5965_s25 = smov [#allocation14]  }
  0x4c   :  { %v127_v2 = vld [vmem:[#allocation6 + $0x70] sm:$0xff]  ;;  %v256_v3 = vpack.c.bf16 %v144_v1, %v143_v0  ;;  %v128_v4 = vld [vmem:[#allocation6 + $0x78] sm:$0xff]  ;;  %v141_v5 = vld [vmem:[#allocation6 + $0xe0] sm:$0xff]  ;;  %s4167_s4 = sshll.u32 %s5965_s25, 4  ;;  %s4168_s4 = int_to_ptr.vmem [resolvable:$true] %s4167_s4 }
  0x4d   :  { %v142_v6 = vld [vmem:[#allocation6 + $0xe8] sm:$0xff]  ;;  %v248_v7 = vpack.c.bf16 %v128_v4, %v127_v2  ;;  %v125_v9 = vld [vmem:[#allocation6 + $0x60] sm:$0xff]  ;;  %v139_v11 = vld [vmem:[#allocation6 + $0xd0] sm:$0xff]  ;;  %s5924_s26 = scalar_lea.vmem %s4168_s4, 256  ;;  %p5929_p3 = scmp.lt.s32.totalorder %s4168_s4, %s4168_s4 }
  0x4e   :  { %v255_v8 = vpack.c.bf16 %v142_v6, %v141_v5  ;;  %v126_v10 = vld [vmem:[#allocation6 + $0x68] sm:$0xff]  ;;  %4357 = vmatprep.subr.bf16.mxu0 %v256_v3  ;;  %v140_v12 = vld [vmem:[#allocation6 + $0xd8] sm:$0xff]  ;;  %v123_v15 = vld [vmem:[#allocation6 + $0x50] sm:$0xff]  ;;  %p5925_p2 = scmp.ne.s32.totalorder %s4168_s4, %s5924_s26  ;;  %p5930_p4 = scmp.lt.s32.totalorder %s5924_s26, %s5924_s26 }
  0x4f   :  { %4358 = vmatpush3.bf16.msra.mxu0 %v248_v7  ;;  %v247_v13 = vpack.c.bf16 %v126_v10, %v125_v9  ;;  %v254_v14 = vpack.c.bf16 %v140_v12, %v139_v11  ;;  %v124_v16 = vld [vmem:[#allocation6 + $0x58] sm:$0xff]  ;;  %v137_v17 = vld [vmem:[#allocation6 + $0xc0] sm:$0xff]  ;;  %v138_v18 = vld [vmem:[#allocation6 + $0xc8] sm:$0xff] }
  0x50   :  { %4359 = vmatprep.subr.bf16.mxu0 %v255_v8  ;;  %v246_v19 = vpack.c.bf16 %v124_v16, %v123_v15  ;;  %v253_v20 = vpack.c.bf16 %v138_v18, %v137_v17  ;;  %v121_v21 = vld [vmem:[#allocation6 + $0x40] sm:$0xff]  ;;  %v122_v22 = vld [vmem:[#allocation6 + $0x48] sm:$0xff]  ;;  %v135_v23 = vld [vmem:[#allocation6 + $0xb0] sm:$0xff]  ;;  %p5931_p5 = por %p5930_p4, %p5929_p3 }
  0x51   :  { %v136_v24 = vld [vmem:[#allocation6 + $0xb8] sm:$0xff]  ;;  %v6044_v25 = vld [vmem:[#allocation3 + $0x4] ss:$8 sps:$4 sm:$0xff]   ;;  %v245_v26 = vpack.c.bf16 %v122_v22, %v121_v21  ;;  %v119_v27 = vld [vmem:[#allocation6 + $0x30] sm:$0xff] }
  0x52   :  { %v252_v28 = vpack.c.bf16 %v136_v24, %v135_v23  ;;  %v120_v29 = vld [vmem:[#allocation6 + $0x38] sm:$0xff]  ;;  %449 = vmatprep.mubr.bf16.mxu0 %v6044_v25  ;;  %v133_v30 = vld [vmem:[#allocation6 + $0xa0] sm:$0xff]  ;;  %v134_v31 = vld [vmem:[#allocation6 + $0xa8] sm:$0xff]  ;;  %p5932_p6 = pnand %p5931_p5, %p5925_p2 }
  0x53   :  { %4360 = vmatpush3.bf16.msra.mxu0 %v247_v13  ;;  %v244_v32 = vpack.c.bf16 %v120_v29, %v119_v27  ;;  %v117_v33 = vld [vmem:[#allocation6 + $0x20] sm:$0xff]  ;;  %v251_v34 = vpack.c.bf16 %v134_v31, %v133_v30  ;;  %v118_v35 = vld [vmem:[#allocation6 + $0x28] sm:$0xff]  ;;  %v131_v36 = vld [vmem:[#allocation6 + $0x90] sm:$0xff] }
  0x54   :  { %4361 = vmatprep.subr.bf16.mxu0 %v254_v14  ;;  %v132_v37 = vld [vmem:[#allocation6 + $0x98] sm:$0xff]  ;;  %v243_v38 = vpack.c.bf16 %v118_v35, %v117_v33  ;;  %v115_v39 = vld [vmem:[#allocation6 + $0x10] sm:$0xff]  ;;  %v129_v42 = vld [vmem:[#allocation6 + $0x80] sm:$0xff] }
  0x55   :  { %v250_v40 = vpack.c.bf16 %v132_v37, %v131_v36  ;;  %v116_v41 = vld [vmem:[#allocation6 + $0x18] sm:$0xff]  ;;  %v130_v43 = vld [vmem:[#allocation6 + $0x88] sm:$0xff]  ;;  %v113_v45 = vld [vmem:[#allocation6] sm:$0xff] }
  0x56   :  { %v242_v44 = vpack.c.bf16 %v116_v41, %v115_v39  ;;  %v249_v46 = vpack.c.bf16 %v130_v43, %v129_v42  ;;  %v114_v47 = vld [vmem:[#allocation6 + $0x8] sm:$0xff]  ;;  %v6049_v50 = vld [vmem:[#allocation3 + $0x14] ss:$8 sps:$4 sm:$0xff]   ;;  %v590_v54 = vld [vmem:[#allocation8 + $0x60] sm:$0xff] }
  0x57   :  { %4362 = vmatpush3.bf16.msra.mxu0 %v246_v19  ;;  %v241_v48 = vpack.c.bf16 %v114_v47, %v113_v45  ;;  %v6047_v49 = vld [vmem:[#allocation3] ss:$8 sps:$4 sm:$0xff]   ;;  %v593_v51 = vld [vmem:[#allocation8 + $0x78] sm:$0xff]  ;;  %v592_v52 = vld [vmem:[#allocation8 + $0x70] sm:$0xff] }
  0x58   :  { %4363 = vmatprep.subr.bf16.mxu0 %v253_v20  ;;  %5213 = vmatprep.subr.mxu1 %v593_v51  ;;  %v591_v53 = vld [vmem:[#allocation8 + $0x68] sm:$0xff]  ;;  %v589_v55 = vld [vmem:[#allocation8 + $0x58] sm:$0xff]  ;;  %v588_v58 = vld [vmem:[#allocation8 + $0x50] sm:$0xff] }
  0x59   :  { %5214 = vmatpush3.msra.mxu1 %v593_v51  ;;  %v6053_v56 = vld [vmem:[#allocation3 + $0x10] ss:$8 sps:$4 sm:$0xff]   ;;  %v6055_v57 = vld [vmem:[#allocation3 + $0x24] ss:$8 sps:$4 sm:$0xff]   ;;  %v6059_v62 = vld [vmem:[#allocation3 + $0x20] ss:$8 sps:$4 sm:$0xff]  }
  0x5a   :  { %5215 = vmatprep.subr.mxu1 %v592_v52  ;;  %v587_v59 = vld [vmem:[#allocation8 + $0x48] sm:$0xff]  ;;  %v586_v60 = vld [vmem:[#allocation8 + $0x40] sm:$0xff]  ;;  %v585_v61 = vld [vmem:[#allocation8 + $0x38] sm:$0xff] }
  0x5b   :  { %4364 = vmatpush3.bf16.msra.mxu0 %v245_v26  ;;  %5216 = vmatpush3.msra.mxu1 %v592_v52  ;;  %v6061_v63 = vld [vmem:[#allocation3 + $0x34] ss:$8 sps:$4 sm:$0xff]   ;;  %v583_v1 = vld [vmem:[#allocation8 + $0x28] sm:$0xff]  ;;  %v582_v2 = vld [vmem:[#allocation8 + $0x20] sm:$0xff] }
  0x5c   :  { %4365 = vmatprep.subr.bf16.mxu0 %v252_v28  ;;  %5217 = vmatprep.subr.mxu1 %v591_v53  ;;  %v584_v0 = vld [vmem:[#allocation8 + $0x30] sm:$0xff]  ;;  %v6067_v4 = vld [vmem:[#allocation3 + $0x44] ss:$8 sps:$4 sm:$0xff]   ;;  %v6071_v5 = vld [vmem:[#allocation3 + $0x40] ss:$8 sps:$4 sm:$0xff]  }
  0x5d   :  { %5218 = vmatpush3.msra.mxu1 %v591_v53  ;;  %v6065_v3 = vld [vmem:[#allocation3 + $0x30] ss:$8 sps:$4 sm:$0xff]   ;;  %v6073_v6 = vld [vmem:[#allocation3 + $0x54] ss:$8 sps:$4 sm:$0xff]   ;;  %v6079_v8 = vld [vmem:[#allocation3 + $0x64] ss:$8 sps:$4 sm:$0xff]  }
  0x5e   :  { %5219 = vmatprep.subr.mxu1 %v590_v54  ;;  %v6077_v7 = vld [vmem:[#allocation3 + $0x50] ss:$8 sps:$4 sm:$0xff]   ;;  %v6083_v9 = vld [vmem:[#allocation3 + $0x60] ss:$8 sps:$4 sm:$0xff]   ;;  %v6085_v10 = vld [vmem:[#allocation3 + $0x74] ss:$8 sps:$4 sm:$0xff]  }
  0x5f   :  { %4366 = vmatpush3.bf16.msra.mxu0 %v244_v32  ;;  %5220 = vmatpush3.msra.mxu1 %v590_v54  ;;  %v6089_v11 = vld [vmem:[#allocation3 + $0x70] ss:$8 sps:$4 sm:$0xff]   ;;  %v6091_v12 = vld [vmem:[#allocation3 + $0x84] ss:$8 sps:$4 sm:$0xff]   ;;  %v6095_v13 = vld [vmem:[#allocation3 + $0x80] ss:$8 sps:$4 sm:$0xff]  }
  0x60   :  { %4367 = vmatprep.subr.bf16.mxu0 %v251_v34  ;;  %5221 = vmatprep.subr.mxu1 %v589_v55  ;;  %v6097_v14 = vld [vmem:[#allocation3 + $0x94] ss:$8 sps:$4 sm:$0xff]   ;;  %v6101_v17 = vld [vmem:[#allocation3 + $0x90] ss:$8 sps:$4 sm:$0xff]   ;;  %v579_v18 = vld [vmem:[#allocation8 + $0x8] sm:$0xff] }
  0x61   :  { %5222 = vmatpush3.msra.mxu1 %v589_v55  ;;  %6935 = vst [vmem:[#allocation20_spill] sm:$0xff] %v6097_v14  ;;  %v581_v15 = vld [vmem:[#allocation8 + $0x18] sm:$0xff]  ;;  %v580_v16 = vld [vmem:[#allocation8 + $0x10] sm:$0xff]  ;;  %6936 = vst [vmem:[#allocation21_spill] sm:$0xff] %v6101_v17 }
  0x62   :  { %5223 = vmatprep.subr.mxu1 %v588_v58  ;;  %v6103_v19 = vld [vmem:[#allocation3 + $0xa4] ss:$8 sps:$4 sm:$0xff]   ;;  %v6107_v21 = vld [vmem:[#allocation3 + $0xa0] ss:$8 sps:$4 sm:$0xff]   ;;  %v6109_v22 = vld [vmem:[#allocation3 + $0xb4] ss:$8 sps:$4 sm:$0xff]  }
  0x63   :  { %4368 = vmatpush3.bf16.msra.mxu0 %v243_v38  ;;  %5224 = vmatpush3.msra.mxu1 %v588_v58  ;;  %6937 = vst [vmem:[#allocation22_spill] sm:$0xff] %v6103_v19  ;;  %v578_v20 = vld [vmem:[#allocation8] sm:$0xff]  ;;  %6938 = vst [vmem:[#allocation23_spill] sm:$0xff] %v6107_v21  ;;  %v6113_v23 = vld [vmem:[#allocation3 + $0xb0] ss:$8 sps:$4 sm:$0xff]  }
  0x64   :  { %4369 = vmatprep.subr.bf16.mxu0 %v250_v40  ;;  %5225 = vmatprep.subr.mxu1 %v587_v59  ;;  %6939 = vst [vmem:[#allocation24_spill] sm:$0xff] %v6109_v22  ;;  %6940 = vst [vmem:[#allocation25_spill] sm:$0xff] %v6113_v23  ;;  %v6115_v24 = vld [vmem:[#allocation3 + $0xc4] ss:$8 sps:$4 sm:$0xff]   ;;  %v6119_v26 = vld [vmem:[#allocation3 + $0xc0] ss:$8 sps:$4 sm:$0xff]  }
  0x65   :  { %5226 = vmatpush3.msra.mxu1 %v587_v59  ;;  %6941 = vst [vmem:[#allocation26_spill] sm:$0xff] %v6115_v24  ;;  %6942 = vst [vmem:[#allocation27_spill] sm:$0xff] %v6119_v26  ;;  %v6121_v27 = vld [vmem:[#allocation3 + $0xd4] ss:$8 sps:$4 sm:$0xff]   ;;  %v6125_v28 = vld [vmem:[#allocation3 + $0xd0] ss:$8 sps:$4 sm:$0xff]  }
  0x66   :  { %5227 = vmatprep.subr.mxu1 %v586_v60  ;;  %6943 = vst [vmem:[#allocation28_spill] sm:$0xff] %v6121_v27  ;;  %6944 = vst [vmem:[#allocation29_spill] sm:$0xff] %v6125_v28  ;;  %v6127_v29 = vld [vmem:[#allocation3 + $0xe4] ss:$8 sps:$4 sm:$0xff]   ;;  %v6131_v30 = vld [vmem:[#allocation3 + $0xe0] ss:$8 sps:$4 sm:$0xff]  }
  0x67   :  { %4370 = vmatpush3.bf16.msra.mxu0 %v242_v44  ;;  %5228 = vmatpush3.msra.mxu1 %v586_v60  ;;  %6945 = vst [vmem:[#allocation30_spill] sm:$0xff] %v6127_v29  ;;  %6946 = vst [vmem:[#allocation31_spill] sm:$0xff] %v6131_v30  ;;  %v6133_v31 = vld [vmem:[#allocation3 + $0xf4] ss:$8 sps:$4 sm:$0xff]   ;;  %v6137_v32 = vld [vmem:[#allocation3 + $0xf0] ss:$8 sps:$4 sm:$0xff]  }
  0x68   :  { %4371 = vmatprep.subr.bf16.mxu0 %v249_v46  ;;  %5229 = vmatprep.subr.mxu1 %v585_v61  ;;  %6947 = vst [vmem:[#allocation32_spill] sm:$0xff] %v6133_v31  ;;  %6948 = vst [vmem:[#allocation33_spill] sm:$0xff] %v6137_v32 }
  0x69   :  { %5230 = vmatpush3.msra.mxu1 %v585_v61 }
  0x6a   :  { %5231 = vmatprep.subr.mxu1 %v584_v0 }
  0x6b   :  { %4372 = vmatpush3.bf16.msra.mxu0 %v241_v48  ;;  %5232 = vmatpush3.msra.mxu1 %v584_v0 }
  0x6c   :  { %5233 = vmatprep.subr.mxu1 %v583_v1 }
  0x6d   :  { %5234 = vmatpush3.msra.mxu1 %v583_v1 }
  0x6e   :  { %450 = vmatmul.mubr.bf16.vlgmr.msra.gmra.mxu0 %v6047_v49  ;;  %5235 = vmatprep.subr.mxu1 %v582_v2 }
  0x6f   :  { %457 = vmatprep.mubr.bf16.mxu0 %v6049_v50  ;;  %5236 = vmatpush3.msra.mxu1 %v582_v2 }
  0x70   :  { %5237 = vmatprep.subr.mxu1 %v581_v15 }
  0x71   :  { %5238 = vmatpush3.msra.mxu1 %v581_v15 }
  0x72   :  { %5239 = vmatprep.subr.mxu1 %v580_v16 }
  0x73   :  { %5240 = vmatpush3.msra.mxu1 %v580_v16 }
  0x74   :  { %5241 = vmatprep.subr.mxu1 %v579_v18 }
  0x75   :  { %5242 = vmatpush3.msra.mxu1 %v579_v18 }
  0x76   :  { %458 = vmatmul.mubr.bf16.gmra.mxu0 %v6053_v56  ;;  %5243 = vmatprep.subr.mxu1 %v578_v20 }
  0x77   :  { %465 = vmatprep.mubr.bf16.mxu0 %v6055_v57  ;;  %5244 = vmatpush3.msra.mxu1 %v578_v20 }
  0x7e   :  { %466 = vmatmul.mubr.bf16.gmra.mxu0 %v6059_v62 }
  0x7f   :  { %473 = vmatprep.mubr.bf16.mxu0 %v6061_v63 }
  0x86   :  { %474 = vmatmul.mubr.bf16.gmra.mxu0 %v6065_v3 }
  0x87   :  { %481 = vmatprep.mubr.bf16.mxu0 %v6067_v4 }
  0x8e   :  { %482 = vmatmul.mubr.bf16.gmra.mxu0 %v6071_v5 }
  0x8f   :  { %489 = vmatprep.mubr.bf16.mxu0 %v6073_v6 }
  0x96   :  { %490 = vmatmul.mubr.bf16.gmra.mxu0 %v6077_v7 }
  0x97   :  { %497 = vmatprep.mubr.bf16.mxu0 %v6079_v8 }
  0x9e   :  { %498 = vmatmul.mubr.bf16.gmra.mxu0 %v6083_v9 }
  0x9f   :  { %505 = vmatprep.mubr.bf16.mxu0 %v6085_v10 }
  0xa6   :  { %506 = vmatmul.mubr.bf16.gmra.mxu0 %v6089_v11 }
  0xa7   :  { %513 = vmatprep.mubr.bf16.mxu0 %v6091_v12 }
  0xae   :  { %514 = vmatmul.mubr.bf16.gmra.mxu0 %v6095_v13 }
  0xaf   :  { %521 = vmatprep.mubr.bf16.mxu0 %v6097_v14 }
  0xb6   :  { %522 = vmatmul.mubr.bf16.gmra.mxu0 %v6101_v17 }
  0xb7   :  { %529 = vmatprep.mubr.bf16.mxu0 %v6103_v19  ;;  %v6185_v19 = vld [vmem:[#allocation9] ss:$0 sm:$0xff] }
  0xbe   :  { %530 = vmatmul.mubr.bf16.gmra.mxu0 %v6107_v21 }
  0xbf   :  { %537 = vmatprep.mubr.bf16.mxu0 %v6109_v22 }
  0xc6   :  { %538 = vmatmul.mubr.bf16.gmra.mxu0 %v6113_v23 }
  0xc7   :  { %545 = vmatprep.mubr.bf16.mxu0 %v6115_v24 }
  0xce   :  { %546 = vmatmul.mubr.bf16.gmra.mxu0 %v6119_v26 }
  0xcf   :  { %553 = vmatprep.mubr.bf16.mxu0 %v6121_v27 }
  0xd6   :  { %554 = vmatmul.mubr.bf16.gmra.mxu0 %v6125_v28 }
  0xd7   :  { %561 = vmatprep.mubr.bf16.mxu0 %v6127_v29 }
  0xde   :  { %562 = vmatmul.mubr.bf16.gmra.mxu0 %v6131_v30 }
  0xdf   :  { %569 = vmatprep.mubr.bf16.mxu0 %v6133_v31 }
  0xe6   :  { %570 = vmatmul.mubr.bf16.gmra.mxu0 %v6137_v32 }
 0x12e   :  { %v4373_v33 = vpop.f32.mrf.mxu0 }
 0x130   :  { %v4374_v34 = vpop.f32.mrf.mxu0 }
 0x131   :  { %v4375_v35 = vadd.f32 %v4374_v34, %v4373_v33 }
 0x132   :  { %v4376_v36 = vpop.f32.mrf.mxu0 }
 0x133   :  { %5245 = vmatprep.mubr.f32.mxu1 %v4375_v35 }
 0x134   :  { %v4377_v37 = vpop.f32.mrf.mxu0 }
 0x135   :  { %v4378_v38 = vadd.f32 %v4377_v37, %v4376_v36 }
 0x136   :  { %v4379_v39 = vpop.f32.mrf.mxu0 }
 0x137   :  { %5246 = vmatmul.mubr.f32.vlgmr.msra.gmra.mxu1 %v4378_v38 }
 0x138   :  { %v4380_v40 = vpop.f32.mrf.mxu0 }
 0x139   :  { %v4381_v41 = vadd.f32 %v4380_v40, %v4379_v39 }
 0x13a   :  { %v4382_v42 = vpop.f32.mrf.mxu0 }
 0x13b   :  { %5248 = vmatprep.mubr.f32.mxu1 %v4381_v41 }
 0x13c   :  { %v4383_v43 = vpop.f32.mrf.mxu0 }
 0x13d   :  { %v4384_v44 = vadd.f32 %v4383_v43, %v4382_v42 }
 0x13e   :  { %v4385_v45 = vpop.f32.mrf.mxu0 }
 0x13f   :  { %5249 = vmatmul.mubr.f32.gmra.mxu1 %v4384_v44 }
 0x140   :  { %v4386_v46 = vpop.f32.mrf.mxu0 }
 0x141   :  { %v4387_v47 = vadd.f32 %v4386_v46, %v4385_v45 }
 0x142   :  { %v4388_v48 = vpop.f32.mrf.mxu0 }
 0x143   :  { %5251 = vmatprep.mubr.f32.mxu1 %v4387_v47 }
 0x144   :  { %v4389_v51 = vpop.f32.mrf.mxu0 }
 0x145   :  { %v4390_v52 = vadd.f32 %v4389_v51, %v4388_v48 }
 0x146   :  { %v4391_v53 = vpop.f32.mrf.mxu0 }
 0x147   :  { %5252 = vmatmul.mubr.f32.gmra.mxu1 %v4390_v52 }
 0x148   :  { %v4392_v54 = vpop.f32.mrf.mxu0 }
 0x149   :  { %v4393_v55 = vadd.f32 %v4392_v54, %v4391_v53 }
 0x14a   :  { %v4394_v58 = vpop.f32.mrf.mxu0 }
 0x14b   :  { %5254 = vmatprep.mubr.f32.mxu1 %v4393_v55 }
 0x14c   :  { %v4395_v59 = vpop.f32.mrf.mxu0 }
 0x14d   :  { %v4396_v60 = vadd.f32 %v4395_v59, %v4394_v58 }
 0x14e   :  { %v4397_v61 = vpop.f32.mrf.mxu0 }
 0x14f   :  { %5255 = vmatmul.mubr.f32.gmra.mxu1 %v4396_v60 }
 0x150   :  { %v4398_v0 = vpop.f32.mrf.mxu0 }
 0x151   :  { %v4399_v1 = vadd.f32 %v4398_v0, %v4397_v61 }
 0x152   :  { %v4400_v2 = vpop.f32.mrf.mxu0 }
 0x153   :  { %5257 = vmatprep.mubr.f32.mxu1 %v4399_v1 }
 0x154   :  { %v4401_v15 = vpop.f32.mrf.mxu0 }
 0x155   :  { %v4402_v16 = vadd.f32 %v4401_v15, %v4400_v2 }
 0x156   :  { %v4403_v18 = vpop.f32.mrf.mxu0 }
 0x157   :  { %5258 = vmatmul.mubr.f32.gmra.mxu1 %v4402_v16 }
 0x158   :  { %v4404_v20 = vpop.f32.mrf.mxu0 }
 0x159   :  { %v4405_v33 = vadd.f32 %v4404_v20, %v4403_v18 }
 0x15a   :  { %v4406_v34 = vpop.f32.mrf.mxu0 }
 0x15b   :  { %5260 = vmatprep.mubr.f32.mxu1 %v4405_v33 }
 0x15c   :  { %v4407_v35 = vpop.f32.mrf.mxu0 }
 0x15d   :  { %v4408_v36 = vadd.f32 %v4407_v35, %v4406_v34 }
 0x15e   :  { %v4409_v37 = vpop.f32.mrf.mxu0 }
 0x15f   :  { %5261 = vmatmul.mubr.f32.gmra.mxu1 %v4408_v36 }
 0x160   :  { %v4410_v38 = vpop.f32.mrf.mxu0 }
 0x161   :  { %v4411_v39 = vadd.f32 %v4410_v38, %v4409_v37 }
 0x162   :  { %v4412_v40 = vpop.f32.mrf.mxu0 }
 0x163   :  { %5263 = vmatprep.mubr.f32.mxu1 %v4411_v39 }
 0x164   :  { %v4413_v41 = vpop.f32.mrf.mxu0 }
 0x165   :  { %v4414_v42 = vadd.f32 %v4413_v41, %v4412_v40 }
 0x166   :  { %v4415_v43 = vpop.f32.mrf.mxu0 }
 0x167   :  { %5264 = vmatmul.mubr.f32.gmra.mxu1 %v4414_v42 }
 0x168   :  { %v4416_v44 = vpop.f32.mrf.mxu0 }
 0x169   :  { %v4417_v45 = vadd.f32 %v4416_v44, %v4415_v43 }
 0x16a   :  { %v4418_v46 = vpop.f32.mrf.mxu0 }
 0x16b   :  { %5266 = vmatprep.mubr.f32.mxu1 %v4417_v45 }
 0x16c   :  { %v4419_v47 = vpop.f32.mrf.mxu0 }
 0x16d   :  { %v4420_v48 = vadd.f32 %v4419_v47, %v4418_v46 }
 0x16e   :  { %v4421_v51 = vpop.f32.mrf.mxu0 }
 0x16f   :  { %5267 = vmatmul.mubr.f32.gmra.mxu1 %v4420_v48 }
 0x170   :  { %v4422_v52 = vpop.f32.mrf.mxu0 }
 0x171   :  { %v4423_v53 = vadd.f32 %v4422_v52, %v4421_v51 }
 0x172   :  { %v4424_v54 = vpop.f32.mrf.mxu0 }
 0x173   :  { %5269 = vmatprep.mubr.f32.mxu1 %v4423_v53 }
 0x174   :  { %v4425_v55 = vpop.f32.mrf.mxu0 }
 0x175   :  { %v4426_v58 = vadd.f32 %v4425_v55, %v4424_v54 }
 0x176   :  { %v4427_v59 = vpop.f32.mrf.mxu0 }
 0x177   :  { %5270 = vmatmul.mubr.f32.gmra.mxu1 %v4426_v58 }
 0x178   :  { %v4428_v60 = vpop.f32.mrf.mxu0 }
 0x179   :  { %v4429_v61 = vadd.f32 %v4428_v60, %v4427_v59 }
 0x17a   :  { %v4430_v0 = vpop.f32.mrf.mxu0 }
 0x17b   :  { %5272 = vmatprep.mubr.f32.mxu1 %v4429_v61 }
 0x17c   :  { %v4431_v1 = vpop.f32.mrf.mxu0 }
 0x17d   :  { %v4432_v2 = vadd.f32 %v4431_v1, %v4430_v0 }
 0x17e   :  { %v4433_v15 = vpop.f32.mrf.mxu0 }
 0x17f   :  { %5273 = vmatmul.mubr.f32.gmra.mxu1 %v4432_v2 }
 0x180   :  { %v4434_v16 = vpop.f32.mrf.mxu0 }
 0x181   :  { %v4435_v18 = vadd.f32 %v4434_v16, %v4433_v15 }
 0x182   :  { %v4436_v20 = vpop.f32.mrf.mxu0 }
 0x183   :  { %5275 = vmatprep.mubr.f32.mxu1 %v4435_v18 }
 0x184   :  { %v4437_v33 = vpop.f32.mrf.mxu0 }
 0x185   :  { %v4438_v34 = vadd.f32 %v4437_v33, %v4436_v20 }
 0x186   :  { %v4439_v35 = vpop.f32.mrf.mxu0 }
 0x187   :  { %5276 = vmatmul.mubr.f32.gmra.mxu1 %v4438_v34 }
 0x188   :  { %v4440_v36 = vpop.f32.mrf.mxu0 }
 0x189   :  { %v4441_v37 = vadd.f32 %v4440_v36, %v4439_v35 }
 0x18a   :  { %v4442_v38 = vpop.f32.mrf.mxu0 }
 0x18b   :  { %5278 = vmatprep.mubr.f32.mxu1 %v4441_v37 }
 0x18c   :  { %v4443_v39 = vpop.f32.mrf.mxu0 }
 0x18d   :  { %v4444_v40 = vadd.f32 %v4443_v39, %v4442_v38 }
 0x18e   :  { %v4445_v41 = vpop.f32.mrf.mxu0 }
 0x18f   :  { %5279 = vmatmul.mubr.f32.gmra.mxu1 %v4444_v40 }
 0x190   :  { %v4446_v42 = vpop.f32.mrf.mxu0 }
 0x191   :  { %v4447_v43 = vadd.f32 %v4446_v42, %v4445_v41 }
 0x192   :  { %v4448_v44 = vpop.f32.mrf.mxu0 }
 0x193   :  { %5281 = vmatprep.mubr.f32.mxu1 %v4447_v43 }
 0x194   :  { %v4449_v45 = vpop.f32.mrf.mxu0 }
 0x195   :  { %v4450_v46 = vadd.f32 %v4449_v45, %v4448_v44 }
 0x196   :  { %v4451_v47 = vpop.f32.mrf.mxu0 }
 0x197   :  { %5282 = vmatmul.mubr.f32.gmra.mxu1 %v4450_v46 }
 0x198   :  { %v4452_v48 = vpop.f32.mrf.mxu0 }
 0x199   :  { %v4453_v51 = vadd.f32 %v4452_v48, %v4451_v47 }
 0x19a   :  { %v4454_v52 = vpop.f32.mrf.mxu0 }
 0x19b   :  { %5284 = vmatprep.mubr.f32.mxu1 %v4453_v51 }
 0x19c   :  { %v4455_v53 = vpop.f32.mrf.mxu0 }
 0x19d   :  { %v4456_v54 = vadd.f32 %v4455_v53, %v4454_v52 }
 0x19e   :  { %v4457_v55 = vpop.f32.mrf.mxu0 }
 0x19f   :  { %5285 = vmatmul.mubr.f32.gmra.mxu1 %v4456_v54 }
 0x1a0   :  { %v4458_v58 = vpop.f32.mrf.mxu0 }
 0x1a1   :  { %v4459_v59 = vadd.f32 %v4458_v58, %v4457_v55 }
 0x1a2   :  { %v4460_v60 = vpop.f32.mrf.mxu0 }
 0x1a3   :  { %5287 = vmatprep.mubr.f32.mxu1 %v4459_v59 }
 0x1a4   :  { %v4461_v61 = vpop.f32.mrf.mxu0 }
 0x1a5   :  { %v4462_v0 = vadd.f32 %v4461_v61, %v4460_v60 }
 0x1a6   :  { %v4463_v1 = vpop.f32.mrf.mxu0 }
 0x1a7   :  { %5288 = vmatmul.mubr.f32.gmra.mxu1 %v4462_v0 }
 0x1a8   :  { %v4464_v2 = vpop.f32.mrf.mxu0 }
 0x1a9   :  { %v4465_v15 = vadd.f32 %v4464_v2, %v4463_v1 }
 0x1aa   :  { %v4466_v16 = vpop.f32.mrf.mxu0 }
 0x1ab   :  { %5290 = vmatprep.mubr.f32.mxu1 %v4465_v15 }
 0x1ac   :  { %v4467_v18 = vpop.f32.mrf.mxu0 }
 0x1ad   :  { %v4468_v20 = vadd.f32 %v4467_v18, %v4466_v16  ;;  %v6174_v16 = vld [vmem:[%s6901_s3] ss:$0 sm:$0xff] }
 0x1af   :  { %5291 = vmatmul.mubr.f32.gmra.mxu1 %v4468_v20 }
 0x1b0   :  { %1201 = vmatprep.mubr.bf16.mxu1 %v6044_v25 }
 0x1f7   :  { %v6141_v33 = vpop.f32.mrf.mxu1 }
 0x1f9   :  { %v6143_v34 = vpop.f32.mrf.mxu1 }
 0x1ff   :  { %v6145_v35 = vpop.f32.mrf.mxu1 }
 0x201   :  { %v6147_v36 = vpop.f32.mrf.mxu1 }
 0x207   :  { %v6149_v37 = vpop.f32.mrf.mxu1 }
 0x209   :  { %v6151_v38 = vpop.f32.mrf.mxu1 }
 0x20f   :  { %v6153_v39 = vpop.f32.mrf.mxu1 }
 0x211   :  { %v6155_v40 = vpop.f32.mrf.mxu1 }
 0x217   :  { %v6157_v41 = vpop.f32.mrf.mxu1 }
 0x219   :  { %v707_v42 = vpop.f32.mrf.mxu1 }
 0x21f   :  { %v5262_v25 = vpop.f32.mrf.mxu1 }
 0x221   :  { %v717_v43 = vpop.f32.mrf.mxu1 }
 0x227   :  { %v5265_v44 = vpop.f32.mrf.mxu1 }
 0x229   :  { %v727_v45 = vpop.f32.mrf.mxu1 }
 0x22a   :  { %v728_v28 = vadd.f32 %v6174_v16, %v727_v45 }
 0x22c   :  { %v838_v45 = vmax.f32 %v728_v28, 0.0 }
 0x22f   :  { %v5268_v46 = vpop.f32.mrf.mxu1 }
 0x230   :  { %v743_v32 = vadd.f32 %v5268_v46, %v6174_v16 }
 0x231   :  { %v737_v47 = vpop.f32.mrf.mxu1 }
 0x232   :  { %v738_v18 = vadd.f32 %v6174_v16, %v737_v47  ;;  %v733_v47 = vadd.f32 %v5265_v44, %v6174_v16  ;;  %v723_v44 = vadd.f32 %v5262_v25, %v6174_v16 }
 0x234   :  { %v840_v27 = vmax.f32 %v738_v18, 0.0  ;;  %v839_v14 = vmax.f32 %v733_v47, 0.0 }
 0x236   :  { %v879_v18 = vadd.f32 %v6185_v19, %v840_v27 }
 0x237   :  { %v6159_v48 = vpop.f32.mrf.mxu1 }
 0x239   :  { %v6161_v51 = vpop.f32.mrf.mxu1 }
 0x23f   :  { %v6163_v52 = vpop.f32.mrf.mxu1 }
 0x241   :  { %v6165_v53 = vpop.f32.mrf.mxu1 }
 0x247   :  { %v6167_v54 = vpop.f32.mrf.mxu1 }
 0x249   :  { %v6169_v55 = vpop.f32.mrf.mxu1 }
 0x24f   :  { %v5280_v58 = vpop.f32.mrf.mxu1 }
 0x251   :  { %v777_v59 = vpop.f32.mrf.mxu1 }
 0x257   :  { %v5283_v60 = vpop.f32.mrf.mxu1 }
 0x259   :  { %v787_v61 = vpop.f32.mrf.mxu1 }
 0x25f   :  { %v5286_v0 = vpop.f32.mrf.mxu1 }
 0x260   :  { %v803_v46 = vadd.f32 %v5286_v0, %v6174_v16 }
 0x261   :  { %v797_v1 = vpop.f32.mrf.mxu1 }
 0x262   :  { %v798_v24 = vadd.f32 %v6174_v16, %v797_v1  ;;  %v788_v1 = vadd.f32 %v6174_v16, %v787_v61  ;;  %v708_v61 = vadd.f32 %v6174_v16, %v707_v42  ;;  %v783_v42 = vadd.f32 %v5280_v58, %v6174_v16 }
 0x263   :  { %v703_v58 = vadd.f32 %v6153_v39, %v6174_v16  ;;  %v758_v39 = vadd.f32 %v6174_v16, %v6165_v53  ;;  %v678_v53 = vadd.f32 %v6174_v16, %v6147_v36  ;;  %v753_v36 = vadd.f32 %v6159_v48, %v6174_v16 }
 0x267   :  { %v5289_v2 = vpop.f32.mrf.mxu1 }
 0x268   :  { %v813_v30 = vadd.f32 %v5289_v2, %v6174_v16 }
 0x269   :  { %v807_v15 = vpop.f32.mrf.mxu1 }
 0x26a   :  { %v808_v20 = vadd.f32 %v6174_v16, %v807_v15  ;;  %v841_v15 = vmax.f32 %v743_v32, 0.0  ;;  %v855_v2 = vmax.f32 %v813_v30, 0.0 }
 0x26c   :  { %v854_v23 = vmax.f32 %v808_v20, 0.0  ;;  %v852_v20 = vmax.f32 %v798_v24, 0.0  ;;  %v880_v30 = vadd.f32 %v6185_v19, %v841_v15  ;;  %v894_v28 = vadd.f32 %v6185_v19, %v855_v2 }
 0x26d   :  { %v837_v15 = vmax.f32 %v723_v44, 0.0  ;;  %v849_v44 = vmax.f32 %v783_v42, 0.0 }
 0x26e   :  { %v1000_v0 = vpack.c.bf16 %v880_v30, %v879_v18  ;;  %v891_v25 = vadd.f32 %v6185_v19, %v852_v20 }
 0x26f   :  { %v5292_v31 = vpop.f32.mrf.mxu1 }
 0x270   :  { %v823_v29 = vadd.f32 %v5292_v31, %v6174_v16  ;;  %v718_v31 = vadd.f32 %v6174_v16, %v717_v43  ;;  %v853_v43 = vmax.f32 %v803_v46, 0.0  ;;  %v878_v46 = vadd.f32 %v6185_v19, %v839_v14 }
 0x271   :  { %v817_v26 = vpop.f32.mrf.mxu1 }
 0x272   :  { %v857_v22 = vmax.f32 %v823_v29, 0.0  ;;  %v818_v21 = vadd.f32 %v6174_v16, %v817_v26  ;;  %v893_v29 = vadd.f32 %v6185_v19, %v854_v23  ;;  %v836_v24 = vmax.f32 %v718_v31, 0.0 }
 0x273   :  { %v877_v23 = vadd.f32 %v6185_v19, %v838_v45  ;;  %v892_v31 = vadd.f32 %v6185_v19, %v853_v43  ;;  %v834_v45 = vmax.f32 %v708_v61, 0.0 }
 0x274   :  { %v856_v17 = vmax.f32 %v818_v21, 0.0  ;;  %v896_v26 = vadd.f32 %v6185_v19, %v857_v22  ;;  %v793_v21 = vadd.f32 %v5283_v60, %v6174_v16  ;;  %v778_v22 = vadd.f32 %v6174_v16, %v777_v59 }
 0x275   :  { %v1007_v47 = vpack.c.bf16 %v894_v28, %v893_v29  ;;  %v713_v60 = vadd.f32 %v6157_v41, %v6174_v16  ;;  %v698_v59 = vadd.f32 %v6174_v16, %v6155_v40  ;;  %v875_v18 = vadd.f32 %v6185_v19, %v836_v24 }
 0x276   :  { %v895_v32 = vadd.f32 %v6185_v19, %v856_v17  ;;  %v850_v17 = vmax.f32 %v788_v1, 0.0  ;;  %v851_v2 = vmax.f32 %v793_v21, 0.0  ;;  %v999_v1 = vpack.c.bf16 %v878_v46, %v877_v23 }
 0x277   :  { %v768_v41 = vadd.f32 %v6174_v16, %v6169_v55  ;;  %v848_v20 = vmax.f32 %v778_v22, 0.0  ;;  %v1006_v29 = vpack.c.bf16 %v892_v31, %v891_v25  ;;  %v773_v40 = vadd.f32 %v6167_v54, %v6174_v16 }
 0x278   :  { %v1008_v27 = vpack.c.bf16 %v896_v26, %v895_v32  ;;  %v889_v14 = vadd.f32 %v6185_v19, %v850_v17  ;;  %v835_v26 = vmax.f32 %v713_v60, 0.0  ;;  %v876_v32 = vadd.f32 %v6185_v19, %v837_v15 }
 0x279   :  { %v890_v30 = vadd.f32 %v6185_v19, %v851_v2  ;;  %v688_v55 = vadd.f32 %v6174_v16, %v6151_v38  ;;  %v832_v21 = vmax.f32 %v698_v59, 0.0  ;;  %v873_v43 = vadd.f32 %v6185_v19, %v834_v45 }
 0x27a   :  { %4517 = vmatprep.subr.bf16.mxu1 %v1008_v27  ;;  %v998_v28 = vpack.c.bf16 %v876_v32, %v875_v18  ;;  %v846_v27 = vmax.f32 %v768_v41, 0.0  ;;  %v887_v61 = vadd.f32 %v6185_v19, %v848_v20  ;;  %v693_v54 = vadd.f32 %v6149_v37, %v6174_v16 }
 0x27b   :  { %4518 = vmatpush3.bf16.msra.mxu1 %v1000_v0  ;;  %v1005_v24 = vpack.c.bf16 %v890_v30, %v889_v14  ;;  %v833_v23 = vmax.f32 %v703_v58, 0.0  ;;  %v874_v0 = vadd.f32 %v6185_v19, %v835_v26  ;;  %v763_v38 = vadd.f32 %v6163_v52, %v6174_v16 }
 0x27c   :  { %4519 = vmatprep.subr.bf16.mxu1 %v1007_v47  ;;  %v847_v22 = vmax.f32 %v773_v40, 0.0  ;;  %v888_v17 = vadd.f32 %v6185_v19, %v849_v44  ;;  %v830_v25 = vmax.f32 %v688_v55, 0.0  ;;  %v871_v47 = vadd.f32 %v6185_v19, %v832_v21 }
 0x27d   :  { %v997_v60 = vpack.c.bf16 %v874_v0, %v873_v43  ;;  %v748_v37 = vadd.f32 %v6174_v16, %v6161_v51  ;;  %v844_v15 = vmax.f32 %v758_v39, 0.0  ;;  %v885_v46 = vadd.f32 %v6185_v19, %v846_v27  ;;  %v1346_v27 = vld [vmem:[#allocation8 + $0xf8] sm:$0xff]  ;;  %v1343_v0 = vld [vmem:[#allocation8 + $0xe0] sm:$0xff] }
 0x27e   :  { %v1004_v42 = vpack.c.bf16 %v888_v17, %v887_v61  ;;  %v683_v52 = vadd.f32 %v6145_v35, %v6174_v16  ;;  %v831_v2 = vmax.f32 %v693_v54, 0.0  ;;  %v872_v31 = vadd.f32 %v6185_v19, %v833_v23  ;;  %v1345_v61 = vld [vmem:[#allocation8 + $0xf0] sm:$0xff]  ;;  %5293 = vmatprep.subr.mxu0 %v1346_v27  ;;  %v1344_v54 = vld [vmem:[#allocation8 + $0xe8] sm:$0xff]  ;;  %v1339_v17 = vld [vmem:[#allocation8 + $0xc0] sm:$0xff] }
 0x27f   :  { %4520 = vmatpush3.bf16.msra.mxu1 %v999_v1  ;;  %v845_v59 = vmax.f32 %v763_v38, 0.0  ;;  %v886_v45 = vadd.f32 %v6185_v19, %v847_v22  ;;  %v668_v51 = vadd.f32 %v6174_v16, %v6143_v34  ;;  %v828_v18 = vmax.f32 %v678_v53, 0.0  ;;  %5294 = vmatpush3.msra.mxu0 %v1346_v27  ;;  %v1342_v38 = vld [vmem:[#allocation8 + $0xd8] sm:$0xff]  ;;  %v1341_v22 = vld [vmem:[#allocation8 + $0xd0] sm:$0xff] }
 0x280   :  { %4521 = vmatprep.subr.bf16.mxu1 %v1006_v29  ;;  %v869_v1 = vadd.f32 %v6185_v19, %v830_v25  ;;  %v996_v41 = vpack.c.bf16 %v872_v31, %v871_v47  ;;  %v842_v20 = vmax.f32 %v748_v37, 0.0  ;;  %v883_v35 = vadd.f32 %v6185_v19, %v844_v15  ;;  %5295 = vmatprep.subr.mxu0 %v1345_v61  ;;  %v1338_v53 = vld [vmem:[#allocation8 + $0xb8] sm:$0xff]  ;;  %v1337_v25 = vld [vmem:[#allocation8 + $0xb0] sm:$0xff] }
 0x281   :  { %v1003_v14 = vpack.c.bf16 %v886_v45, %v885_v46  ;;  %v673_v29 = vadd.f32 %v6141_v33, %v6174_v16  ;;  %v829_v58 = vmax.f32 %v683_v52, 0.0  ;;  %v870_v48 = vadd.f32 %v6185_v19, %v831_v2  ;;  %5296 = vmatpush3.msra.mxu0 %v1345_v61  ;;  %v6960_v47 = vld [vmem:[#allocation31_spill] sm:$0xff]  ;;  %v6962_v37 = vld [vmem:[#allocation33_spill] sm:$0xff] }
 0x282   :  { %v843_v26 = vmax.f32 %v753_v36, 0.0  ;;  %v884_v32 = vadd.f32 %v6185_v19, %v845_v59  ;;  %v826_v34 = vmax.f32 %v668_v51, 0.0  ;;  %v867_v40 = vadd.f32 %v6185_v19, %v828_v18  ;;  %5297 = vmatprep.subr.mxu0 %v1344_v54 }
 0x283   :  { %4522 = vmatpush3.bf16.msra.mxu1 %v998_v28  ;;  %v995_v44 = vpack.c.bf16 %v870_v48, %v869_v1  ;;  %v881_v30 = vadd.f32 %v6185_v19, %v842_v20  ;;  %v827_v21 = vmax.f32 %v673_v29, 0.0  ;;  %v868_v43 = vadd.f32 %v6185_v19, %v829_v58  ;;  %5298 = vmatpush3.msra.mxu0 %v1344_v54 }
 0x284   :  { %4523 = vmatprep.subr.bf16.mxu1 %v1005_v24  ;;  %v1002_v55 = vpack.c.bf16 %v884_v32, %v883_v35  ;;  %v882_v33 = vadd.f32 %v6185_v19, %v843_v26  ;;  %v865_v16 = vadd.f32 %v6185_v19, %v826_v34  ;;  %5299 = vmatprep.subr.mxu0 %v1343_v0 }
 0x285   :  { %v994_v28 = vpack.c.bf16 %v868_v43, %v867_v40  ;;  %v866_v24 = vadd.f32 %v6185_v19, %v827_v21  ;;  %5300 = vmatpush3.msra.mxu0 %v1343_v0  ;;  %v1340_v19 = vld [vmem:[#allocation8 + $0xc8] sm:$0xff] }
 0x286   :  { %v1001_v39 = vpack.c.bf16 %v882_v33, %v881_v30  ;;  %5301 = vmatprep.subr.mxu0 %v1342_v38 }
 0x287   :  { %4524 = vmatpush3.bf16.msra.mxu1 %v997_v60  ;;  %v993_v23 = vpack.c.bf16 %v866_v24, %v865_v16  ;;  %5302 = vmatpush3.msra.mxu0 %v1342_v38  ;;  %v6961_v60 = vld [vmem:[#allocation32_spill] sm:$0xff] }
 0x288   :  { %4525 = vmatprep.subr.bf16.mxu1 %v1004_v42  ;;  %5303 = vmatprep.subr.mxu0 %v1341_v22 }
 0x289   :  { %5304 = vmatpush3.msra.mxu0 %v1341_v22 }
 0x28a   :  { %5305 = vmatprep.subr.mxu0 %v1340_v19 }
 0x28b   :  { %4526 = vmatpush3.bf16.msra.mxu1 %v996_v41  ;;  %5306 = vmatpush3.msra.mxu0 %v1340_v19 }
 0x28c   :  { %4527 = vmatprep.subr.bf16.mxu1 %v1003_v14  ;;  %5307 = vmatprep.subr.mxu0 %v1339_v17 }
 0x28d   :  { %5308 = vmatpush3.msra.mxu0 %v1339_v17 }
 0x28e   :  { %5309 = vmatprep.subr.mxu0 %v1338_v53 }
 0x28f   :  { %4528 = vmatpush3.bf16.msra.mxu1 %v995_v44  ;;  %5310 = vmatpush3.msra.mxu0 %v1338_v53 }
 0x290   :  { %4529 = vmatprep.subr.bf16.mxu1 %v1002_v55  ;;  %5311 = vmatprep.subr.mxu0 %v1337_v25 }
 0x291   :  { %5312 = vmatpush3.msra.mxu0 %v1337_v25 }
 0x293   :  { %4530 = vmatpush3.bf16.msra.mxu1 %v994_v28 }
 0x294   :  { %4531 = vmatprep.subr.bf16.mxu1 %v1001_v39 }
 0x297   :  { %4532 = vmatpush3.bf16.msra.mxu1 %v993_v23 }
 0x29a   :  { %1202 = vmatmul.mubr.bf16.vlgmr.msra.gmra.mxu1 %v6047_v49  ;;  %v1336_v49 = vld [vmem:[#allocation8 + $0xa8] sm:$0xff] }
 0x29b   :  { %1209 = vmatprep.mubr.bf16.mxu1 %v6049_v50  ;;  %v1335_v50 = vld [vmem:[#allocation8 + $0xa0] sm:$0xff]  ;;  %5313 = vmatprep.subr.mxu0 %v1336_v49 }
 0x29c   :  { %5314 = vmatpush3.msra.mxu0 %v1336_v49 }
 0x29d   :  { %5315 = vmatprep.subr.mxu0 %v1335_v50 }
 0x29e   :  { %5316 = vmatpush3.msra.mxu0 %v1335_v50 }
 0x2a2   :  { %1210 = vmatmul.mubr.bf16.gmra.mxu1 %v6053_v56  ;;  %v1334_v56 = vld [vmem:[#allocation8 + $0x98] sm:$0xff] }
 0x2a3   :  { %1217 = vmatprep.mubr.bf16.mxu1 %v6055_v57  ;;  %v6949_v57 = vld [vmem:[#allocation20_spill] sm:$0xff]  ;;  %5317 = vmatprep.subr.mxu0 %v1334_v56 }
 0x2a4   :  { %5318 = vmatpush3.msra.mxu0 %v1334_v56 }
 0x2aa   :  { %1218 = vmatmul.mubr.bf16.gmra.mxu1 %v6059_v62  ;;  %v1333_v62 = vld [vmem:[#allocation8 + $0x90] sm:$0xff] }
 0x2ab   :  { %1225 = vmatprep.mubr.bf16.mxu1 %v6061_v63  ;;  %5319 = vmatprep.subr.mxu0 %v1333_v62  ;;  %v1332_v63 = vld [vmem:[#allocation8 + $0x88] sm:$0xff] }
 0x2ac   :  { %5320 = vmatpush3.msra.mxu0 %v1333_v62 }
 0x2ad   :  { %5321 = vmatprep.subr.mxu0 %v1332_v63 }
 0x2ae   :  { %5322 = vmatpush3.msra.mxu0 %v1332_v63 }
 0x2b2   :  { %1226 = vmatmul.mubr.bf16.gmra.mxu1 %v6065_v3  ;;  %v1331_v3 = vld [vmem:[#allocation8 + $0x80] sm:$0xff] }
 0x2b3   :  { %1233 = vmatprep.mubr.bf16.mxu1 %v6067_v4  ;;  %5323 = vmatprep.subr.mxu0 %v1331_v3  ;;  %v6950_v4 = vld [vmem:[#allocation21_spill] sm:$0xff] }
 0x2b4   :  { %5324 = vmatpush3.msra.mxu0 %v1331_v3 }
 0x2ba   :  { %1234 = vmatmul.mubr.bf16.gmra.mxu1 %v6071_v5  ;;  %v6951_v5 = vld [vmem:[#allocation22_spill] sm:$0xff] }
 0x2bb   :  { %1241 = vmatprep.mubr.bf16.mxu1 %v6073_v6  ;;  %v6952_v6 = vld [vmem:[#allocation23_spill] sm:$0xff] }
 0x2c2   :  { %1242 = vmatmul.mubr.bf16.gmra.mxu1 %v6077_v7  ;;  %v6953_v7 = vld [vmem:[#allocation24_spill] sm:$0xff] }
 0x2c3   :  { %1249 = vmatprep.mubr.bf16.mxu1 %v6079_v8  ;;  %v6954_v8 = vld [vmem:[#allocation25_spill] sm:$0xff] }
 0x2ca   :  { %1250 = vmatmul.mubr.bf16.gmra.mxu1 %v6083_v9  ;;  %v6955_v9 = vld [vmem:[#allocation26_spill] sm:$0xff] }
 0x2cb   :  { %1257 = vmatprep.mubr.bf16.mxu1 %v6085_v10  ;;  %v6956_v10 = vld [vmem:[#allocation27_spill] sm:$0xff] }
 0x2d2   :  { %1258 = vmatmul.mubr.bf16.gmra.mxu1 %v6089_v11  ;;  %v6957_v11 = vld [vmem:[#allocation28_spill] sm:$0xff] }
 0x2d3   :  { %1265 = vmatprep.mubr.bf16.mxu1 %v6091_v12  ;;  %v6958_v12 = vld [vmem:[#allocation29_spill] sm:$0xff] }
 0x2da   :  { %1266 = vmatmul.mubr.bf16.gmra.mxu1 %v6095_v13  ;;  %v6959_v13 = vld [vmem:[#allocation30_spill] sm:$0xff] }
 0x2db   :  { %1273 = vmatprep.mubr.bf16.mxu1 %v6949_v57 }
 0x2e2   :  { %1274 = vmatmul.mubr.bf16.gmra.mxu1 %v6950_v4 }
 0x2e3   :  { %1281 = vmatprep.mubr.bf16.mxu1 %v6951_v5 }
 0x2ea   :  { %1282 = vmatmul.mubr.bf16.gmra.mxu1 %v6952_v6 }
 0x2eb   :  { %1289 = vmatprep.mubr.bf16.mxu1 %v6953_v7 }
 0x2f2   :  { %1290 = vmatmul.mubr.bf16.gmra.mxu1 %v6954_v8 }
 0x2f3   :  { %1297 = vmatprep.mubr.bf16.mxu1 %v6955_v9 }
 0x2fa   :  { %1298 = vmatmul.mubr.bf16.gmra.mxu1 %v6956_v10 }
 0x2fb   :  { %1305 = vmatprep.mubr.bf16.mxu1 %v6957_v11 }
 0x302   :  { %1306 = vmatmul.mubr.bf16.gmra.mxu1 %v6958_v12 }
 0x303   :  { %1313 = vmatprep.mubr.bf16.mxu1 %v6959_v13 }
 0x30a   :  { %1314 = vmatmul.mubr.bf16.gmra.mxu1 %v6960_v47 }
 0x30b   :  { %1321 = vmatprep.mubr.bf16.mxu1 %v6961_v60 }
 0x312   :  { %1322 = vmatmul.mubr.bf16.gmra.mxu1 %v6962_v37 }
 0x35a   :  { %v4533_v15 = vpop.f32.mrf.mxu1 }
 0x35c   :  { %v4534_v46 = vpop.f32.mrf.mxu1 }
 0x35d   :  { %v4535_v42 = vadd.f32 %v4534_v46, %v4533_v15 }
 0x35e   :  { %v4536_v52 = vpop.f32.mrf.mxu1 }
 0x35f   :  { %5325 = vmatprep.mubr.f32.mxu0 %v4535_v42 }
 0x360   :  { %v4537_v2 = vpop.f32.mrf.mxu1 }
 0x361   :  { %v4538_v31 = vadd.f32 %v4537_v2, %v4536_v52 }
 0x362   :  { %v4539_v36 = vpop.f32.mrf.mxu1 }
 0x363   :  { %5326 = vmatmul.mubr.f32.vlgmr.msra.gmra.mxu0 %v4538_v31 }
 0x364   :  { %v4540_v59 = vpop.f32.mrf.mxu1 }
 0x365   :  { %v4541_v45 = vadd.f32 %v4540_v59, %v4539_v36 }
 0x366   :  { %v4542_v51 = vpop.f32.mrf.mxu1 }
 0x367   :  { %5328 = vmatprep.mubr.f32.mxu0 %v4541_v45 }
 0x368   :  { %v4543_v18 = vpop.f32.mrf.mxu1 }
 0x369   :  { %v4544_v1 = vadd.f32 %v4543_v18, %v4542_v51 }
 0x36a   :  { %v4545_v41 = vpop.f32.mrf.mxu1 }
 0x36b   :  { %5329 = vmatmul.mubr.f32.gmra.mxu0 %v4544_v1 }
 0x36c   :  { %v4546_v20 = vpop.f32.mrf.mxu1 }
 0x36d   :  { %v4547_v35 = vadd.f32 %v4546_v20, %v4545_v41 }
 0x36e   :  { %v4548_v14 = vpop.f32.mrf.mxu1 }
 0x36f   :  { %5331 = vmatprep.mubr.f32.mxu0 %v4547_v35 }
 0x370   :  { %v4549_v29 = vpop.f32.mrf.mxu1 }
 0x371   :  { %v4550_v58 = vadd.f32 %v4549_v29, %v4548_v14 }
 0x372   :  { %v4551_v48 = vpop.f32.mrf.mxu1 }
 0x373   :  { %5332 = vmatmul.mubr.f32.gmra.mxu0 %v4550_v58 }
 0x374   :  { %v4552_v26 = vpop.f32.mrf.mxu1 }
 0x375   :  { %v4553_v32 = vadd.f32 %v4552_v26, %v4551_v48 }
 0x376   :  { %v4554_v34 = vpop.f32.mrf.mxu1 }
 0x377   :  { %5334 = vmatprep.mubr.f32.mxu0 %v4553_v32 }
 0x378   :  { %v4555_v40 = vpop.f32.mrf.mxu1 }
 0x379   :  { %v4556_v44 = vadd.f32 %v4555_v40, %v4554_v34 }
 0x37a   :  { %v4557_v30 = vpop.f32.mrf.mxu1 }
 0x37b   :  { %5335 = vmatmul.mubr.f32.gmra.mxu0 %v4556_v44 }
 0x37c   :  { %v4558_v55 = vpop.f32.mrf.mxu1 }
 0x37d   :  { %v4559_v21 = vadd.f32 %v4558_v55, %v4557_v30 }
 0x37e   :  { %v4560_v43 = vpop.f32.mrf.mxu1 }
 0x37f   :  { %5337 = vmatprep.mubr.f32.mxu0 %v4559_v21 }
 0x380   :  { %v4561_v33 = vpop.f32.mrf.mxu1 }
 0x381   :  { %v4562_v16 = vadd.f32 %v4561_v33, %v4560_v43 }
 0x382   :  { %v4563_v28 = vpop.f32.mrf.mxu1 }
 0x383   :  { %5338 = vmatmul.mubr.f32.gmra.mxu0 %v4562_v16 }
 0x384   :  { %v4564_v39 = vpop.f32.mrf.mxu1 }
 0x385   :  { %v4565_v27 = vadd.f32 %v4564_v39, %v4563_v28 }
 0x386   :  { %v4566_v61 = vpop.f32.mrf.mxu1 }
 0x387   :  { %5340 = vmatprep.mubr.f32.mxu0 %v4565_v27 }
 0x388   :  { %v4567_v24 = vpop.f32.mrf.mxu1 }
 0x389   :  { %v4568_v54 = vadd.f32 %v4567_v24, %v4566_v61  ;;  %v6292_v24 = vld [vmem:[#allocation3 + $0x4] ss:$8 sps:$4 sm:$0xff]  }
 0x38a   :  { %v4569_v23 = vpop.f32.mrf.mxu1 }
 0x38b   :  { %5341 = vmatmul.mubr.f32.gmra.mxu0 %v4568_v54 }
 0x38c   :  { %v4570_v0 = vpop.f32.mrf.mxu1 }
 0x38d   :  { %v4571_v38 = vadd.f32 %v4570_v0, %v4569_v23 }
 0x38e   :  { %v4572_v22 = vpop.f32.mrf.mxu1 }
 0x38f   :  { %5343 = vmatprep.mubr.f32.mxu0 %v4571_v38 }
 0x390   :  { %v4573_v19 = vpop.f32.mrf.mxu1 }
 0x391   :  { %v4574_v17 = vadd.f32 %v4573_v19, %v4572_v22 }
 0x392   :  { %v4575_v53 = vpop.f32.mrf.mxu1 }
 0x393   :  { %5344 = vmatmul.mubr.f32.gmra.mxu0 %v4574_v17 }
 0x394   :  { %v4576_v25 = vpop.f32.mrf.mxu1 }
 0x395   :  { %v4577_v49 = vadd.f32 %v4576_v25, %v4575_v53 }
 0x396   :  { %v4578_v50 = vpop.f32.mrf.mxu1 }
 0x397   :  { %5346 = vmatprep.mubr.f32.mxu0 %v4577_v49 }
 0x398   :  { %v4579_v56 = vpop.f32.mrf.mxu1 }
 0x399   :  { %v4580_v57 = vadd.f32 %v4579_v56, %v4578_v50 }
 0x39a   :  { %v4581_v62 = vpop.f32.mrf.mxu1 }
 0x39b   :  { %5347 = vmatmul.mubr.f32.gmra.mxu0 %v4580_v57 }
 0x39c   :  { %v4582_v63 = vpop.f32.mrf.mxu1 }
 0x39d   :  { %v4583_v3 = vadd.f32 %v4582_v63, %v4581_v62 }
 0x39e   :  { %v4584_v4 = vpop.f32.mrf.mxu1 }
 0x39f   :  { %5349 = vmatprep.mubr.f32.mxu0 %v4583_v3 }
 0x3a0   :  { %v4585_v5 = vpop.f32.mrf.mxu1 }
 0x3a1   :  { %v4586_v6 = vadd.f32 %v4585_v5, %v4584_v4 }
 0x3a2   :  { %v4587_v7 = vpop.f32.mrf.mxu1 }
 0x3a3   :  { %5350 = vmatmul.mubr.f32.gmra.mxu0 %v4586_v6 }
 0x3a4   :  { %v4588_v8 = vpop.f32.mrf.mxu1 }
 0x3a5   :  { %v4589_v9 = vadd.f32 %v4588_v8, %v4587_v7 }
 0x3a6   :  { %v4590_v10 = vpop.f32.mrf.mxu1 }
 0x3a7   :  { %5352 = vmatprep.mubr.f32.mxu0 %v4589_v9 }
 0x3a8   :  { %v4591_v11 = vpop.f32.mrf.mxu1 }
 0x3a9   :  { %v4592_v12 = vadd.f32 %v4591_v11, %v4590_v10 }
 0x3aa   :  { %v4593_v13 = vpop.f32.mrf.mxu1 }
 0x3ab   :  { %5353 = vmatmul.mubr.f32.gmra.mxu0 %v4592_v12 }
 0x3ac   :  { %v4594_v47 = vpop.f32.mrf.mxu1 }
 0x3ad   :  { %v4595_v60 = vadd.f32 %v4594_v47, %v4593_v13 }
 0x3ae   :  { %v4596_v37 = vpop.f32.mrf.mxu1 }
 0x3af   :  { %5355 = vmatprep.mubr.f32.mxu0 %v4595_v60 }
 0x3b0   :  { %v4597_v15 = vpop.f32.mrf.mxu1 }
 0x3b1   :  { %v4598_v46 = vadd.f32 %v4597_v15, %v4596_v37  ;;  %v6324_v37 = vld [vmem:[%s6901_s3 + $0x1] ss:$0 sm:$0xff] }
 0x3b2   :  { %v4599_v42 = vpop.f32.mrf.mxu1 }
 0x3b3   :  { %5356 = vmatmul.mubr.f32.gmra.mxu0 %v4598_v46 }
 0x3b4   :  { %v4600_v52 = vpop.f32.mrf.mxu1 }
 0x3b5   :  { %v4601_v2 = vadd.f32 %v4600_v52, %v4599_v42 }
 0x3b6   :  { %v4602_v31 = vpop.f32.mrf.mxu1 }
 0x3b7   :  { %5358 = vmatprep.mubr.f32.mxu0 %v4601_v2 }
 0x3b8   :  { %v4603_v36 = vpop.f32.mrf.mxu1 }
 0x3b9   :  { %v4604_v59 = vadd.f32 %v4603_v36, %v4602_v31 }
 0x3ba   :  { %v4605_v45 = vpop.f32.mrf.mxu1 }
 0x3bb   :  { %5359 = vmatmul.mubr.f32.gmra.mxu0 %v4604_v59 }
 0x3bc   :  { %v4606_v51 = vpop.f32.mrf.mxu1 }
 0x3bd   :  { %v4607_v18 = vadd.f32 %v4606_v51, %v4605_v45 }
 0x3be   :  { %v4608_v1 = vpop.f32.mrf.mxu1 }
 0x3bf   :  { %5361 = vmatprep.mubr.f32.mxu0 %v4607_v18 }
 0x3c0   :  { %v4609_v41 = vpop.f32.mrf.mxu1 }
 0x3c1   :  { %v4610_v20 = vadd.f32 %v4609_v41, %v4608_v1 }
 0x3c2   :  { %v4611_v35 = vpop.f32.mrf.mxu1 }
 0x3c3   :  { %5362 = vmatmul.mubr.f32.gmra.mxu0 %v4610_v20 }
 0x3c4   :  { %v4612_v14 = vpop.f32.mrf.mxu1 }
 0x3c5   :  { %v4613_v29 = vadd.f32 %v4612_v14, %v4611_v35  ;;  %v6335_v14 = vld [vmem:[#allocation9 + $0x1] ss:$0 sm:$0xff] }
 0x3c6   :  { %v4614_v58 = vpop.f32.mrf.mxu1 }
 0x3c7   :  { %5364 = vmatprep.mubr.f32.mxu0 %v4613_v29 }
 0x3c8   :  { %v4615_v48 = vpop.f32.mrf.mxu1 }
 0x3c9   :  { %v4616_v26 = vadd.f32 %v4615_v48, %v4614_v58 }
 0x3ca   :  { %v4617_v32 = vpop.f32.mrf.mxu1 }
 0x3cb   :  { %5365 = vmatmul.mubr.f32.gmra.mxu0 %v4616_v26 }
 0x3cc   :  { %v4618_v34 = vpop.f32.mrf.mxu1 }
 0x3cd   :  { %v4619_v40 = vadd.f32 %v4618_v34, %v4617_v32 }
 0x3ce   :  { %v4620_v44 = vpop.f32.mrf.mxu1 }
 0x3cf   :  { %5367 = vmatprep.mubr.f32.mxu0 %v4619_v40 }
 0x3d0   :  { %v4621_v30 = vpop.f32.mrf.mxu1 }
 0x3d1   :  { %v4622_v55 = vadd.f32 %v4621_v30, %v4620_v44 }
 0x3d2   :  { %v4623_v21 = vpop.f32.mrf.mxu1 }
 0x3d3   :  { %5368 = vmatmul.mubr.f32.gmra.mxu0 %v4622_v55 }
 0x3d4   :  { %v4624_v43 = vpop.f32.mrf.mxu1 }
 0x3d5   :  { %v4625_v33 = vadd.f32 %v4624_v43, %v4623_v21 }
 0x3d6   :  { %v4626_v16 = vpop.f32.mrf.mxu1 }
 0x3d7   :  { %5370 = vmatprep.mubr.f32.mxu0 %v4625_v33 }
 0x3d8   :  { %v4627_v28 = vpop.f32.mrf.mxu1 }
 0x3d9   :  { %v4628_v39 = vadd.f32 %v4627_v28, %v4626_v16 }
 0x3db   :  { %5371 = vmatmul.mubr.f32.gmra.mxu0 %v4628_v39 }
 0x3dc   :  { %1956 = vmatprep.mubr.bf16.mxu0 %v6292_v24 }
 0x423   :  { %v6288_v27 = vpop.f32.mrf.mxu0 }
 0x425   :  { %v6290_v61 = vpop.f32.mrf.mxu0 }
 0x42b   :  { %v6294_v54 = vpop.f32.mrf.mxu0 }
 0x42d   :  { %v6297_v23 = vpop.f32.mrf.mxu0 }
 0x433   :  { %v6299_v0 = vpop.f32.mrf.mxu0 }
 0x435   :  { %v6301_v38 = vpop.f32.mrf.mxu0 }
 0x43b   :  { %v6303_v22 = vpop.f32.mrf.mxu0 }
 0x43d   :  { %v6305_v19 = vpop.f32.mrf.mxu0 }
 0x443   :  { %v6307_v17 = vpop.f32.mrf.mxu0 }
 0x445   :  { %v1461_v53 = vpop.f32.mrf.mxu0 }
 0x44b   :  { %v5342_v25 = vpop.f32.mrf.mxu0 }
 0x44c   :  { %v1477_v43 = vadd.f32 %v5342_v25, %v6324_v37 }
 0x44d   :  { %v1471_v49 = vpop.f32.mrf.mxu0 }
 0x44e   :  { %v1472_v26 = vadd.f32 %v6324_v37, %v1471_v49 }
 0x453   :  { %v5345_v50 = vpop.f32.mrf.mxu0 }
 0x454   :  { %v1487_v20 = vadd.f32 %v5345_v50, %v6324_v37 }
 0x455   :  { %v1481_v56 = vpop.f32.mrf.mxu0 }
 0x456   :  { %v1482_v36 = vadd.f32 %v6324_v37, %v1481_v56  ;;  %v1593_v33 = vmax.f32 %v1487_v20, 0.0  ;;  %v1462_v56 = vadd.f32 %v6324_v37, %v1461_v53 }
 0x458   :  { %v1592_v32 = vmax.f32 %v1482_v36, 0.0 }
 0x45b   :  { %v5348_v57 = vpop.f32.mrf.mxu0 }
 0x45c   :  { %v1497_v42 = vadd.f32 %v5348_v57, %v6324_v37  ;;  %v1590_v57 = vmax.f32 %v1472_v26, 0.0 }
 0x45d   :  { %v1491_v62 = vpop.f32.mrf.mxu0 }
 0x45e   :  { %v1492_v15 = vadd.f32 %v6324_v37, %v1491_v62  ;;  %v1595_v35 = vmax.f32 %v1497_v42, 0.0  ;;  %v1632_v62 = vadd.f32 %v6335_v14, %v1592_v32 }
 0x460   :  { %v1594_v59 = vmax.f32 %v1492_v15, 0.0  ;;  %v1635_v16 = vadd.f32 %v6335_v14, %v1595_v35  ;;  %v1633_v15 = vadd.f32 %v6335_v14, %v1593_v33 }
 0x462   :  { %v1634_v34 = vadd.f32 %v6335_v14, %v1594_v59 }
 0x463   :  { %v6309_v63 = vpop.f32.mrf.mxu0 }
 0x465   :  { %v6311_v3 = vpop.f32.mrf.mxu0 }
 0x46b   :  { %v6313_v4 = vpop.f32.mrf.mxu0 }
 0x46d   :  { %v6315_v5 = vpop.f32.mrf.mxu0 }
 0x473   :  { %v6317_v6 = vpop.f32.mrf.mxu0 }
 0x475   :  { %v6319_v7 = vpop.f32.mrf.mxu0 }
 0x47b   :  { %v5360_v8 = vpop.f32.mrf.mxu0 }
 0x47c   :  { %v1537_v53 = vadd.f32 %v5360_v8, %v6324_v37  ;;  %v1457_v8 = vadd.f32 %v6303_v22, %v6324_v37  ;;  %v1512_v22 = vadd.f32 %v6324_v37, %v6315_v5  ;;  %v1432_v5 = vadd.f32 %v6324_v37, %v6297_v23 }
 0x47d   :  { %v1531_v9 = vpop.f32.mrf.mxu0  ;;  %v1507_v23 = vadd.f32 %v6309_v63, %v6324_v37 }
 0x47e   :  { %v1587_v32 = vmax.f32 %v1457_v8, 0.0  ;;  %v6407_v8 = vld [vmem:[#allocation3] ss:$8 sps:$4 sm:$0xff]  }
 0x483   :  { %v5363_v10 = vpop.f32.mrf.mxu0 }
 0x484   :  { %v1547_v28 = vadd.f32 %v5363_v10, %v6324_v37  ;;  %v1467_v10 = vadd.f32 %v6307_v17, %v6324_v37  ;;  %v1522_v17 = vadd.f32 %v6324_v37, %v6319_v7  ;;  %v1442_v7 = vadd.f32 %v6324_v37, %v6301_v38 }
 0x485   :  { %v1541_v11 = vpop.f32.mrf.mxu0  ;;  %v1517_v38 = vadd.f32 %v6313_v4, %v6324_v37  ;;  %v1437_v4 = vadd.f32 %v6294_v54, %v6324_v37 }
 0x486   :  { %v1542_v40 = vadd.f32 %v6324_v37, %v1541_v11  ;;  %v1755_v11 = vpack.c.bf16 %v1635_v16, %v1634_v34 }
 0x48b   :  { %v5366_v12 = vpop.f32.mrf.mxu0 }
 0x48c   :  { %v1557_v29 = vadd.f32 %v5366_v12, %v6324_v37  ;;  %v1532_v12 = vadd.f32 %v6324_v37, %v1531_v9  ;;  %v1452_v9 = vadd.f32 %v6324_v37, %v6305_v19  ;;  %v1527_v19 = vadd.f32 %v6317_v6, %v6324_v37 }
 0x48d   :  { %v1551_v13 = vpop.f32.mrf.mxu0  ;;  %v1447_v6 = vadd.f32 %v6299_v0, %v6324_v37  ;;  %v1502_v0 = vadd.f32 %v6324_v37, %v6311_v3  ;;  %v1422_v3 = vadd.f32 %v6324_v37, %v6290_v61 }
 0x48e   :  { %v1552_v51 = vadd.f32 %v6324_v37, %v1551_v13  ;;  %v1607_v39 = vmax.f32 %v1557_v29, 0.0  ;;  %v1604_v13 = vmax.f32 %v1542_v40, 0.0  ;;  %v1602_v36 = vmax.f32 %v1532_v12, 0.0 }
 0x48f   :  { %v1586_v20 = vmax.f32 %v1452_v9, 0.0  ;;  %v1601_v40 = vmax.f32 %v1527_v19, 0.0  ;;  %v1580_v61 = vmax.f32 %v1422_v3, 0.0  ;;  %v2097_v19 = vld [vmem:[#allocation8 + $0x158] sm:$0xff] }
 0x490   :  { %v1606_v44 = vmax.f32 %v1552_v51, 0.0  ;;  %v1647_v42 = vadd.f32 %v6335_v14, %v1607_v39  ;;  %v1644_v59 = vadd.f32 %v6335_v14, %v1604_v13  ;;  %v1589_v51 = vmax.f32 %v1467_v10, 0.0  ;;  %v6473_v3 = vld [vmem:[#allocation3 + $0xb0] ss:$8 sps:$4 sm:$0xff]  }
 0x491   :  { %v1627_v39 = vadd.f32 %v6335_v14, %v1587_v32  ;;  %v1427_v13 = vadd.f32 %v6288_v27, %v6324_v37  ;;  %v6427_v32 = vld [vmem:[#allocation3 + $0x44] ss:$8 sps:$4 sm:$0xff]   ;;  %6968 = vst [vmem:[#allocation25_spill] sm:$0xff] %v6473_v3 }
 0x492   :  { %v1646_v25 = vadd.f32 %v6335_v14, %v1606_v44  ;;  %v1629_v34 = vadd.f32 %v6335_v14, %v1589_v51  ;;  %v2098_v51 = vld [vmem:[#allocation8 + $0x160] sm:$0xff] }
 0x493   :  { %v5369_v47 = vpop.f32.mrf.mxu0 }
 0x494   :  { %v1567_v2 = vadd.f32 %v5369_v47, %v6324_v37 }
 0x495   :  { %v1561_v60 = vpop.f32.mrf.mxu0 }
 0x496   :  { %v1562_v46 = vadd.f32 %v6324_v37, %v1561_v60  ;;  %v1609_v58 = vmax.f32 %v1567_v2, 0.0  ;;  %v1591_v60 = vmax.f32 %v1477_v43, 0.0  ;;  %v1630_v2 = vadd.f32 %v6335_v14, %v1590_v57 }
 0x497   :  { %v1598_v43 = vmax.f32 %v1512_v22, 0.0  ;;  %v2091_v22 = vld [vmem:[#allocation8 + $0x128] sm:$0xff] }
 0x498   :  { %v1608_v18 = vmax.f32 %v1562_v46, 0.0  ;;  %v1649_v49 = vadd.f32 %v6335_v14, %v1609_v58  ;;  %v1605_v46 = vmax.f32 %v1547_v28, 0.0  ;;  %v1600_v58 = vmax.f32 %v1522_v17, 0.0  ;;  %v2100_v17 = vld [vmem:[#allocation8 + $0x170] sm:$0xff] }
 0x499   :  { %v1585_v28 = vmax.f32 %v1447_v6, 0.0  ;;  %v1638_v54 = vadd.f32 %v6335_v14, %v1598_v43  ;;  %v6425_v6 = vld [vmem:[#allocation3 + $0x30] ss:$8 sps:$4 sm:$0xff]   ;;  %v6457_v43 = vld [vmem:[#allocation3 + $0x94] ss:$8 sps:$4 sm:$0xff]  }
 0x49a   :  { %v1648_v30 = vadd.f32 %v6335_v14, %v1608_v18  ;;  %v1631_v18 = vadd.f32 %v6335_v14, %v1591_v60  ;;  %v1640_v33 = vadd.f32 %v6335_v14, %v1600_v58  ;;  %v6419_v58 = vld [vmem:[#allocation3 + $0x20] ss:$8 sps:$4 sm:$0xff]   ;;  %6963 = vst [vmem:[#allocation20_spill] sm:$0xff] %v6457_v43 }
 0x49b   :  { %v5372_v52 = vpop.f32.mrf.mxu0  ;;  %v1625_v63 = vadd.f32 %v6335_v14, %v1585_v28  ;;  %v2087_v28 = vld [vmem:[#allocation8 + $0x108] sm:$0xff] }
 0x49c   :  { %v1577_v31 = vadd.f32 %v5372_v52, %v6324_v37  ;;  %v1762_v47 = vpack.c.bf16 %v1649_v49, %v1648_v30  ;;  %v1588_v52 = vmax.f32 %v1462_v56, 0.0  ;;  %v1753_v29 = vpack.c.bf16 %v1631_v18, %v1630_v2  ;;  %v6409_v18 = vld [vmem:[#allocation3 + $0x14] ss:$8 sps:$4 sm:$0xff]  }
 0x49d   :  { %v1571_v45 = vpop.f32.mrf.mxu0  ;;  %v1584_v30 = vmax.f32 %v1442_v7, 0.0  ;;  %v1599_v49 = vmax.f32 %v1517_v38, 0.0  ;;  %v1582_v56 = vmax.f32 %v1432_v5, 0.0  ;;  %v2094_v7 = vld [vmem:[#allocation8 + $0x140] sm:$0xff]  ;;  %v6433_v38 = vld [vmem:[#allocation3 + $0x54] ss:$8 sps:$4 sm:$0xff]  }
 0x49e   :  { %v1611_v1 = vmax.f32 %v1577_v31, 0.0  ;;  %v1572_v41 = vadd.f32 %v6324_v37, %v1571_v45  ;;  %v1754_v31 = vpack.c.bf16 %v1633_v15, %v1632_v62  ;;  %v1761_v45 = vpack.c.bf16 %v1647_v42, %v1646_v25  ;;  %v6443_v5 = vld [vmem:[#allocation3 + $0x60] ss:$8 sps:$4 sm:$0xff]  }
 0x49f   :  { %v1628_v35 = vadd.f32 %v6335_v14, %v1588_v52  ;;  %v1624_v57 = vadd.f32 %v6335_v14, %v1584_v30  ;;  %v1583_v25 = vmax.f32 %v1437_v4, 0.0  ;;  %v1639_v10 = vadd.f32 %v6335_v14, %v1599_v49  ;;  %v6445_v30 = vld [vmem:[#allocation3 + $0x74] ss:$8 sps:$4 sm:$0xff]   ;;  %v6461_v4 = vld [vmem:[#allocation3 + $0x90] ss:$8 sps:$4 sm:$0xff]  }
 0x4a0   :  { %v1610_v48 = vmax.f32 %v1572_v41, 0.0  ;;  %v1651_v55 = vadd.f32 %v6335_v14, %v1611_v1  ;;  %v1603_v1 = vmax.f32 %v1537_v53, 0.0  ;;  %v1645_v41 = vadd.f32 %v6335_v14, %v1605_v46  ;;  %6964 = vst [vmem:[#allocation21_spill] sm:$0xff] %v6461_v4  ;;  %v6467_v49 = vld [vmem:[#allocation3 + $0xa0] ss:$8 sps:$4 sm:$0xff]  }
 0x4a1   :  { %v1622_v60 = vadd.f32 %v6335_v14, %v1582_v56  ;;  %v1750_v15 = vpack.c.bf16 %v1625_v63, %v1624_v57  ;;  %v1757_v46 = vpack.c.bf16 %v1639_v10, %v1638_v54  ;;  %v1581_v42 = vmax.f32 %v1427_v13, 0.0  ;;  %6966 = vst [vmem:[#allocation23_spill] sm:$0xff] %v6467_v49  ;;  %v6475_v56 = vld [vmem:[#allocation3 + $0xc4] ss:$8 sps:$4 sm:$0xff]   ;;  %v6479_v57 = vld [vmem:[#allocation3 + $0xc0] ss:$8 sps:$4 sm:$0xff]  }
 0x4a2   :  { %v1650_v21 = vadd.f32 %v6335_v14, %v1610_v48  ;;  %v1642_v48 = vadd.f32 %v6335_v14, %v1602_v36  ;;  %v1760_v26 = vpack.c.bf16 %v1645_v41, %v1644_v59  ;;  %v1643_v44 = vadd.f32 %v6335_v14, %v1603_v1  ;;  %v2099_v59 = vld [vmem:[#allocation8 + $0x168] sm:$0xff]  ;;  %v6413_v41 = vld [vmem:[#allocation3 + $0x10] ss:$8 sps:$4 sm:$0xff]   ;;  %6969 = vst [vmem:[#allocation26_spill] sm:$0xff] %v6475_v56  ;;  %v6493_v13 = vld [vmem:[#allocation3 + $0xf4] ss:$8 sps:$4 sm:$0xff]  }
 0x4a3   :  { %v1623_v9 = vadd.f32 %v6335_v14, %v1583_v25  ;;  %v1620_v37 = vadd.f32 %v6335_v14, %v1580_v61  ;;  %v1621_v36 = vadd.f32 %v6335_v14, %v1581_v42  ;;  %v2095_v1 = vld [vmem:[#allocation8 + $0x148] sm:$0xff]  ;;  %6970 = vst [vmem:[#allocation27_spill] sm:$0xff] %v6479_v57  ;;  %6975 = vst [vmem:[#allocation32_spill] sm:$0xff] %v6493_v13  ;;  %v6497_v25 = vld [vmem:[#allocation3 + $0xf0] ss:$8 sps:$4 sm:$0xff]  }
 0x4a4   :  { %v1763_v50 = vpack.c.bf16 %v1651_v55, %v1650_v21  ;;  %v1626_v55 = vadd.f32 %v6335_v14, %v1586_v20  ;;  %v1752_v21 = vpack.c.bf16 %v1629_v34, %v1628_v35  ;;  %v1759_v16 = vpack.c.bf16 %v1643_v44, %v1642_v48  ;;  %v6415_v20 = vld [vmem:[#allocation3 + $0x24] ss:$8 sps:$4 sm:$0xff]   ;;  %v2093_v35 = vld [vmem:[#allocation8 + $0x138] sm:$0xff]  ;;  %v6431_v34 = vld [vmem:[#allocation3 + $0x40] ss:$8 sps:$4 sm:$0xff]   ;;  %6976 = vst [vmem:[#allocation33_spill] sm:$0xff] %v6497_v25 }
 0x4a5   :  { %v1749_v52 = vpack.c.bf16 %v1623_v9, %v1622_v60  ;;  %v2090_v48 = vld [vmem:[#allocation8 + $0x120] sm:$0xff] }
 0x4a6   :  { %4677 = vmatprep.subr.bf16.mxu0 %v1763_v50  ;;  %v1641_v50 = vadd.f32 %v6335_v14, %v1601_v40  ;;  %v1751_v62 = vpack.c.bf16 %v1627_v39, %v1626_v55  ;;  %v6437_v40 = vld [vmem:[#allocation3 + $0x50] ss:$8 sps:$4 sm:$0xff]   ;;  %v6439_v44 = vld [vmem:[#allocation3 + $0x64] ss:$8 sps:$4 sm:$0xff]  }
 0x4a7   :  { %4678 = vmatpush3.bf16.msra.mxu0 %v1755_v11  ;;  %v1596_v11 = vmax.f32 %v1502_v0, 0.0  ;;  %v6449_v55 = vld [vmem:[#allocation3 + $0x70] ss:$8 sps:$4 sm:$0xff]   ;;  %v6455_v0 = vld [vmem:[#allocation3 + $0x80] ss:$8 sps:$4 sm:$0xff]  }
 0x4a8   :  { %4679 = vmatprep.subr.bf16.mxu0 %v1762_v47  ;;  %v1758_v12 = vpack.c.bf16 %v1641_v50, %v1640_v33  ;;  %v1597_v47 = vmax.f32 %v1507_v23, 0.0  ;;  %v2089_v33 = vld [vmem:[#allocation8 + $0x118] sm:$0xff]  ;;  %v6463_v39 = vld [vmem:[#allocation3 + $0xa4] ss:$8 sps:$4 sm:$0xff]  }
 0x4a9   :  { %v1636_v53 = vadd.f32 %v6335_v14, %v1596_v11  ;;  %6965 = vst [vmem:[#allocation22_spill] sm:$0xff] %v6463_v39  ;;  %v2086_v23 = vld [vmem:[#allocation8 + $0x100] sm:$0xff]  ;;  %v6469_v50 = vld [vmem:[#allocation3 + $0xb4] ss:$8 sps:$4 sm:$0xff]   ;;  %v6485_v11 = vld [vmem:[#allocation3 + $0xd0] ss:$8 sps:$4 sm:$0xff]  }
 0x4aa   :  { %v1637_v27 = vadd.f32 %v6335_v14, %v1597_v47  ;;  %v2096_v14 = vld [vmem:[#allocation8 + $0x150] sm:$0xff]  ;;  %6967 = vst [vmem:[#allocation24_spill] sm:$0xff] %v6469_v50  ;;  %6972 = vst [vmem:[#allocation29_spill] sm:$0xff] %v6485_v11  ;;  %v6487_v54 = vld [vmem:[#allocation3 + $0xe4] ss:$8 sps:$4 sm:$0xff]  }
 0x4ab   :  { %4680 = vmatpush3.bf16.msra.mxu0 %v1754_v31  ;;  %v2101_v31 = vld [vmem:[#allocation8 + $0x178] sm:$0xff]  ;;  %6973 = vst [vmem:[#allocation30_spill] sm:$0xff] %v6487_v54 }
 0x4ac   :  { %4681 = vmatprep.subr.bf16.mxu0 %v1761_v45  ;;  %v1756_v2 = vpack.c.bf16 %v1637_v27, %v1636_v53  ;;  %5373 = vmatprep.subr.mxu1 %v2101_v31  ;;  %v1748_v45 = vpack.c.bf16 %v1621_v36, %v1620_v37 }
 0x4ad   :  { %5374 = vmatpush3.msra.mxu1 %v2101_v31 }
 0x4ae   :  { %5375 = vmatprep.subr.mxu1 %v2100_v17 }
 0x4af   :  { %4682 = vmatpush3.bf16.msra.mxu0 %v1753_v29  ;;  %5376 = vmatpush3.msra.mxu1 %v2100_v17  ;;  %v2092_v29 = vld [vmem:[#allocation8 + $0x130] sm:$0xff] }
 0x4b0   :  { %4683 = vmatprep.subr.bf16.mxu0 %v1760_v26  ;;  %5377 = vmatprep.subr.mxu1 %v2099_v59  ;;  %v6421_v26 = vld [vmem:[#allocation3 + $0x34] ss:$8 sps:$4 sm:$0xff]  }
 0x4b1   :  { %5378 = vmatpush3.msra.mxu1 %v2099_v59 }
 0x4b2   :  { %5379 = vmatprep.subr.mxu1 %v2098_v51 }
 0x4b3   :  { %4684 = vmatpush3.bf16.msra.mxu0 %v1752_v21  ;;  %5380 = vmatpush3.msra.mxu1 %v2098_v51  ;;  %v6451_v21 = vld [vmem:[#allocation3 + $0x84] ss:$8 sps:$4 sm:$0xff]  }
 0x4b4   :  { %4685 = vmatprep.subr.bf16.mxu0 %v1759_v16  ;;  %5381 = vmatprep.subr.mxu1 %v2097_v19  ;;  %v2088_v16 = vld [vmem:[#allocation8 + $0x110] sm:$0xff] }
 0x4b5   :  { %5382 = vmatpush3.msra.mxu1 %v2097_v19 }
 0x4b6   :  { %5383 = vmatprep.subr.mxu1 %v2096_v14 }
 0x4b7   :  { %4686 = vmatpush3.bf16.msra.mxu0 %v1751_v62  ;;  %5384 = vmatpush3.msra.mxu1 %v2096_v14  ;;  %v6481_v62 = vld [vmem:[#allocation3 + $0xd4] ss:$8 sps:$4 sm:$0xff]  }
 0x4b8   :  { %4687 = vmatprep.subr.bf16.mxu0 %v1758_v12  ;;  %5385 = vmatprep.subr.mxu1 %v2095_v1  ;;  %6971 = vst [vmem:[#allocation28_spill] sm:$0xff] %v6481_v62  ;;  %v6491_v12 = vld [vmem:[#allocation3 + $0xe0] ss:$8 sps:$4 sm:$0xff]  }
 0x4b9   :  { %5386 = vmatpush3.msra.mxu1 %v2095_v1  ;;  %6974 = vst [vmem:[#allocation31_spill] sm:$0xff] %v6491_v12 }
 0x4ba   :  { %5387 = vmatprep.subr.mxu1 %v2094_v7 }
 0x4bb   :  { %4688 = vmatpush3.bf16.msra.mxu0 %v1750_v15  ;;  %5388 = vmatpush3.msra.mxu1 %v2094_v7 }
 0x4bc   :  { %4689 = vmatprep.subr.bf16.mxu0 %v1757_v46  ;;  %5389 = vmatprep.subr.mxu1 %v2093_v35 }
 0x4bd   :  { %5390 = vmatpush3.msra.mxu1 %v2093_v35 }
 0x4be   :  { %5391 = vmatprep.subr.mxu1 %v2092_v29 }
 0x4bf   :  { %4690 = vmatpush3.bf16.msra.mxu0 %v1749_v52  ;;  %5392 = vmatpush3.msra.mxu1 %v2092_v29 }
 0x4c0   :  { %4691 = vmatprep.subr.bf16.mxu0 %v1756_v2  ;;  %5393 = vmatprep.subr.mxu1 %v2091_v22 }
 0x4c1   :  { %5394 = vmatpush3.msra.mxu1 %v2091_v22 }
 0x4c2   :  { %5395 = vmatprep.subr.mxu1 %v2090_v48 }
 0x4c3   :  { %4692 = vmatpush3.bf16.msra.mxu0 %v1748_v45  ;;  %5396 = vmatpush3.msra.mxu1 %v2090_v48 }
 0x4c4   :  { %5397 = vmatprep.subr.mxu1 %v2089_v33 }
 0x4c5   :  { %5398 = vmatpush3.msra.mxu1 %v2089_v33 }
 0x4c6   :  { %1957 = vmatmul.mubr.bf16.vlgmr.msra.gmra.mxu0 %v6407_v8  ;;  %5399 = vmatprep.subr.mxu1 %v2088_v16 }
 0x4c7   :  { %1964 = vmatprep.mubr.bf16.mxu0 %v6409_v18  ;;  %5400 = vmatpush3.msra.mxu1 %v2088_v16 }
 0x4c8   :  { %5401 = vmatprep.subr.mxu1 %v2087_v28 }
 0x4c9   :  { %5402 = vmatpush3.msra.mxu1 %v2087_v28 }
 0x4ca   :  { %5403 = vmatprep.subr.mxu1 %v2086_v23 }
 0x4cb   :  { %5404 = vmatpush3.msra.mxu1 %v2086_v23 }
 0x4ce   :  { %1965 = vmatmul.mubr.bf16.gmra.mxu0 %v6413_v41 }
 0x4cf   :  { %1972 = vmatprep.mubr.bf16.mxu0 %v6415_v20 }
 0x4d6   :  { %1973 = vmatmul.mubr.bf16.gmra.mxu0 %v6419_v58 }
 0x4d7   :  { %1980 = vmatprep.mubr.bf16.mxu0 %v6421_v26 }
 0x4de   :  { %1981 = vmatmul.mubr.bf16.gmra.mxu0 %v6425_v6 }
 0x4df   :  { %1988 = vmatprep.mubr.bf16.mxu0 %v6427_v32 }
 0x4e6   :  { %1989 = vmatmul.mubr.bf16.gmra.mxu0 %v6431_v34 }
 0x4e7   :  { %1996 = vmatprep.mubr.bf16.mxu0 %v6433_v38 }
 0x4ee   :  { %1997 = vmatmul.mubr.bf16.gmra.mxu0 %v6437_v40 }
 0x4ef   :  { %2004 = vmatprep.mubr.bf16.mxu0 %v6439_v44 }
 0x4f6   :  { %2005 = vmatmul.mubr.bf16.gmra.mxu0 %v6443_v5 }
 0x4f7   :  { %2012 = vmatprep.mubr.bf16.mxu0 %v6445_v30 }
 0x4fe   :  { %2013 = vmatmul.mubr.bf16.gmra.mxu0 %v6449_v55 }
 0x4ff   :  { %2020 = vmatprep.mubr.bf16.mxu0 %v6451_v21 }
 0x506   :  { %2021 = vmatmul.mubr.bf16.gmra.mxu0 %v6455_v0 }
 0x507   :  { %2028 = vmatprep.mubr.bf16.mxu0 %v6457_v43 }
 0x50e   :  { %2029 = vmatmul.mubr.bf16.gmra.mxu0 %v6461_v4 }
 0x50f   :  { %2036 = vmatprep.mubr.bf16.mxu0 %v6463_v39  ;;  %v6545_v39 = vld [vmem:[#allocation9 + $0x2] ss:$0 sm:$0xff] }
 0x516   :  { %2037 = vmatmul.mubr.bf16.gmra.mxu0 %v6467_v49 }
 0x517   :  { %2044 = vmatprep.mubr.bf16.mxu0 %v6469_v50 }
 0x51e   :  { %2045 = vmatmul.mubr.bf16.gmra.mxu0 %v6473_v3 }
 0x51f   :  { %2052 = vmatprep.mubr.bf16.mxu0 %v6475_v56 }
 0x526   :  { %2053 = vmatmul.mubr.bf16.gmra.mxu0 %v6479_v57 }
 0x527   :  { %2060 = vmatprep.mubr.bf16.mxu0 %v6481_v62 }
 0x52e   :  { %2061 = vmatmul.mubr.bf16.gmra.mxu0 %v6485_v11 }
 0x52f   :  { %2068 = vmatprep.mubr.bf16.mxu0 %v6487_v54 }
 0x536   :  { %2069 = vmatmul.mubr.bf16.gmra.mxu0 %v6491_v12 }
 0x537   :  { %2076 = vmatprep.mubr.bf16.mxu0 %v6493_v13 }
 0x53e   :  { %2077 = vmatmul.mubr.bf16.gmra.mxu0 %v6497_v25 }
 0x586   :  { %v4693_v63 = vpop.f32.mrf.mxu0 }
 0x588   :  { %v4694_v47 = vpop.f32.mrf.mxu0 }
 0x589   :  { %v4695_v10 = vadd.f32 %v4694_v47, %v4693_v63 }
 0x58a   :  { %v4696_v61 = vpop.f32.mrf.mxu0 }
 0x58b   :  { %5405 = vmatprep.mubr.f32.mxu1 %v4695_v10 }
 0x58c   :  { %v4697_v60 = vpop.f32.mrf.mxu0 }
 0x58d   :  { %v4698_v15 = vadd.f32 %v4697_v60, %v4696_v61 }
 0x58e   :  { %v4699_v53 = vpop.f32.mrf.mxu0 }
 0x58f   :  { %5406 = vmatmul.mubr.f32.vlgmr.msra.gmra.mxu1 %v4698_v15 }
 0x590   :  { %v4700_v46 = vpop.f32.mrf.mxu0 }
 0x591   :  { %v4701_v42 = vadd.f32 %v4700_v46, %v4699_v53 }
 0x592   :  { %v4702_v9 = vpop.f32.mrf.mxu0 }
 0x593   :  { %5408 = vmatprep.mubr.f32.mxu1 %v4701_v42 }
 0x594   :  { %v4703_v27 = vpop.f32.mrf.mxu0 }
 0x595   :  { %v4704_v37 = vadd.f32 %v4703_v27, %v4702_v9 }
 0x596   :  { %v4705_v52 = vpop.f32.mrf.mxu0 }
 0x597   :  { %5409 = vmatmul.mubr.f32.gmra.mxu1 %v4704_v37 }
 0x598   :  { %v4706_v2 = vpop.f32.mrf.mxu0 }
 0x599   :  { %v4707_v31 = vadd.f32 %v4706_v2, %v4705_v52 }
 0x59a   :  { %v4708_v17 = vpop.f32.mrf.mxu0 }
 0x59b   :  { %5411 = vmatprep.mubr.f32.mxu1 %v4707_v31 }
 0x59c   :  { %v4709_v36 = vpop.f32.mrf.mxu0 }
 0x59d   :  { %v4710_v59 = vadd.f32 %v4709_v36, %v4708_v17 }
 0x59e   :  { %v4711_v45 = vpop.f32.mrf.mxu0 }
 0x59f   :  { %5412 = vmatmul.mubr.f32.gmra.mxu1 %v4710_v59 }
 0x5a0   :  { %v4712_v51 = vpop.f32.mrf.mxu0 }
 0x5a1   :  { %v4713_v19 = vadd.f32 %v4712_v51, %v4711_v45 }
 0x5a2   :  { %v4714_v14 = vpop.f32.mrf.mxu0 }
 0x5a3   :  { %5414 = vmatprep.mubr.f32.mxu1 %v4713_v19 }
 0x5a4   :  { %v4715_v1 = vpop.f32.mrf.mxu0 }
 0x5a5   :  { %v4716_v7 = vadd.f32 %v4715_v1, %v4714_v14 }
 0x5a6   :  { %v4717_v35 = vpop.f32.mrf.mxu0 }
 0x5a7   :  { %5415 = vmatmul.mubr.f32.gmra.mxu1 %v4716_v7 }
 0x5a8   :  { %v4718_v29 = vpop.f32.mrf.mxu0 }
 0x5a9   :  { %v4719_v22 = vadd.f32 %v4718_v29, %v4717_v35 }
 0x5aa   :  { %v4720_v48 = vpop.f32.mrf.mxu0 }
 0x5ab   :  { %5417 = vmatprep.mubr.f32.mxu1 %v4719_v22 }
 0x5ac   :  { %v4721_v33 = vpop.f32.mrf.mxu0 }
 0x5ad   :  { %v4722_v16 = vadd.f32 %v4721_v33, %v4720_v48 }
 0x5ae   :  { %v4723_v28 = vpop.f32.mrf.mxu0 }
 0x5af   :  { %5418 = vmatmul.mubr.f32.gmra.mxu1 %v4722_v16 }
 0x5b0   :  { %v4724_v23 = vpop.f32.mrf.mxu0 }
 0x5b1   :  { %v4725_v63 = vadd.f32 %v4724_v23, %v4723_v28 }
 0x5b2   :  { %v4726_v47 = vpop.f32.mrf.mxu0 }
 0x5b3   :  { %5420 = vmatprep.mubr.f32.mxu1 %v4725_v63 }
 0x5b4   :  { %v4727_v10 = vpop.f32.mrf.mxu0 }
 0x5b5   :  { %v4728_v61 = vadd.f32 %v4727_v10, %v4726_v47 }
 0x5b6   :  { %v4729_v60 = vpop.f32.mrf.mxu0 }
 0x5b7   :  { %5421 = vmatmul.mubr.f32.gmra.mxu1 %v4728_v61 }
 0x5b8   :  { %v4730_v15 = vpop.f32.mrf.mxu0 }
 0x5b9   :  { %v4731_v53 = vadd.f32 %v4730_v15, %v4729_v60 }
 0x5ba   :  { %v4732_v46 = vpop.f32.mrf.mxu0 }
 0x5bb   :  { %5423 = vmatprep.mubr.f32.mxu1 %v4731_v53 }
 0x5bc   :  { %v4733_v42 = vpop.f32.mrf.mxu0 }
 0x5bd   :  { %v4734_v9 = vadd.f32 %v4733_v42, %v4732_v46 }
 0x5be   :  { %v4735_v27 = vpop.f32.mrf.mxu0 }
 0x5bf   :  { %5424 = vmatmul.mubr.f32.gmra.mxu1 %v4734_v9 }
 0x5c0   :  { %v4736_v37 = vpop.f32.mrf.mxu0 }
 0x5c1   :  { %v4737_v52 = vadd.f32 %v4736_v37, %v4735_v27 }
 0x5c2   :  { %v4738_v2 = vpop.f32.mrf.mxu0 }
 0x5c3   :  { %5426 = vmatprep.mubr.f32.mxu1 %v4737_v52 }
 0x5c4   :  { %v4739_v31 = vpop.f32.mrf.mxu0 }
 0x5c5   :  { %v4740_v17 = vadd.f32 %v4739_v31, %v4738_v2 }
 0x5c6   :  { %v4741_v36 = vpop.f32.mrf.mxu0 }
 0x5c7   :  { %5427 = vmatmul.mubr.f32.gmra.mxu1 %v4740_v17 }
 0x5c8   :  { %v4742_v59 = vpop.f32.mrf.mxu0 }
 0x5c9   :  { %v4743_v45 = vadd.f32 %v4742_v59, %v4741_v36 }
 0x5ca   :  { %v4744_v51 = vpop.f32.mrf.mxu0 }
 0x5cb   :  { %5429 = vmatprep.mubr.f32.mxu1 %v4743_v45 }
 0x5cc   :  { %v4745_v19 = vpop.f32.mrf.mxu0 }
 0x5cd   :  { %v4746_v14 = vadd.f32 %v4745_v19, %v4744_v51 }
 0x5ce   :  { %v4747_v1 = vpop.f32.mrf.mxu0 }
 0x5cf   :  { %5430 = vmatmul.mubr.f32.gmra.mxu1 %v4746_v14 }
 0x5d0   :  { %v4748_v7 = vpop.f32.mrf.mxu0 }
 0x5d1   :  { %v4749_v35 = vadd.f32 %v4748_v7, %v4747_v1 }
 0x5d2   :  { %v4750_v29 = vpop.f32.mrf.mxu0 }
 0x5d3   :  { %5432 = vmatprep.mubr.f32.mxu1 %v4749_v35 }
 0x5d4   :  { %v4751_v22 = vpop.f32.mrf.mxu0 }
 0x5d5   :  { %v4752_v48 = vadd.f32 %v4751_v22, %v4750_v29 }
 0x5d6   :  { %v4753_v33 = vpop.f32.mrf.mxu0 }
 0x5d7   :  { %5433 = vmatmul.mubr.f32.gmra.mxu1 %v4752_v48 }
 0x5d8   :  { %v4754_v16 = vpop.f32.mrf.mxu0 }
 0x5d9   :  { %v4755_v28 = vadd.f32 %v4754_v16, %v4753_v33 }
 0x5da   :  { %v4756_v23 = vpop.f32.mrf.mxu0 }
 0x5db   :  { %5435 = vmatprep.mubr.f32.mxu1 %v4755_v28 }
 0x5dc   :  { %v4757_v63 = vpop.f32.mrf.mxu0 }
 0x5dd   :  { %v4758_v47 = vadd.f32 %v4757_v63, %v4756_v23 }
 0x5de   :  { %v4759_v10 = vpop.f32.mrf.mxu0 }
 0x5df   :  { %5436 = vmatmul.mubr.f32.gmra.mxu1 %v4758_v47 }
 0x5e0   :  { %v4760_v61 = vpop.f32.mrf.mxu0 }
 0x5e1   :  { %v4761_v60 = vadd.f32 %v4760_v61, %v4759_v10 }
 0x5e2   :  { %v4762_v15 = vpop.f32.mrf.mxu0 }
 0x5e3   :  { %5438 = vmatprep.mubr.f32.mxu1 %v4761_v60 }
 0x5e4   :  { %v4763_v53 = vpop.f32.mrf.mxu0 }
 0x5e5   :  { %v4764_v46 = vadd.f32 %v4763_v53, %v4762_v15 }
 0x5e6   :  { %v4765_v42 = vpop.f32.mrf.mxu0 }
 0x5e7   :  { %5439 = vmatmul.mubr.f32.gmra.mxu1 %v4764_v46 }
 0x5e8   :  { %v4766_v9 = vpop.f32.mrf.mxu0 }
 0x5e9   :  { %v4767_v27 = vadd.f32 %v4766_v9, %v4765_v42 }
 0x5ea   :  { %v4768_v37 = vpop.f32.mrf.mxu0 }
 0x5eb   :  { %5441 = vmatprep.mubr.f32.mxu1 %v4767_v27 }
 0x5ec   :  { %v4769_v52 = vpop.f32.mrf.mxu0 }
 0x5ed   :  { %v4770_v2 = vadd.f32 %v4769_v52, %v4768_v37 }
 0x5ee   :  { %v4771_v31 = vpop.f32.mrf.mxu0 }
 0x5ef   :  { %5442 = vmatmul.mubr.f32.gmra.mxu1 %v4770_v2 }
 0x5f0   :  { %v4772_v17 = vpop.f32.mrf.mxu0 }
 0x5f1   :  { %v4773_v36 = vadd.f32 %v4772_v17, %v4771_v31 }
 0x5f2   :  { %v4774_v59 = vpop.f32.mrf.mxu0 }
 0x5f3   :  { %5444 = vmatprep.mubr.f32.mxu1 %v4773_v36 }
 0x5f4   :  { %v4775_v45 = vpop.f32.mrf.mxu0 }
 0x5f5   :  { %v4776_v51 = vadd.f32 %v4775_v45, %v4774_v59 }
 0x5f6   :  { %v4777_v19 = vpop.f32.mrf.mxu0 }
 0x5f7   :  { %5445 = vmatmul.mubr.f32.gmra.mxu1 %v4776_v51 }
 0x5f8   :  { %v4778_v14 = vpop.f32.mrf.mxu0 }
 0x5f9   :  { %v4779_v1 = vadd.f32 %v4778_v14, %v4777_v19 }
 0x5fa   :  { %v4780_v7 = vpop.f32.mrf.mxu0 }
 0x5fb   :  { %5447 = vmatprep.mubr.f32.mxu1 %v4779_v1 }
 0x5fc   :  { %v4781_v35 = vpop.f32.mrf.mxu0 }
 0x5fd   :  { %v4782_v29 = vadd.f32 %v4781_v35, %v4780_v7 }
 0x5fe   :  { %v4783_v22 = vpop.f32.mrf.mxu0 }
 0x5ff   :  { %5448 = vmatmul.mubr.f32.gmra.mxu1 %v4782_v29 }
 0x600   :  { %v4784_v48 = vpop.f32.mrf.mxu0 }
 0x601   :  { %v4785_v33 = vadd.f32 %v4784_v48, %v4783_v22 }
 0x602   :  { %v4786_v16 = vpop.f32.mrf.mxu0 }
 0x603   :  { %5450 = vmatprep.mubr.f32.mxu1 %v4785_v33 }
 0x604   :  { %v4787_v28 = vpop.f32.mrf.mxu0 }
 0x605   :  { %v4788_v23 = vadd.f32 %v4787_v28, %v4786_v16  ;;  %v6534_v16 = vld [vmem:[%s6901_s3 + $0x2] ss:$0 sm:$0xff] }
 0x607   :  { %5451 = vmatmul.mubr.f32.gmra.mxu1 %v4788_v23 }
 0x608   :  { %2711 = vmatprep.mubr.bf16.mxu1 %v6292_v24 }
 0x64f   :  { %v6501_v63 = vpop.f32.mrf.mxu1 }
 0x651   :  { %v6503_v47 = vpop.f32.mrf.mxu1 }
 0x657   :  { %v6505_v10 = vpop.f32.mrf.mxu1 }
 0x659   :  { %v6507_v61 = vpop.f32.mrf.mxu1 }
 0x65f   :  { %v6509_v60 = vpop.f32.mrf.mxu1 }
 0x661   :  { %v6511_v15 = vpop.f32.mrf.mxu1 }
 0x667   :  { %v6513_v53 = vpop.f32.mrf.mxu1 }
 0x669   :  { %v6515_v46 = vpop.f32.mrf.mxu1 }
 0x66f   :  { %v6517_v42 = vpop.f32.mrf.mxu1 }
 0x671   :  { %v2216_v9 = vpop.f32.mrf.mxu1 }
 0x677   :  { %v5422_v24 = vpop.f32.mrf.mxu1 }
 0x679   :  { %v2226_v27 = vpop.f32.mrf.mxu1 }
 0x67f   :  { %v5425_v37 = vpop.f32.mrf.mxu1 }
 0x681   :  { %v2236_v52 = vpop.f32.mrf.mxu1 }
 0x682   :  { %v2237_v11 = vadd.f32 %v6534_v16, %v2236_v52 }
 0x684   :  { %v2347_v52 = vmax.f32 %v2237_v11, 0.0 }
 0x687   :  { %v5428_v2 = vpop.f32.mrf.mxu1 }
 0x688   :  { %v2252_v25 = vadd.f32 %v5428_v2, %v6534_v16 }
 0x689   :  { %v2246_v31 = vpop.f32.mrf.mxu1 }
 0x68a   :  { %v2247_v28 = vadd.f32 %v6534_v16, %v2246_v31  ;;  %v2242_v31 = vadd.f32 %v5425_v37, %v6534_v16  ;;  %v2232_v37 = vadd.f32 %v5422_v24, %v6534_v16 }
 0x68c   :  { %v2349_v62 = vmax.f32 %v2247_v28, 0.0  ;;  %v2348_v43 = vmax.f32 %v2242_v31, 0.0 }
 0x68e   :  { %v2389_v28 = vadd.f32 %v6545_v39, %v2349_v62 }
 0x68f   :  { %v6519_v17 = vpop.f32.mrf.mxu1 }
 0x691   :  { %v6521_v36 = vpop.f32.mrf.mxu1 }
 0x697   :  { %v6523_v59 = vpop.f32.mrf.mxu1 }
 0x699   :  { %v6525_v45 = vpop.f32.mrf.mxu1 }
 0x69f   :  { %v6527_v51 = vpop.f32.mrf.mxu1 }
 0x6a1   :  { %v6529_v19 = vpop.f32.mrf.mxu1 }
 0x6a7   :  { %v5440_v14 = vpop.f32.mrf.mxu1 }
 0x6a9   :  { %v2286_v1 = vpop.f32.mrf.mxu1 }
 0x6af   :  { %v5443_v7 = vpop.f32.mrf.mxu1 }
 0x6b1   :  { %v2296_v35 = vpop.f32.mrf.mxu1 }
 0x6b7   :  { %v5446_v29 = vpop.f32.mrf.mxu1 }
 0x6b8   :  { %v2312_v2 = vadd.f32 %v5446_v29, %v6534_v16 }
 0x6b9   :  { %v2306_v22 = vpop.f32.mrf.mxu1 }
 0x6ba   :  { %v2307_v56 = vadd.f32 %v6534_v16, %v2306_v22  ;;  %v2297_v22 = vadd.f32 %v6534_v16, %v2296_v35  ;;  %v2217_v35 = vadd.f32 %v6534_v16, %v2216_v9  ;;  %v2292_v9 = vadd.f32 %v5440_v14, %v6534_v16 }
 0x6bb   :  { %v2212_v14 = vadd.f32 %v6513_v53, %v6534_v16  ;;  %v2267_v53 = vadd.f32 %v6534_v16, %v6525_v45  ;;  %v2187_v45 = vadd.f32 %v6534_v16, %v6507_v61  ;;  %v2262_v61 = vadd.f32 %v6519_v17, %v6534_v16 }
 0x6bf   :  { %v5449_v48 = vpop.f32.mrf.mxu1 }
 0x6c0   :  { %v2322_v12 = vadd.f32 %v5449_v48, %v6534_v16 }
 0x6c1   :  { %v2316_v33 = vpop.f32.mrf.mxu1 }
 0x6c2   :  { %v2317_v23 = vadd.f32 %v6534_v16, %v2316_v33  ;;  %v2350_v33 = vmax.f32 %v2252_v25, 0.0  ;;  %v2364_v48 = vmax.f32 %v2322_v12, 0.0 }
 0x6c4   :  { %v2363_v3 = vmax.f32 %v2317_v23, 0.0  ;;  %v2361_v23 = vmax.f32 %v2307_v56, 0.0  ;;  %v2390_v12 = vadd.f32 %v6545_v39, %v2350_v33  ;;  %v2404_v11 = vadd.f32 %v6545_v39, %v2364_v48 }
 0x6c5   :  { %v2346_v33 = vmax.f32 %v2232_v37, 0.0  ;;  %v2358_v37 = vmax.f32 %v2292_v9, 0.0 }
 0x6c6   :  { %v2510_v29 = vpack.c.bf16 %v2390_v12, %v2389_v28  ;;  %v2401_v24 = vadd.f32 %v6545_v39, %v2361_v23 }
 0x6c7   :  { %v5452_v13 = vpop.f32.mrf.mxu1 }
 0x6c8   :  { %v2332_v54 = vadd.f32 %v5452_v13, %v6534_v16  ;;  %v2227_v13 = vadd.f32 %v6534_v16, %v2226_v27  ;;  %v2362_v27 = vmax.f32 %v2312_v2, 0.0  ;;  %v2388_v2 = vadd.f32 %v6545_v39, %v2348_v43 }
 0x6c9   :  { %v2326_v57 = vpop.f32.mrf.mxu1 }
 0x6ca   :  { %v2366_v50 = vmax.f32 %v2332_v54, 0.0  ;;  %v2327_v49 = vadd.f32 %v6534_v16, %v2326_v57  ;;  %v2403_v54 = vadd.f32 %v6545_v39, %v2363_v3  ;;  %v2345_v56 = vmax.f32 %v2227_v13, 0.0 }
 0x6cb   :  { %v2387_v3 = vadd.f32 %v6545_v39, %v2347_v52  ;;  %v2402_v13 = vadd.f32 %v6545_v39, %v2362_v27  ;;  %v2343_v52 = vmax.f32 %v2217_v35, 0.0 }
 0x6cc   :  { %v2365_v4 = vmax.f32 %v2327_v49, 0.0  ;;  %v2406_v57 = vadd.f32 %v6545_v39, %v2366_v50  ;;  %v2302_v49 = vadd.f32 %v5443_v7, %v6534_v16  ;;  %v2287_v50 = vadd.f32 %v6534_v16, %v2286_v1 }
 0x6cd   :  { %v2517_v31 = vpack.c.bf16 %v2404_v11, %v2403_v54  ;;  %v2222_v7 = vadd.f32 %v6517_v42, %v6534_v16  ;;  %v2207_v1 = vadd.f32 %v6534_v16, %v6515_v46  ;;  %v2385_v28 = vadd.f32 %v6545_v39, %v2345_v56 }
 0x6ce   :  { %v2405_v25 = vadd.f32 %v6545_v39, %v2365_v4  ;;  %v2359_v4 = vmax.f32 %v2297_v22, 0.0  ;;  %v2360_v48 = vmax.f32 %v2302_v49, 0.0  ;;  %v2509_v22 = vpack.c.bf16 %v2388_v2, %v2387_v3 }
 0x6cf   :  { %v2277_v42 = vadd.f32 %v6534_v16, %v6529_v19  ;;  %v2357_v23 = vmax.f32 %v2287_v50, 0.0  ;;  %v2516_v54 = vpack.c.bf16 %v2402_v13, %v2401_v24  ;;  %v2282_v46 = vadd.f32 %v6527_v51, %v6534_v16 }
 0x6d0   :  { %v2518_v62 = vpack.c.bf16 %v2406_v57, %v2405_v25  ;;  %v2399_v43 = vadd.f32 %v6545_v39, %v2359_v4  ;;  %v2344_v57 = vmax.f32 %v2222_v7, 0.0  ;;  %v2386_v25 = vadd.f32 %v6545_v39, %v2346_v33 }
 0x6d1   :  { %v2400_v12 = vadd.f32 %v6545_v39, %v2360_v48  ;;  %v2197_v19 = vadd.f32 %v6534_v16, %v6511_v15  ;;  %v2341_v49 = vmax.f32 %v2207_v1, 0.0  ;;  %v2383_v27 = vadd.f32 %v6545_v39, %v2343_v52 }
 0x6d2   :  { %4837 = vmatprep.subr.bf16.mxu1 %v2518_v62  ;;  %v2508_v11 = vpack.c.bf16 %v2386_v25, %v2385_v28  ;;  %v2355_v62 = vmax.f32 %v2277_v42, 0.0  ;;  %v2397_v35 = vadd.f32 %v6545_v39, %v2357_v23  ;;  %v2202_v51 = vadd.f32 %v6509_v60, %v6534_v16 }
 0x6d3   :  { %4838 = vmatpush3.bf16.msra.mxu1 %v2510_v29  ;;  %v2515_v56 = vpack.c.bf16 %v2400_v12, %v2399_v43  ;;  %v2342_v3 = vmax.f32 %v2212_v14, 0.0  ;;  %v2384_v29 = vadd.f32 %v6545_v39, %v2344_v57  ;;  %v2272_v15 = vadd.f32 %v6523_v59, %v6534_v16 }
 0x6d4   :  { %4839 = vmatprep.subr.bf16.mxu1 %v2517_v31  ;;  %v2356_v50 = vmax.f32 %v2282_v46, 0.0  ;;  %v2398_v4 = vadd.f32 %v6545_v39, %v2358_v37  ;;  %v2339_v24 = vmax.f32 %v2197_v19, 0.0  ;;  %v2381_v31 = vadd.f32 %v6545_v39, %v2341_v49 }
 0x6d5   :  { %v2507_v7 = vpack.c.bf16 %v2384_v29, %v2383_v27  ;;  %v2257_v60 = vadd.f32 %v6534_v16, %v6521_v36  ;;  %v2353_v33 = vmax.f32 %v2267_v53, 0.0  ;;  %v2395_v2 = vadd.f32 %v6545_v39, %v2355_v62  ;;  %v2856_v62 = vld [vmem:[#allocation8 + $0x1f8] sm:$0xff]  ;;  %v2853_v29 = vld [vmem:[#allocation8 + $0x1e0] sm:$0xff] }
 0x6d6   :  { %v2514_v9 = vpack.c.bf16 %v2398_v4, %v2397_v35  ;;  %v2192_v59 = vadd.f32 %v6505_v10, %v6534_v16  ;;  %v2340_v48 = vmax.f32 %v2202_v51, 0.0  ;;  %v2382_v13 = vadd.f32 %v6545_v39, %v2342_v3  ;;  %v2855_v35 = vld [vmem:[#allocation8 + $0x1f0] sm:$0xff]  ;;  %5453 = vmatprep.subr.mxu0 %v2856_v62  ;;  %v2854_v51 = vld [vmem:[#allocation8 + $0x1e8] sm:$0xff]  ;;  %v2849_v4 = vld [vmem:[#allocation8 + $0x1c0] sm:$0xff] }
 0x6d7   :  { %4840 = vmatpush3.bf16.msra.mxu1 %v2509_v22  ;;  %v2354_v1 = vmax.f32 %v2272_v15, 0.0  ;;  %v2396_v52 = vadd.f32 %v6545_v39, %v2356_v50  ;;  %v2177_v36 = vadd.f32 %v6534_v16, %v6503_v47  ;;  %v2337_v28 = vmax.f32 %v2187_v45, 0.0  ;;  %5454 = vmatpush3.msra.mxu0 %v2856_v62  ;;  %v2852_v15 = vld [vmem:[#allocation8 + $0x1d8] sm:$0xff]  ;;  %v2851_v50 = vld [vmem:[#allocation8 + $0x1d0] sm:$0xff] }
 0x6d8   :  { %4841 = vmatprep.subr.bf16.mxu1 %v2516_v54  ;;  %v2379_v22 = vadd.f32 %v6545_v39, %v2339_v24  ;;  %v2506_v42 = vpack.c.bf16 %v2382_v13, %v2381_v31  ;;  %v2351_v23 = vmax.f32 %v2257_v60, 0.0  ;;  %v2393_v10 = vadd.f32 %v6545_v39, %v2353_v33  ;;  %5455 = vmatprep.subr.mxu0 %v2855_v35  ;;  %v2848_v45 = vld [vmem:[#allocation8 + $0x1b8] sm:$0xff]  ;;  %v2847_v24 = vld [vmem:[#allocation8 + $0x1b0] sm:$0xff] }
 0x6d9   :  { %v2513_v43 = vpack.c.bf16 %v2396_v52, %v2395_v2  ;;  %v2182_v54 = vadd.f32 %v6501_v63, %v6534_v16  ;;  %v2338_v14 = vmax.f32 %v2192_v59, 0.0  ;;  %v2380_v17 = vadd.f32 %v6545_v39, %v2340_v48  ;;  %5456 = vmatpush3.msra.mxu0 %v2855_v35  ;;  %v6988_v31 = vld [vmem:[#allocation31_spill] sm:$0xff]  ;;  %v6990_v60 = vld [vmem:[#allocation33_spill] sm:$0xff] }
 0x6da   :  { %v2352_v57 = vmax.f32 %v2262_v61, 0.0  ;;  %v2394_v25 = vadd.f32 %v6545_v39, %v2354_v1  ;;  %v2335_v47 = vmax.f32 %v2177_v36, 0.0  ;;  %v2377_v46 = vadd.f32 %v6545_v39, %v2337_v28  ;;  %5457 = vmatprep.subr.mxu0 %v2854_v51 }
 0x6db   :  { %4842 = vmatpush3.bf16.msra.mxu1 %v2508_v11  ;;  %v2505_v37 = vpack.c.bf16 %v2380_v17, %v2379_v22  ;;  %v2391_v12 = vadd.f32 %v6545_v39, %v2351_v23  ;;  %v2336_v49 = vmax.f32 %v2182_v54, 0.0  ;;  %v2378_v27 = vadd.f32 %v6545_v39, %v2338_v14  ;;  %5458 = vmatpush3.msra.mxu0 %v2854_v51 }
 0x6dc   :  { %4843 = vmatprep.subr.bf16.mxu1 %v2515_v56  ;;  %v2512_v19 = vpack.c.bf16 %v2394_v25, %v2393_v10  ;;  %v2392_v63 = vadd.f32 %v6545_v39, %v2352_v57  ;;  %v2375_v16 = vadd.f32 %v6545_v39, %v2335_v47  ;;  %5459 = vmatprep.subr.mxu0 %v2853_v29 }
 0x6dd   :  { %v2504_v11 = vpack.c.bf16 %v2378_v27, %v2377_v46  ;;  %v2376_v56 = vadd.f32 %v6545_v39, %v2336_v49  ;;  %5460 = vmatpush3.msra.mxu0 %v2853_v29  ;;  %v2850_v39 = vld [vmem:[#allocation8 + $0x1c8] sm:$0xff] }
 0x6de   :  { %v2511_v53 = vpack.c.bf16 %v2392_v63, %v2391_v12  ;;  %5461 = vmatprep.subr.mxu0 %v2852_v15 }
 0x6df   :  { %4844 = vmatpush3.bf16.msra.mxu1 %v2507_v7  ;;  %v2503_v3 = vpack.c.bf16 %v2376_v56, %v2375_v16  ;;  %5462 = vmatpush3.msra.mxu0 %v2852_v15  ;;  %v6989_v7 = vld [vmem:[#allocation32_spill] sm:$0xff] }
 0x6e0   :  { %4845 = vmatprep.subr.bf16.mxu1 %v2514_v9  ;;  %5463 = vmatprep.subr.mxu0 %v2851_v50 }
 0x6e1   :  { %5464 = vmatpush3.msra.mxu0 %v2851_v50 }
 0x6e2   :  { %5465 = vmatprep.subr.mxu0 %v2850_v39 }
 0x6e3   :  { %4846 = vmatpush3.bf16.msra.mxu1 %v2506_v42  ;;  %5466 = vmatpush3.msra.mxu0 %v2850_v39 }
 0x6e4   :  { %4847 = vmatprep.subr.bf16.mxu1 %v2513_v43  ;;  %5467 = vmatprep.subr.mxu0 %v2849_v4 }
 0x6e5   :  { %5468 = vmatpush3.msra.mxu0 %v2849_v4 }
 0x6e6   :  { %5469 = vmatprep.subr.mxu0 %v2848_v45 }
 0x6e7   :  { %4848 = vmatpush3.bf16.msra.mxu1 %v2505_v37  ;;  %5470 = vmatpush3.msra.mxu0 %v2848_v45 }
 0x6e8   :  { %4849 = vmatprep.subr.bf16.mxu1 %v2512_v19  ;;  %5471 = vmatprep.subr.mxu0 %v2847_v24 }
 0x6e9   :  { %5472 = vmatpush3.msra.mxu0 %v2847_v24 }
 0x6eb   :  { %4850 = vmatpush3.bf16.msra.mxu1 %v2504_v11 }
 0x6ec   :  { %4851 = vmatprep.subr.bf16.mxu1 %v2511_v53 }
 0x6ef   :  { %4852 = vmatpush3.bf16.msra.mxu1 %v2503_v3 }
 0x6f2   :  { %2712 = vmatmul.mubr.bf16.vlgmr.msra.gmra.mxu1 %v6407_v8  ;;  %v2846_v8 = vld [vmem:[#allocation8 + $0x1a8] sm:$0xff] }
 0x6f3   :  { %2719 = vmatprep.mubr.bf16.mxu1 %v6409_v18  ;;  %v2845_v18 = vld [vmem:[#allocation8 + $0x1a0] sm:$0xff]  ;;  %5473 = vmatprep.subr.mxu0 %v2846_v8 }
 0x6f4   :  { %5474 = vmatpush3.msra.mxu0 %v2846_v8 }
 0x6f5   :  { %5475 = vmatprep.subr.mxu0 %v2845_v18 }
 0x6f6   :  { %5476 = vmatpush3.msra.mxu0 %v2845_v18 }
 0x6fa   :  { %2720 = vmatmul.mubr.bf16.gmra.mxu1 %v6413_v41  ;;  %v2844_v41 = vld [vmem:[#allocation8 + $0x198] sm:$0xff] }
 0x6fb   :  { %2727 = vmatprep.mubr.bf16.mxu1 %v6415_v20  ;;  %v6977_v20 = vld [vmem:[#allocation20_spill] sm:$0xff]  ;;  %5477 = vmatprep.subr.mxu0 %v2844_v41 }
 0x6fc   :  { %5478 = vmatpush3.msra.mxu0 %v2844_v41 }
 0x702   :  { %2728 = vmatmul.mubr.bf16.gmra.mxu1 %v6419_v58  ;;  %v2843_v58 = vld [vmem:[#allocation8 + $0x190] sm:$0xff] }
 0x703   :  { %2735 = vmatprep.mubr.bf16.mxu1 %v6421_v26  ;;  %5479 = vmatprep.subr.mxu0 %v2843_v58  ;;  %v2842_v26 = vld [vmem:[#allocation8 + $0x188] sm:$0xff] }
 0x704   :  { %5480 = vmatpush3.msra.mxu0 %v2843_v58 }
 0x705   :  { %5481 = vmatprep.subr.mxu0 %v2842_v26 }
 0x706   :  { %5482 = vmatpush3.msra.mxu0 %v2842_v26 }
 0x70a   :  { %2736 = vmatmul.mubr.bf16.gmra.mxu1 %v6425_v6  ;;  %v2841_v6 = vld [vmem:[#allocation8 + $0x180] sm:$0xff] }
 0x70b   :  { %2743 = vmatprep.mubr.bf16.mxu1 %v6427_v32  ;;  %5483 = vmatprep.subr.mxu0 %v2841_v6  ;;  %v6978_v32 = vld [vmem:[#allocation21_spill] sm:$0xff] }
 0x70c   :  { %5484 = vmatpush3.msra.mxu0 %v2841_v6 }
 0x712   :  { %2744 = vmatmul.mubr.bf16.gmra.mxu1 %v6431_v34  ;;  %v6979_v34 = vld [vmem:[#allocation22_spill] sm:$0xff] }
 0x713   :  { %2751 = vmatprep.mubr.bf16.mxu1 %v6433_v38  ;;  %v6980_v38 = vld [vmem:[#allocation23_spill] sm:$0xff] }
 0x71a   :  { %2752 = vmatmul.mubr.bf16.gmra.mxu1 %v6437_v40  ;;  %v6981_v40 = vld [vmem:[#allocation24_spill] sm:$0xff] }
 0x71b   :  { %2759 = vmatprep.mubr.bf16.mxu1 %v6439_v44  ;;  %v6982_v44 = vld [vmem:[#allocation25_spill] sm:$0xff] }
 0x722   :  { %2760 = vmatmul.mubr.bf16.gmra.mxu1 %v6443_v5  ;;  %v6983_v5 = vld [vmem:[#allocation26_spill] sm:$0xff] }
 0x723   :  { %2767 = vmatprep.mubr.bf16.mxu1 %v6445_v30  ;;  %v6984_v30 = vld [vmem:[#allocation27_spill] sm:$0xff] }
 0x72a   :  { %2768 = vmatmul.mubr.bf16.gmra.mxu1 %v6449_v55  ;;  %v6985_v55 = vld [vmem:[#allocation28_spill] sm:$0xff] }
 0x72b   :  { %2775 = vmatprep.mubr.bf16.mxu1 %v6451_v21  ;;  %v6986_v21 = vld [vmem:[#allocation29_spill] sm:$0xff] }
 0x732   :  { %2776 = vmatmul.mubr.bf16.gmra.mxu1 %v6455_v0  ;;  %v6987_v0 = vld [vmem:[#allocation30_spill] sm:$0xff] }
 0x733   :  { %2783 = vmatprep.mubr.bf16.mxu1 %v6977_v20 }
 0x73a   :  { %2784 = vmatmul.mubr.bf16.gmra.mxu1 %v6978_v32 }
 0x73b   :  { %2791 = vmatprep.mubr.bf16.mxu1 %v6979_v34 }
 0x742   :  { %2792 = vmatmul.mubr.bf16.gmra.mxu1 %v6980_v38 }
 0x743   :  { %2799 = vmatprep.mubr.bf16.mxu1 %v6981_v40 }
 0x74a   :  { %2800 = vmatmul.mubr.bf16.gmra.mxu1 %v6982_v44 }
 0x74b   :  { %2807 = vmatprep.mubr.bf16.mxu1 %v6983_v5 }
 0x752   :  { %2808 = vmatmul.mubr.bf16.gmra.mxu1 %v6984_v30 }
 0x753   :  { %2815 = vmatprep.mubr.bf16.mxu1 %v6985_v55 }
 0x75a   :  { %2816 = vmatmul.mubr.bf16.gmra.mxu1 %v6986_v21 }
 0x75b   :  { %2823 = vmatprep.mubr.bf16.mxu1 %v6987_v0 }
 0x762   :  { %2824 = vmatmul.mubr.bf16.gmra.mxu1 %v6988_v31 }
 0x763   :  { %2831 = vmatprep.mubr.bf16.mxu1 %v6989_v7 }
 0x76a   :  { %2832 = vmatmul.mubr.bf16.gmra.mxu1 %v6990_v60 }
 0x7b2   :  { %v4853_v33 = vpop.f32.mrf.mxu1 }
 0x7b4   :  { %v4854_v2 = vpop.f32.mrf.mxu1 }
 0x7b5   :  { %v4855_v9 = vadd.f32 %v4854_v2, %v4853_v33 }
 0x7b6   :  { %v4856_v59 = vpop.f32.mrf.mxu1 }
 0x7b7   :  { %5485 = vmatprep.mubr.f32.mxu0 %v4855_v9 }
 0x7b8   :  { %v4857_v48 = vpop.f32.mrf.mxu1 }
 0x7b9   :  { %v4858_v13 = vadd.f32 %v4857_v48, %v4856_v59 }
 0x7ba   :  { %v4859_v61 = vpop.f32.mrf.mxu1 }
 0x7bb   :  { %5486 = vmatmul.mubr.f32.vlgmr.msra.gmra.mxu0 %v4858_v13 }
 0x7bc   :  { %v4860_v1 = vpop.f32.mrf.mxu1 }
 0x7bd   :  { %v4861_v52 = vadd.f32 %v4860_v1, %v4859_v61 }
 0x7be   :  { %v4862_v36 = vpop.f32.mrf.mxu1 }
 0x7bf   :  { %5488 = vmatprep.mubr.f32.mxu0 %v4861_v52 }
 0x7c0   :  { %v4863_v28 = vpop.f32.mrf.mxu1 }
 0x7c1   :  { %v4864_v22 = vadd.f32 %v4863_v28, %v4862_v36 }
 0x7c2   :  { %v4865_v42 = vpop.f32.mrf.mxu1 }
 0x7c3   :  { %5489 = vmatmul.mubr.f32.gmra.mxu0 %v4864_v22 }
 0x7c4   :  { %v4866_v23 = vpop.f32.mrf.mxu1 }
 0x7c5   :  { %v4867_v10 = vadd.f32 %v4866_v23, %v4865_v42 }
 0x7c6   :  { %v4868_v43 = vpop.f32.mrf.mxu1 }
 0x7c7   :  { %5491 = vmatprep.mubr.f32.mxu0 %v4867_v10 }
 0x7c8   :  { %v4869_v54 = vpop.f32.mrf.mxu1 }
 0x7c9   :  { %v4870_v14 = vadd.f32 %v4869_v54, %v4868_v43 }
 0x7ca   :  { %v4871_v17 = vpop.f32.mrf.mxu1 }
 0x7cb   :  { %5492 = vmatmul.mubr.f32.gmra.mxu0 %v4870_v14 }
 0x7cc   :  { %v4872_v57 = vpop.f32.mrf.mxu1 }
 0x7cd   :  { %v4873_v25 = vadd.f32 %v4872_v57, %v4871_v17 }
 0x7ce   :  { %v4874_v47 = vpop.f32.mrf.mxu1 }
 0x7cf   :  { %5494 = vmatprep.mubr.f32.mxu0 %v4873_v25 }
 0x7d0   :  { %v4875_v46 = vpop.f32.mrf.mxu1 }
 0x7d1   :  { %v4876_v37 = vadd.f32 %v4875_v46, %v4874_v47 }
 0x7d2   :  { %v4877_v12 = vpop.f32.mrf.mxu1 }
 0x7d3   :  { %5495 = vmatmul.mubr.f32.gmra.mxu0 %v4876_v37 }
 0x7d4   :  { %v4878_v19 = vpop.f32.mrf.mxu1 }
 0x7d5   :  { %v4879_v49 = vadd.f32 %v4878_v19, %v4877_v12 }
 0x7d6   :  { %v4880_v27 = vpop.f32.mrf.mxu1 }
 0x7d7   :  { %5497 = vmatprep.mubr.f32.mxu0 %v4879_v49 }
 0x7d8   :  { %v4881_v63 = vpop.f32.mrf.mxu1 }
 0x7d9   :  { %v4882_v16 = vadd.f32 %v4881_v63, %v4880_v27 }
 0x7da   :  { %v4883_v11 = vpop.f32.mrf.mxu1 }
 0x7db   :  { %5498 = vmatmul.mubr.f32.gmra.mxu0 %v4882_v16 }
 0x7dc   :  { %v4884_v53 = vpop.f32.mrf.mxu1 }
 0x7dd   :  { %v4885_v62 = vadd.f32 %v4884_v53, %v4883_v11 }
 0x7de   :  { %v4886_v35 = vpop.f32.mrf.mxu1 }
 0x7df   :  { %5500 = vmatprep.mubr.f32.mxu0 %v4885_v62  ;;  %v6651_v62 = vld [vmem:[%s6901_s3 + $0x3] ss:$0 sm:$0xff] }
 0x7e0   :  { %v4887_v56 = vpop.f32.mrf.mxu1 }
 0x7e1   :  { %v4888_v51 = vadd.f32 %v4887_v56, %v4886_v35 }
 0x7e2   :  { %v4889_v3 = vpop.f32.mrf.mxu1 }
 0x7e3   :  { %5501 = vmatmul.mubr.f32.gmra.mxu0 %v4888_v51 }
 0x7e4   :  { %v4890_v29 = vpop.f32.mrf.mxu1 }
 0x7e5   :  { %v4891_v15 = vadd.f32 %v4890_v29, %v4889_v3 }
 0x7e6   :  { %v4892_v50 = vpop.f32.mrf.mxu1 }
 0x7e7   :  { %5503 = vmatprep.mubr.f32.mxu0 %v4891_v15  ;;  %v6655_v15 = vld [vmem:[#allocation9 + $0x3] ss:$0 sm:$0xff] }
 0x7e8   :  { %v4893_v39 = vpop.f32.mrf.mxu1 }
 0x7e9   :  { %v4894_v4 = vadd.f32 %v4893_v39, %v4892_v50 }
 0x7ea   :  { %v4895_v45 = vpop.f32.mrf.mxu1 }
 0x7eb   :  { %5504 = vmatmul.mubr.f32.gmra.mxu0 %v4894_v4 }
 0x7ec   :  { %v4896_v24 = vpop.f32.mrf.mxu1 }
 0x7ed   :  { %v4897_v8 = vadd.f32 %v4896_v24, %v4895_v45 }
 0x7ee   :  { %v4898_v18 = vpop.f32.mrf.mxu1 }
 0x7ef   :  { %5506 = vmatprep.mubr.f32.mxu0 %v4897_v8 }
 0x7f0   :  { %v4899_v41 = vpop.f32.mrf.mxu1 }
 0x7f1   :  { %v4900_v20 = vadd.f32 %v4899_v41, %v4898_v18 }
 0x7f2   :  { %v4901_v58 = vpop.f32.mrf.mxu1 }
 0x7f3   :  { %5507 = vmatmul.mubr.f32.gmra.mxu0 %v4900_v20 }
 0x7f4   :  { %v4902_v26 = vpop.f32.mrf.mxu1 }
 0x7f5   :  { %v4903_v6 = vadd.f32 %v4902_v26, %v4901_v58 }
 0x7f6   :  { %v4904_v32 = vpop.f32.mrf.mxu1 }
 0x7f7   :  { %5509 = vmatprep.mubr.f32.mxu0 %v4903_v6 }
 0x7f8   :  { %v4905_v34 = vpop.f32.mrf.mxu1 }
 0x7f9   :  { %v4906_v38 = vadd.f32 %v4905_v34, %v4904_v32 }
 0x7fa   :  { %v4907_v40 = vpop.f32.mrf.mxu1 }
 0x7fb   :  { %5510 = vmatmul.mubr.f32.gmra.mxu0 %v4906_v38 }
 0x7fc   :  { %v4908_v44 = vpop.f32.mrf.mxu1 }
 0x7fd   :  { %v4909_v5 = vadd.f32 %v4908_v44, %v4907_v40 }
 0x7fe   :  { %v4910_v30 = vpop.f32.mrf.mxu1 }
 0x7ff   :  { %5512 = vmatprep.mubr.f32.mxu0 %v4909_v5 }
 0x800   :  { %v4911_v55 = vpop.f32.mrf.mxu1 }
 0x801   :  { %v4912_v21 = vadd.f32 %v4911_v55, %v4910_v30 }
 0x802   :  { %v4913_v0 = vpop.f32.mrf.mxu1 }
 0x803   :  { %5513 = vmatmul.mubr.f32.gmra.mxu0 %v4912_v21 }
 0x804   :  { %v4914_v31 = vpop.f32.mrf.mxu1 }
 0x805   :  { %v4915_v7 = vadd.f32 %v4914_v31, %v4913_v0 }
 0x806   :  { %v4916_v60 = vpop.f32.mrf.mxu1 }
 0x807   :  { %5515 = vmatprep.mubr.f32.mxu0 %v4915_v7 }
 0x808   :  { %v4917_v33 = vpop.f32.mrf.mxu1 }
 0x809   :  { %v4918_v2 = vadd.f32 %v4917_v33, %v4916_v60 }
 0x80a   :  { %v4919_v9 = vpop.f32.mrf.mxu1 }
 0x80b   :  { %5516 = vmatmul.mubr.f32.gmra.mxu0 %v4918_v2 }
 0x80c   :  { %v4920_v59 = vpop.f32.mrf.mxu1 }
 0x80d   :  { %v4921_v48 = vadd.f32 %v4920_v59, %v4919_v9 }
 0x80e   :  { %v4922_v13 = vpop.f32.mrf.mxu1 }
 0x80f   :  { %5518 = vmatprep.mubr.f32.mxu0 %v4921_v48 }
 0x810   :  { %v4923_v61 = vpop.f32.mrf.mxu1 }
 0x811   :  { %v4924_v1 = vadd.f32 %v4923_v61, %v4922_v13  ;;  %v5758_v13 = vld [vmem:[#allocation3 + $0x4] ss:$8 sps:$4 sm:$0xff]  }
 0x812   :  { %v4925_v52 = vpop.f32.mrf.mxu1 }
 0x813   :  { %5519 = vmatmul.mubr.f32.gmra.mxu0 %v4924_v1 }
 0x814   :  { %v4926_v36 = vpop.f32.mrf.mxu1 }
 0x815   :  { %v4927_v28 = vadd.f32 %v4926_v36, %v4925_v52 }
 0x816   :  { %v4928_v22 = vpop.f32.mrf.mxu1 }
 0x817   :  { %5521 = vmatprep.mubr.f32.mxu0 %v4927_v28 }
 0x818   :  { %v4929_v42 = vpop.f32.mrf.mxu1 }
 0x819   :  { %v4930_v23 = vadd.f32 %v4929_v42, %v4928_v22 }
 0x81a   :  { %v4931_v10 = vpop.f32.mrf.mxu1 }
 0x81b   :  { %5522 = vmatmul.mubr.f32.gmra.mxu0 %v4930_v23 }
 0x81c   :  { %v4932_v43 = vpop.f32.mrf.mxu1 }
 0x81d   :  { %v4933_v54 = vadd.f32 %v4932_v43, %v4931_v10 }
 0x81e   :  { %v4934_v14 = vpop.f32.mrf.mxu1 }
 0x81f   :  { %5524 = vmatprep.mubr.f32.mxu0 %v4933_v54 }
 0x820   :  { %v4935_v17 = vpop.f32.mrf.mxu1 }
 0x821   :  { %v4936_v57 = vadd.f32 %v4935_v17, %v4934_v14 }
 0x822   :  { %v4937_v25 = vpop.f32.mrf.mxu1 }
 0x823   :  { %5525 = vmatmul.mubr.f32.gmra.mxu0 %v4936_v57 }
 0x824   :  { %v4938_v47 = vpop.f32.mrf.mxu1 }
 0x825   :  { %v4939_v46 = vadd.f32 %v4938_v47, %v4937_v25 }
 0x826   :  { %v4940_v37 = vpop.f32.mrf.mxu1 }
 0x827   :  { %5527 = vmatprep.mubr.f32.mxu0 %v4939_v46 }
 0x828   :  { %v4941_v12 = vpop.f32.mrf.mxu1 }
 0x829   :  { %v4942_v19 = vadd.f32 %v4941_v12, %v4940_v37 }
 0x82a   :  { %v4943_v49 = vpop.f32.mrf.mxu1 }
 0x82b   :  { %5528 = vmatmul.mubr.f32.gmra.mxu0 %v4942_v19 }
 0x82c   :  { %v4944_v27 = vpop.f32.mrf.mxu1 }
 0x82d   :  { %v4945_v63 = vadd.f32 %v4944_v27, %v4943_v49 }
 0x82e   :  { %v4946_v16 = vpop.f32.mrf.mxu1 }
 0x82f   :  { %5530 = vmatprep.mubr.f32.mxu0 %v4945_v63 }
 0x830   :  { %v4947_v11 = vpop.f32.mrf.mxu1 }
 0x831   :  { %v4948_v53 = vadd.f32 %v4947_v11, %v4946_v16 }
 0x833   :  { %5531 = vmatmul.mubr.f32.gmra.mxu0 %v4948_v53 }
 0x834   :  { %3466 = vmatprep.mubr.bf16.mxu0 %v5758_v13 }
 0x87b   :  { %v5487_v35 = vpop.f32.mrf.mxu0 }
 0x87c   :  { %v2937_v56 = vadd.f32 %v5487_v35, %v6651_v62 }
 0x87d   :  { %v2931_v51 = vpop.f32.mrf.mxu0 }
 0x87e   :  { %v3091_v3 = vmax.f32 %v2937_v56, 0.0  ;;  %v2932_v29 = vadd.f32 %v6651_v62, %v2931_v51 }
 0x880   :  { %v3090_v50 = vmax.f32 %v2932_v29, 0.0  ;;  %v6658_v39 = vadd.f32 %v6655_v15, %v3091_v3 }
 0x882   :  { %v6661_v4 = vadd.f32 %v6655_v15, %v3090_v50 }
 0x883   :  { %v5490_v45 = vpop.f32.mrf.mxu0 }
 0x884   :  { %v3258_v24 = vpack.c.bf16 %v6658_v39, %v6661_v4  ;;  %v2947_v8 = vadd.f32 %v5490_v45, %v6651_v62  ;;  %v3603_v39 = vld [vmem:[#allocation8 + $0x238] sm:$0xff]  ;;  %v3602_v4 = vld [vmem:[#allocation8 + $0x230] sm:$0xff] }
 0x885   :  { %v2941_v18 = vpop.f32.mrf.mxu0 }
 0x886   :  { %v3093_v41 = vmax.f32 %v2947_v8, 0.0  ;;  %v2942_v20 = vadd.f32 %v6651_v62, %v2941_v18 }
 0x888   :  { %v3092_v58 = vmax.f32 %v2942_v20, 0.0  ;;  %v6668_v26 = vadd.f32 %v6655_v15, %v3093_v41 }
 0x88a   :  { %v6671_v6 = vadd.f32 %v6655_v15, %v3092_v58 }
 0x88b   :  { %v5493_v32 = vpop.f32.mrf.mxu0 }
 0x88c   :  { %v3259_v34 = vpack.c.bf16 %v6668_v26, %v6671_v6  ;;  %v2957_v38 = vadd.f32 %v5493_v32, %v6651_v62  ;;  %v3606_v26 = vld [vmem:[#allocation8 + $0x250] sm:$0xff]  ;;  %v3605_v6 = vld [vmem:[#allocation8 + $0x248] sm:$0xff] }
 0x88d   :  { %v2951_v40 = vpop.f32.mrf.mxu0 }
 0x88e   :  { %v3095_v44 = vmax.f32 %v2957_v38, 0.0  ;;  %v2952_v5 = vadd.f32 %v6651_v62, %v2951_v40 }
 0x890   :  { %v3094_v30 = vmax.f32 %v2952_v5, 0.0  ;;  %v6678_v55 = vadd.f32 %v6655_v15, %v3095_v44 }
 0x892   :  { %v6681_v21 = vadd.f32 %v6655_v15, %v3094_v30 }
 0x893   :  { %v5496_v0 = vpop.f32.mrf.mxu0 }
 0x894   :  { %v3260_v31 = vpack.c.bf16 %v6678_v55, %v6681_v21  ;;  %v2967_v7 = vadd.f32 %v5496_v0, %v6651_v62  ;;  %v3607_v55 = vld [vmem:[#allocation8 + $0x258] sm:$0xff]  ;;  %v3604_v21 = vld [vmem:[#allocation8 + $0x240] sm:$0xff] }
 0x895   :  { %v2961_v60 = vpop.f32.mrf.mxu0 }
 0x896   :  { %v3097_v33 = vmax.f32 %v2967_v7, 0.0  ;;  %v2962_v2 = vadd.f32 %v6651_v62, %v2961_v60 }
 0x898   :  { %v3096_v9 = vmax.f32 %v2962_v2, 0.0  ;;  %v6688_v59 = vadd.f32 %v6655_v15, %v3097_v33 }
 0x89a   :  { %v6691_v48 = vadd.f32 %v6655_v15, %v3096_v9 }
 0x89b   :  { %v6695_v1 = vpop.f32.mrf.mxu0 }
 0x89c   :  { %v3261_v61 = vpack.c.bf16 %v6688_v59, %v6691_v48  ;;  %v3609_v59 = vld [vmem:[#allocation8 + $0x268] sm:$0xff] }
 0x89d   :  { %v2971_v52 = vpop.f32.mrf.mxu0  ;;  %v5756_v48 = vld [vmem:[#allocation3] ss:$8 sps:$4 sm:$0xff]  }
 0x8a3   :  { %v5502_v36 = vpop.f32.mrf.mxu0 }
 0x8a4   :  { %v2987_v9 = vadd.f32 %v5502_v36, %v6651_v62 }
 0x8a5   :  { %v2981_v28 = vpop.f32.mrf.mxu0 }
 0x8a6   :  { %v2982_v44 = vadd.f32 %v6651_v62, %v2981_v28 }
 0x8ab   :  { %v5505_v22 = vpop.f32.mrf.mxu0 }
 0x8ac   :  { %v2997_v20 = vadd.f32 %v5505_v22, %v6651_v62 }
 0x8ad   :  { %v2991_v42 = vpop.f32.mrf.mxu0 }
 0x8ae   :  { %v2992_v3 = vadd.f32 %v6651_v62, %v2991_v42  ;;  %v3103_v13 = vmax.f32 %v2997_v20, 0.0 }
 0x8b0   :  { %v3102_v5 = vmax.f32 %v2992_v3, 0.0 }
 0x8b3   :  { %v5508_v23 = vpop.f32.mrf.mxu0 }
 0x8b4   :  { %v3007_v53 = vadd.f32 %v5508_v23, %v6651_v62 }
 0x8b5   :  { %v3001_v10 = vpop.f32.mrf.mxu0 }
 0x8b6   :  { %v3002_v16 = vadd.f32 %v6651_v62, %v3001_v10  ;;  %v3105_v58 = vmax.f32 %v3007_v53, 0.0  ;;  %v3101_v53 = vmax.f32 %v2987_v9, 0.0 }
 0x8b8   :  { %v3104_v29 = vmax.f32 %v3002_v16, 0.0  ;;  %v3145_v22 = vadd.f32 %v6655_v15, %v3105_v58 }
 0x8ba   :  { %v3144_v30 = vadd.f32 %v6655_v15, %v3104_v29 }
 0x8bb   :  { %v6697_v43 = vpop.f32.mrf.mxu0 }
 0x8bd   :  { %v6699_v54 = vpop.f32.mrf.mxu0 }
 0x8c3   :  { %v6701_v14 = vpop.f32.mrf.mxu0 }
 0x8c5   :  { %v6703_v17 = vpop.f32.mrf.mxu0 }
 0x8cb   :  { %v6705_v57 = vpop.f32.mrf.mxu0 }
 0x8cd   :  { %v3031_v25 = vpop.f32.mrf.mxu0 }
 0x8d3   :  { %v5520_v47 = vpop.f32.mrf.mxu0 }
 0x8d5   :  { %v3041_v46 = vpop.f32.mrf.mxu0 }
 0x8db   :  { %v5523_v37 = vpop.f32.mrf.mxu0 }
 0x8dc   :  { %v3057_v42 = vadd.f32 %v5523_v37, %v6651_v62  ;;  %v2977_v37 = vadd.f32 %v6695_v1, %v6651_v62 }
 0x8dd   :  { %v3051_v12 = vpop.f32.mrf.mxu0 }
 0x8de   :  { %v3052_v0 = vadd.f32 %v6651_v62, %v3051_v12  ;;  %v2972_v12 = vadd.f32 %v6651_v62, %v2971_v52  ;;  %v3047_v52 = vadd.f32 %v5520_v47, %v6651_v62  ;;  %v3037_v47 = vadd.f32 %v6705_v57, %v6651_v62 }
 0x8df   :  { %v3027_v57 = vadd.f32 %v6701_v14, %v6651_v62 }
 0x8e0   :  { %v3114_v16 = vmax.f32 %v3052_v0, 0.0  ;;  %v3098_v3 = vmax.f32 %v2972_v12, 0.0  ;;  %v3113_v20 = vmax.f32 %v3047_v52, 0.0  ;;  %v3111_v0 = vmax.f32 %v3037_v47, 0.0  ;;  %v5771_v52 = vld [vmem:[#allocation3 + $0x50] ss:$8 sps:$4 sm:$0xff]  }
 0x8e1   :  { %v5788_v47 = vld [vmem:[#allocation3 + $0xa4] ss:$8 sps:$4 sm:$0xff]  }
 0x8e3   :  { %v5526_v19 = vpop.f32.mrf.mxu0 }
 0x8e4   :  { %v3067_v32 = vadd.f32 %v5526_v19, %v6651_v62  ;;  %v3100_v19 = vmax.f32 %v2982_v44, 0.0 }
 0x8e5   :  { %v3061_v49 = vpop.f32.mrf.mxu0 }
 0x8e6   :  { %v3062_v45 = vadd.f32 %v6651_v62, %v3061_v49  ;;  %v3117_v28 = vmax.f32 %v3067_v32, 0.0  ;;  %v3142_v49 = vadd.f32 %v6655_v15, %v3102_v5  ;;  %v3138_v32 = vadd.f32 %v6655_v15, %v3098_v3  ;;  %v5779_v3 = vld [vmem:[#allocation3 + $0x74] ss:$8 sps:$4 sm:$0xff]  }
 0x8e8   :  { %v3116_v7 = vmax.f32 %v3062_v45, 0.0 }
 0x8ea   :  { %v3156_v36 = vadd.f32 %v6655_v15, %v3116_v7  ;;  %v3153_v7 = vadd.f32 %v6655_v15, %v3113_v20  ;;  %v3596_v20 = vld [vmem:[#allocation8 + $0x200] sm:$0xff] }
 0x8eb   :  { %v5529_v27 = vpop.f32.mrf.mxu0 }
 0x8ec   :  { %v3077_v56 = vadd.f32 %v5529_v27, %v6651_v62  ;;  %v3265_v27 = vpack.c.bf16 %v3145_v22, %v3144_v30  ;;  %v3109_v22 = vmax.f32 %v3027_v57, 0.0  ;;  %v5798_v57 = vld [vmem:[#allocation3 + $0xe0] ss:$8 sps:$4 sm:$0xff]  }
 0x8ed   :  { %v3071_v63 = vpop.f32.mrf.mxu0 }
 0x8ee   :  { %v3072_v11 = vadd.f32 %v6651_v62, %v3071_v63  ;;  %v3119_v38 = vmax.f32 %v3077_v56, 0.0  ;;  %v3042_v63 = vadd.f32 %v6651_v62, %v3041_v46  ;;  %v3115_v56 = vmax.f32 %v3057_v42, 0.0 }
 0x8ef   :  { %v3140_v46 = vadd.f32 %v6655_v15, %v3100_v19  ;;  %v3151_v42 = vadd.f32 %v6655_v15, %v3111_v0  ;;  %v5803_v0 = vld [vmem:[#allocation3 + $0xf4] ss:$8 sps:$4 sm:$0xff]  }
 0x8f0   :  { %v3118_v8 = vmax.f32 %v3072_v11, 0.0  ;;  %v3159_v23 = vadd.f32 %v6655_v15, %v3119_v38  ;;  %v3112_v45 = vmax.f32 %v3042_v63, 0.0  ;;  %v3155_v58 = vadd.f32 %v6655_v15, %v3115_v56  ;;  %v5762_v63 = vld [vmem:[#allocation3 + $0x20] ss:$8 sps:$4 sm:$0xff]   ;;  %v5776_v56 = vld [vmem:[#allocation3 + $0x64] ss:$8 sps:$4 sm:$0xff]  }
 0x8f2   :  { %v3158_v60 = vadd.f32 %v6655_v15, %v3118_v8  ;;  %v3154_v8 = vadd.f32 %v6655_v15, %v3114_v16  ;;  %v3152_v44 = vadd.f32 %v6655_v15, %v3112_v45  ;;  %v3600_v16 = vld [vmem:[#allocation8 + $0x220] sm:$0xff]  ;;  %v5785_v45 = vld [vmem:[#allocation3 + $0x94] ss:$8 sps:$4 sm:$0xff]  }
 0x8f3   :  { %v5532_v35 = vpop.f32.mrf.mxu0 }
 0x8f4   :  { %v3087_v51 = vadd.f32 %v5532_v35, %v6651_v62  ;;  %v3272_v11 = vpack.c.bf16 %v3159_v23, %v3158_v60  ;;  %v3143_v35 = vadd.f32 %v6655_v15, %v3103_v13  ;;  %v3270_v5 = vpack.c.bf16 %v3155_v58, %v3154_v8  ;;  %v3599_v8 = vld [vmem:[#allocation8 + $0x218] sm:$0xff]  ;;  %v5786_v58 = vld [vmem:[#allocation3 + $0xa0] ss:$8 sps:$4 sm:$0xff]  }
 0x8f5   :  { %v3081_v50 = vpop.f32.mrf.mxu0  ;;  %v3269_v9 = vpack.c.bf16 %v3153_v7, %v3152_v44  ;;  %v3017_v13 = vadd.f32 %v6697_v43, %v6651_v62  ;;  %v5797_v44 = vld [vmem:[#allocation3 + $0xd4] ss:$8 sps:$4 sm:$0xff]   ;;  %v5801_v7 = vld [vmem:[#allocation3 + $0xf0] ss:$8 sps:$4 sm:$0xff]  }
 0x8f6   :  { %v3121_v18 = vmax.f32 %v3087_v51, 0.0  ;;  %v3082_v41 = vadd.f32 %v6651_v62, %v3081_v50  ;;  %v3157_v51 = vadd.f32 %v6655_v15, %v3117_v28  ;;  %v3264_v29 = vpack.c.bf16 %v3143_v35, %v3142_v49  ;;  %v3611_v49 = vld [vmem:[#allocation8 + $0x278] sm:$0xff] }
 0x8f7   :  { %v3032_v50 = vadd.f32 %v6651_v62, %v3031_v25  ;;  %v3022_v25 = vadd.f32 %v6651_v62, %v6703_v17  ;;  %5533 = vmatprep.subr.mxu1 %v3611_v49  ;;  %v5773_v35 = vld [vmem:[#allocation3 + $0x54] ss:$8 sps:$4 sm:$0xff]  }
 0x8f8   :  { %v3120_v40 = vmax.f32 %v3082_v41, 0.0  ;;  %v3161_v33 = vadd.f32 %v6655_v15, %v3121_v18  ;;  %v3271_v1 = vpack.c.bf16 %v3157_v51, %v3156_v36  ;;  %v3099_v18 = vmax.f32 %v2977_v37, 0.0  ;;  %5534 = vmatpush3.msra.mxu1 %v3611_v49  ;;  %v5767_v36 = vld [vmem:[#allocation3 + $0x34] ss:$8 sps:$4 sm:$0xff]   ;;  %v5770_v37 = vld [vmem:[#allocation3 + $0x44] ss:$8 sps:$4 sm:$0xff]  }
 0x8f9   :  { %v3141_v41 = vadd.f32 %v6655_v15, %v3101_v53  ;;  %v5768_v53 = vld [vmem:[#allocation3 + $0x40] ss:$8 sps:$4 sm:$0xff]  }
 0x8fa   :  { %v3160_v2 = vadd.f32 %v6655_v15, %v3120_v40  ;;  %v3110_v40 = vmax.f32 %v3032_v50, 0.0  ;;  %v3139_v30 = vadd.f32 %v6655_v15, %v3099_v18  ;;  %v5774_v51 = vld [vmem:[#allocation3 + $0x60] ss:$8 sps:$4 sm:$0xff]   ;;  %v5783_v18 = vld [vmem:[#allocation3 + $0x90] ss:$8 sps:$4 sm:$0xff]  }
 0x8fb   :  { %v3263_v38 = vpack.c.bf16 %v3141_v41, %v3140_v46  ;;  %v5777_v46 = vld [vmem:[#allocation3 + $0x70] ss:$8 sps:$4 sm:$0xff]   ;;  %v5780_v50 = vld [vmem:[#allocation3 + $0x80] ss:$8 sps:$4 sm:$0xff]  }
 0x8fc   :  { %v3273_v10 = vpack.c.bf16 %v3161_v33, %v3160_v2  ;;  %v3262_v60 = vpack.c.bf16 %v3139_v30, %v3138_v32  ;;  %v3012_v33 = vadd.f32 %v6651_v62, %v6699_v54  ;;  %v3108_v2 = vmax.f32 %v3022_v25, 0.0  ;;  %v3597_v41 = vld [vmem:[#allocation8 + $0x208] sm:$0xff]  ;;  %v5791_v32 = vld [vmem:[#allocation3 + $0xb4] ss:$8 sps:$4 sm:$0xff]  }
 0x8fd   :  { %v3150_v17 = vadd.f32 %v6655_v15, %v3110_v40  ;;  %v3107_v54 = vmax.f32 %v3017_v13, 0.0  ;;  %v5794_v25 = vld [vmem:[#allocation3 + $0xc4] ss:$8 sps:$4 sm:$0xff]   ;;  %v5792_v40 = vld [vmem:[#allocation3 + $0xc0] ss:$8 sps:$4 sm:$0xff]  }
 0x8fe   :  { %4997 = vmatprep.subr.bf16.mxu0 %v3273_v10  ;;  %v3106_v14 = vmax.f32 %v3012_v33, 0.0  ;;  %v3148_v28 = vadd.f32 %v6655_v15, %v3108_v2  ;;  %v3149_v10 = vadd.f32 %v6655_v15, %v3109_v22  ;;  %v5800_v30 = vld [vmem:[#allocation3 + $0xe4] ss:$8 sps:$4 sm:$0xff]  }
 0x8ff   :  { %4998 = vmatpush3.bf16.msra.mxu0 %v3265_v27  ;;  %v3268_v23 = vpack.c.bf16 %v3151_v42, %v3150_v17  ;;  %v3147_v62 = vadd.f32 %v6655_v15, %v3107_v54  ;;  %v3610_v27 = vld [vmem:[#allocation8 + $0x270] sm:$0xff] }
 0x900   :  { %4999 = vmatprep.subr.bf16.mxu0 %v3272_v11  ;;  %v3146_v12 = vadd.f32 %v6655_v15, %v3106_v14  ;;  %v3267_v19 = vpack.c.bf16 %v3149_v10, %v3148_v28  ;;  %5535 = vmatprep.subr.mxu1 %v3610_v27  ;;  %v5761_v15 = vld [vmem:[#allocation3 + $0x14] ss:$8 sps:$4 sm:$0xff]   ;;  %v5765_v11 = vld [vmem:[#allocation3 + $0x30] ss:$8 sps:$4 sm:$0xff]  }
 0x901   :  { %5536 = vmatpush3.msra.mxu1 %v3610_v27 }
 0x902   :  { %v3266_v43 = vpack.c.bf16 %v3147_v62, %v3146_v12  ;;  %5537 = vmatprep.subr.mxu1 %v3609_v59 }
 0x903   :  { %5000 = vmatpush3.bf16.msra.mxu0 %v3264_v29  ;;  %5538 = vmatpush3.msra.mxu1 %v3609_v59  ;;  %v5782_v29 = vld [vmem:[#allocation3 + $0x84] ss:$8 sps:$4 sm:$0xff]  }
 0x904   :  { %5001 = vmatprep.subr.bf16.mxu0 %v3271_v1  ;;  %v3598_v1 = vld [vmem:[#allocation8 + $0x210] sm:$0xff] }
 0x907   :  { %5002 = vmatpush3.bf16.msra.mxu0 %v3263_v38  ;;  %v5789_v38 = vld [vmem:[#allocation3 + $0xb0] ss:$8 sps:$4 sm:$0xff]  }
 0x908   :  { %5003 = vmatprep.subr.bf16.mxu0 %v3270_v5  ;;  %v5795_v5 = vld [vmem:[#allocation3 + $0xd0] ss:$8 sps:$4 sm:$0xff]  }
 0x90b   :  { %5004 = vmatpush3.bf16.msra.mxu0 %v3262_v60 }
 0x90c   :  { %5005 = vmatprep.subr.bf16.mxu0 %v3269_v9 }
 0x90f   :  { %5006 = vmatpush3.bf16.msra.mxu0 %v3261_v61  ;;  %v3608_v61 = vld [vmem:[#allocation8 + $0x260] sm:$0xff] }
 0x910   :  { %5007 = vmatprep.subr.bf16.mxu0 %v3268_v23  ;;  %5539 = vmatprep.subr.mxu1 %v3608_v61 }
 0x911   :  { %5540 = vmatpush3.msra.mxu1 %v3608_v61 }
 0x912   :  { %5541 = vmatprep.subr.mxu1 %v3607_v55 }
 0x913   :  { %5008 = vmatpush3.bf16.msra.mxu0 %v3260_v31  ;;  %5542 = vmatpush3.msra.mxu1 %v3607_v55  ;;  %v5764_v31 = vld [vmem:[#allocation3 + $0x24] ss:$8 sps:$4 sm:$0xff]  }
 0x914   :  { %5009 = vmatprep.subr.bf16.mxu0 %v3267_v19  ;;  %5543 = vmatprep.subr.mxu1 %v3606_v26 }
 0x915   :  { %5544 = vmatpush3.msra.mxu1 %v3606_v26 }
 0x916   :  { %5545 = vmatprep.subr.mxu1 %v3605_v6 }
 0x917   :  { %5010 = vmatpush3.bf16.msra.mxu0 %v3259_v34  ;;  %v5759_v34 = vld [vmem:[#allocation3 + $0x10] ss:$8 sps:$4 sm:$0xff]   ;;  %5546 = vmatpush3.msra.mxu1 %v3605_v6 }
 0x918   :  { %5011 = vmatprep.subr.bf16.mxu0 %v3266_v43  ;;  %5547 = vmatprep.subr.mxu1 %v3604_v21 }
 0x919   :  { %5548 = vmatpush3.msra.mxu1 %v3604_v21 }
 0x91a   :  { %5549 = vmatprep.subr.mxu1 %v3603_v39 }
 0x91b   :  { %5012 = vmatpush3.bf16.msra.mxu0 %v3258_v24  ;;  %5550 = vmatpush3.msra.mxu1 %v3603_v39  ;;  %v3601_v24 = vld [vmem:[#allocation8 + $0x228] sm:$0xff] }
 0x91c   :  { %5551 = vmatprep.subr.mxu1 %v3602_v4 }
 0x91d   :  { %5552 = vmatpush3.msra.mxu1 %v3602_v4 }
 0x91e   :  { %3467 = vmatmul.mubr.bf16.vlgmr.msra.gmra.mxu0 %v5756_v48  ;;  %5553 = vmatprep.subr.mxu1 %v3601_v24 }
 0x91f   :  { %3474 = vmatprep.mubr.bf16.mxu0 %v5761_v15  ;;  %5554 = vmatpush3.msra.mxu1 %v3601_v24 }
 0x920   :  { %5555 = vmatprep.subr.mxu1 %v3600_v16 }
 0x921   :  { %5556 = vmatpush3.msra.mxu1 %v3600_v16 }
 0x922   :  { %5557 = vmatprep.subr.mxu1 %v3599_v8 }
 0x923   :  { %5558 = vmatpush3.msra.mxu1 %v3599_v8 }
 0x924   :  { %5559 = vmatprep.subr.mxu1 %v3598_v1 }
 0x925   :  { %5560 = vmatpush3.msra.mxu1 %v3598_v1 }
 0x926   :  { %3475 = vmatmul.mubr.bf16.gmra.mxu0 %v5759_v34  ;;  %5561 = vmatprep.subr.mxu1 %v3597_v41 }
 0x927   :  { %3482 = vmatprep.mubr.bf16.mxu0 %v5764_v31  ;;  %5562 = vmatpush3.msra.mxu1 %v3597_v41 }
 0x928   :  { %5563 = vmatprep.subr.mxu1 %v3596_v20 }
 0x929   :  { %5564 = vmatpush3.msra.mxu1 %v3596_v20 }
 0x92e   :  { %3483 = vmatmul.mubr.bf16.gmra.mxu0 %v5762_v63 }
 0x92f   :  { %3490 = vmatprep.mubr.bf16.mxu0 %v5767_v36 }
 0x936   :  { %3491 = vmatmul.mubr.bf16.gmra.mxu0 %v5765_v11 }
 0x937   :  { %3498 = vmatprep.mubr.bf16.mxu0 %v5770_v37 }
 0x93e   :  { %3499 = vmatmul.mubr.bf16.gmra.mxu0 %v5768_v53 }
 0x93f   :  { %3506 = vmatprep.mubr.bf16.mxu0 %v5773_v35 }
 0x946   :  { %3507 = vmatmul.mubr.bf16.gmra.mxu0 %v5771_v52 }
 0x947   :  { %3514 = vmatprep.mubr.bf16.mxu0 %v5776_v56 }
 0x94e   :  { %3515 = vmatmul.mubr.bf16.gmra.mxu0 %v5774_v51 }
 0x94f   :  { %3522 = vmatprep.mubr.bf16.mxu0 %v5779_v3 }
 0x956   :  { %3523 = vmatmul.mubr.bf16.gmra.mxu0 %v5777_v46 }
 0x957   :  { %3530 = vmatprep.mubr.bf16.mxu0 %v5782_v29 }
 0x95e   :  { %3531 = vmatmul.mubr.bf16.gmra.mxu0 %v5780_v50 }
 0x95f   :  { %3538 = vmatprep.mubr.bf16.mxu0 %v5785_v45 }
 0x966   :  { %3539 = vmatmul.mubr.bf16.gmra.mxu0 %v5783_v18 }
 0x967   :  { %3546 = vmatprep.mubr.bf16.mxu0 %v5788_v47 }
 0x96e   :  { %3547 = vmatmul.mubr.bf16.gmra.mxu0 %v5786_v58 }
 0x96f   :  { %3554 = vmatprep.mubr.bf16.mxu0 %v5791_v32 }
 0x976   :  { %3555 = vmatmul.mubr.bf16.gmra.mxu0 %v5789_v38 }
 0x977   :  { %3562 = vmatprep.mubr.bf16.mxu0 %v5794_v25 }
 0x97e   :  { %3563 = vmatmul.mubr.bf16.gmra.mxu0 %v5792_v40 }
 0x97f   :  { %3570 = vmatprep.mubr.bf16.mxu0 %v5797_v44 }
 0x986   :  { %3571 = vmatmul.mubr.bf16.gmra.mxu0 %v5795_v5 }
 0x987   :  { %3578 = vmatprep.mubr.bf16.mxu0 %v5800_v30 }
 0x98e   :  { %3579 = vmatmul.mubr.bf16.gmra.mxu0 %v5798_v57 }
 0x98f   :  { %3586 = vmatprep.mubr.bf16.mxu0 %v5803_v0 }
 0x996   :  { %3587 = vmatmul.mubr.bf16.gmra.mxu0 %v5801_v7 }
 0x9de   :  { %v5013_v60 = vpop.f32.mrf.mxu0 }
 0x9e0   :  { %v5014_v33 = vpop.f32.mrf.mxu0 }
 0x9e1   :  { %v5015_v2 = vadd.f32 %v5014_v33, %v5013_v60 }
 0x9e2   :  { %v5016_v17 = vpop.f32.mrf.mxu0 }
 0x9e3   :  { %5565 = vmatprep.mubr.f32.mxu1 %v5015_v2 }
 0x9e4   :  { %v5017_v9 = vpop.f32.mrf.mxu0 }
 0x9e5   :  { %v5018_v13 = vadd.f32 %v5017_v9, %v5016_v17 }
 0x9e6   :  { %v5019_v22 = vpop.f32.mrf.mxu0 }
 0x9e7   :  { %5566 = vmatmul.mubr.f32.vlgmr.msra.gmra.mxu1 %v5018_v13 }
 0x9e8   :  { %v5020_v42 = vpop.f32.mrf.mxu0 }
 0x9e9   :  { %v5021_v14 = vadd.f32 %v5020_v42, %v5019_v22 }
 0x9ea   :  { %v5022_v28 = vpop.f32.mrf.mxu0 }
 0x9eb   :  { %5568 = vmatprep.mubr.f32.mxu1 %v5021_v14 }
 0x9ec   :  { %v5023_v23 = vpop.f32.mrf.mxu0 }
 0x9ed   :  { %v5024_v54 = vadd.f32 %v5023_v23, %v5022_v28 }
 0x9ee   :  { %v5025_v10 = vpop.f32.mrf.mxu0 }
 0x9ef   :  { %5569 = vmatmul.mubr.f32.gmra.mxu1 %v5024_v54 }
 0x9f0   :  { %v5026_v12 = vpop.f32.mrf.mxu0 }
 0x9f1   :  { %v5027_v19 = vadd.f32 %v5026_v12, %v5025_v10 }
 0x9f2   :  { %v5028_v62 = vpop.f32.mrf.mxu0 }
 0x9f3   :  { %5571 = vmatprep.mubr.f32.mxu1 %v5027_v19 }
 0x9f4   :  { %v5029_v43 = vpop.f32.mrf.mxu0 }
 0x9f5   :  { %v5030_v49 = vadd.f32 %v5029_v43, %v5028_v62 }
 0x9f6   :  { %v5031_v27 = vpop.f32.mrf.mxu0 }
 0x9f7   :  { %5572 = vmatmul.mubr.f32.gmra.mxu1 %v5030_v49 }
 0x9f8   :  { %v5032_v59 = vpop.f32.mrf.mxu0 }
 0x9f9   :  { %v5033_v48 = vadd.f32 %v5032_v59, %v5031_v27 }
 0x9fa   :  { %v5034_v61 = vpop.f32.mrf.mxu0 }
 0x9fb   :  { %5574 = vmatprep.mubr.f32.mxu1 %v5033_v48 }
 0x9fc   :  { %v5035_v15 = vpop.f32.mrf.mxu0 }
 0x9fd   :  { %v5036_v55 = vadd.f32 %v5035_v15, %v5034_v61 }
 0x9fe   :  { %v5037_v26 = vpop.f32.mrf.mxu0 }
 0x9ff   :  { %5575 = vmatmul.mubr.f32.gmra.mxu1 %v5036_v55 }
 0xa00   :  { %v5038_v6 = vpop.f32.mrf.mxu0 }
 0xa01   :  { %v5039_v34 = vadd.f32 %v5038_v6, %v5037_v26 }
 0xa02   :  { %v5040_v21 = vpop.f32.mrf.mxu0 }
 0xa03   :  { %5577 = vmatprep.mubr.f32.mxu1 %v5039_v34 }
 0xa04   :  { %v5041_v31 = vpop.f32.mrf.mxu0 }
 0xa05   :  { %v5042_v39 = vadd.f32 %v5041_v31, %v5040_v21 }
 0xa06   :  { %v5043_v4 = vpop.f32.mrf.mxu0 }
 0xa07   :  { %5578 = vmatmul.mubr.f32.gmra.mxu1 %v5042_v39 }
 0xa08   :  { %v5044_v24 = vpop.f32.mrf.mxu0 }
 0xa09   :  { %v5045_v63 = vadd.f32 %v5044_v24, %v5043_v4 }
 0xa0a   :  { %v5046_v16 = vpop.f32.mrf.mxu0 }
 0xa0b   :  { %5580 = vmatprep.mubr.f32.mxu1 %v5045_v63  ;;  %v3950_v63 = vld [vmem:[#allocation11 + $0x8] sm:$0xff] }
 0xa0c   :  { %v5047_v36 = vpop.f32.mrf.mxu0 }
 0xa0d   :  { %v5048_v11 = vadd.f32 %v5047_v36, %v5046_v16 }
 0xa0e   :  { %v5049_v37 = vpop.f32.mrf.mxu0 }
 0xa0f   :  { %5581 = vmatmul.mubr.f32.gmra.mxu1 %v5048_v11 }
 0xa10   :  { %v5050_v53 = vpop.f32.mrf.mxu0 }
 0xa11   :  { %v5051_v35 = vadd.f32 %v5050_v53, %v5049_v37 }
 0xa12   :  { %v5052_v52 = vpop.f32.mrf.mxu0 }
 0xa13   :  { %5583 = vmatprep.mubr.f32.mxu1 %v5051_v35 }
 0xa14   :  { %v5053_v56 = vpop.f32.mrf.mxu0 }
 0xa15   :  { %v5054_v51 = vadd.f32 %v5053_v56, %v5052_v52 }
 0xa16   :  { %v5055_v3 = vpop.f32.mrf.mxu0 }
 0xa17   :  { %5584 = vmatmul.mubr.f32.gmra.mxu1 %v5054_v51 }
 0xa18   :  { %v5056_v46 = vpop.f32.mrf.mxu0 }
 0xa19   :  { %v5057_v29 = vadd.f32 %v5056_v46, %v5055_v3 }
 0xa1a   :  { %v5058_v50 = vpop.f32.mrf.mxu0 }
 0xa1b   :  { %5586 = vmatprep.mubr.f32.mxu1 %v5057_v29 }
 0xa1c   :  { %v5059_v45 = vpop.f32.mrf.mxu0 }
 0xa1d   :  { %v5060_v8 = vadd.f32 %v5059_v45, %v5058_v50 }
 0xa1e   :  { %v5061_v1 = vpop.f32.mrf.mxu0 }
 0xa1f   :  { %5587 = vmatmul.mubr.f32.gmra.mxu1 %v5060_v8 }
 0xa20   :  { %v5062_v18 = vpop.f32.mrf.mxu0 }
 0xa21   :  { %v5063_v41 = vadd.f32 %v5062_v18, %v5061_v1 }
 0xa22   :  { %v5064_v47 = vpop.f32.mrf.mxu0 }
 0xa23   :  { %5589 = vmatprep.mubr.f32.mxu1 %v5063_v41 }
 0xa24   :  { %v5065_v20 = vpop.f32.mrf.mxu0 }
 0xa25   :  { %v5066_v58 = vadd.f32 %v5065_v20, %v5064_v47 }
 0xa26   :  { %v5067_v32 = vpop.f32.mrf.mxu0 }
 0xa27   :  { %5590 = vmatmul.mubr.f32.gmra.mxu1 %v5066_v58 }
 0xa28   :  { %v5068_v38 = vpop.f32.mrf.mxu0 }
 0xa29   :  { %v5069_v25 = vadd.f32 %v5068_v38, %v5067_v32 }
 0xa2a   :  { %v5070_v40 = vpop.f32.mrf.mxu0 }
 0xa2b   :  { %5592 = vmatprep.mubr.f32.mxu1 %v5069_v25 }
 0xa2c   :  { %v5071_v44 = vpop.f32.mrf.mxu0 }
 0xa2d   :  { %v5072_v5 = vadd.f32 %v5071_v44, %v5070_v40 }
 0xa2e   :  { %v5073_v30 = vpop.f32.mrf.mxu0 }
 0xa2f   :  { %5593 = vmatmul.mubr.f32.gmra.mxu1 %v5072_v5 }
 0xa30   :  { %v5074_v57 = vpop.f32.mrf.mxu0 }
 0xa31   :  { %v5075_v0 = vadd.f32 %v5074_v57, %v5073_v30 }
 0xa32   :  { %v5076_v7 = vpop.f32.mrf.mxu0 }
 0xa33   :  { %5595 = vmatprep.mubr.f32.mxu1 %v5075_v0  ;;  %v6806_v0 = vld [vmem:[%s6901_s3 + $0x4] ss:$0 sm:$0xff] }
 0xa34   :  { %v5077_v60 = vpop.f32.mrf.mxu0 }
 0xa35   :  { %v5078_v33 = vadd.f32 %v5077_v60, %v5076_v7 }
 0xa36   :  { %v5079_v2 = vpop.f32.mrf.mxu0 }
 0xa37   :  { %5596 = vmatmul.mubr.f32.gmra.mxu1 %v5078_v33 }
 0xa38   :  { %v5080_v17 = vpop.f32.mrf.mxu0 }
 0xa39   :  { %v5081_v9 = vadd.f32 %v5080_v17, %v5079_v2 }
 0xa3a   :  { %v5082_v13 = vpop.f32.mrf.mxu0 }
 0xa3b   :  { %5598 = vmatprep.mubr.f32.mxu1 %v5081_v9 }
 0xa3c   :  { %v5083_v22 = vpop.f32.mrf.mxu0 }
 0xa3d   :  { %v5084_v42 = vadd.f32 %v5083_v22, %v5082_v13 }
 0xa3e   :  { %v5085_v14 = vpop.f32.mrf.mxu0 }
 0xa3f   :  { %5599 = vmatmul.mubr.f32.gmra.mxu1 %v5084_v42 }
 0xa40   :  { %v5086_v28 = vpop.f32.mrf.mxu0 }
 0xa41   :  { %v5087_v23 = vadd.f32 %v5086_v28, %v5085_v14 }
 0xa42   :  { %v5088_v54 = vpop.f32.mrf.mxu0 }
 0xa43   :  { %5601 = vmatprep.mubr.f32.mxu1 %v5087_v23 }
 0xa44   :  { %v5089_v10 = vpop.f32.mrf.mxu0 }
 0xa45   :  { %v5090_v12 = vadd.f32 %v5089_v10, %v5088_v54  ;;  %v6815_v54 = vld [vmem:[#allocation9 + $0x4] ss:$0 sm:$0xff] }
 0xa46   :  { %v5091_v19 = vpop.f32.mrf.mxu0 }
 0xa47   :  { %5602 = vmatmul.mubr.f32.gmra.mxu1 %v5090_v12 }
 0xa48   :  { %v5092_v62 = vpop.f32.mrf.mxu0 }
 0xa49   :  { %v5093_v43 = vadd.f32 %v5092_v62, %v5091_v19 }
 0xa4a   :  { %v5094_v49 = vpop.f32.mrf.mxu0 }
 0xa4b   :  { %5604 = vmatprep.mubr.f32.mxu1 %v5093_v43 }
 0xa4c   :  { %v5095_v27 = vpop.f32.mrf.mxu0 }
 0xa4d   :  { %v5096_v59 = vadd.f32 %v5095_v27, %v5094_v49 }
 0xa4e   :  { %v5097_v48 = vpop.f32.mrf.mxu0 }
 0xa4f   :  { %5605 = vmatmul.mubr.f32.gmra.mxu1 %v5096_v59 }
 0xa50   :  { %v5098_v61 = vpop.f32.mrf.mxu0 }
 0xa51   :  { %v5099_v15 = vadd.f32 %v5098_v61, %v5097_v48 }
 0xa52   :  { %v5100_v55 = vpop.f32.mrf.mxu0 }
 0xa53   :  { %5607 = vmatprep.mubr.f32.mxu1 %v5099_v15 }
 0xa54   :  { %v5101_v26 = vpop.f32.mrf.mxu0 }
 0xa55   :  { %v5102_v6 = vadd.f32 %v5101_v26, %v5100_v55 }
 0xa56   :  { %v5103_v34 = vpop.f32.mrf.mxu0 }
 0xa57   :  { %5608 = vmatmul.mubr.f32.gmra.mxu1 %v5102_v6 }
 0xa58   :  { %v5104_v21 = vpop.f32.mrf.mxu0 }
 0xa59   :  { %v5105_v31 = vadd.f32 %v5104_v21, %v5103_v34 }
 0xa5a   :  { %v5106_v39 = vpop.f32.mrf.mxu0 }
 0xa5b   :  { %5610 = vmatprep.mubr.f32.mxu1 %v5105_v31 }
 0xa5c   :  { %v5107_v4 = vpop.f32.mrf.mxu0 }
 0xa5d   :  { %v5108_v24 = vadd.f32 %v5107_v4, %v5106_v39 }
 0xa5f   :  { %5611 = vmatmul.mubr.f32.gmra.mxu1 %v5108_v24 }
 0xa60   :  { %4049 = vmatprep.mubr.f32.mxu1 %v3950_v63 }
 0xaa7   :  { %v6773_v16 = vpop.f32.mrf.mxu1 }
 0xaa9   :  { %v6775_v36 = vpop.f32.mrf.mxu1 }
 0xaaf   :  { %v6777_v11 = vpop.f32.mrf.mxu1 }
 0xab1   :  { %v6779_v37 = vpop.f32.mrf.mxu1 }
 0xab7   :  { %v6781_v53 = vpop.f32.mrf.mxu1 }
 0xab9   :  { %v6783_v35 = vpop.f32.mrf.mxu1 }
 0xabf   :  { %v6785_v52 = vpop.f32.mrf.mxu1 }
 0xac1   :  { %v6787_v56 = vpop.f32.mrf.mxu1 }
 0xac7   :  { %v5579_v51 = vpop.f32.mrf.mxu1 }
 0xac8   :  { %v3732_v4 = vadd.f32 %v5579_v51, %v6806_v0 }
 0xac9   :  { %v6789_v3 = vpop.f32.mrf.mxu1 }
 0xacf   :  { %v5582_v46 = vpop.f32.mrf.mxu1 }
 0xad0   :  { %v3742_v27 = vadd.f32 %v5582_v46, %v6806_v0 }
 0xad1   :  { %v3736_v29 = vpop.f32.mrf.mxu1 }
 0xad2   :  { %v3737_v26 = vadd.f32 %v6806_v0, %v3736_v29  ;;  %v3856_v24 = vmax.f32 %v3742_v27, 0.0 }
 0xad7   :  { %v5585_v50 = vpop.f32.mrf.mxu1 }
 0xad8   :  { %v3752_v13 = vadd.f32 %v5585_v50, %v6806_v0 }
 0xad9   :  { %v3746_v45 = vpop.f32.mrf.mxu1 }
 0xada   :  { %v3747_v10 = vadd.f32 %v6806_v0, %v3746_v45  ;;  %v3858_v59 = vmax.f32 %v3752_v13, 0.0  ;;  %v3727_v45 = vadd.f32 %v6806_v0, %v6789_v3 }
 0xadc   :  { %v3857_v6 = vmax.f32 %v3747_v10, 0.0  ;;  %v3898_v63 = vadd.f32 %v6815_v54, %v3858_v59 }
 0xadf   :  { %v5588_v8 = vpop.f32.mrf.mxu1 }
 0xae0   :  { %v3762_v7 = vadd.f32 %v5588_v8, %v6806_v0  ;;  %v3855_v8 = vmax.f32 %v3737_v26, 0.0 }
 0xae1   :  { %v3756_v1 = vpop.f32.mrf.mxu1 }
 0xae2   :  { %v3757_v33 = vadd.f32 %v6806_v0, %v3756_v1  ;;  %v3860_v22 = vmax.f32 %v3762_v7, 0.0  ;;  %v3897_v1 = vadd.f32 %v6815_v54, %v3857_v6 }
 0xae4   :  { %v3859_v12 = vmax.f32 %v3757_v33, 0.0  ;;  %v3900_v48 = vadd.f32 %v6815_v54, %v3860_v22  ;;  %v3853_v33 = vmax.f32 %v3727_v45, 0.0  ;;  %v3949_v45 = vld [vmem:[#allocation11] sm:$0xff] }
 0xae6   :  { %v3899_v34 = vadd.f32 %v6815_v54, %v3859_v12 }
 0xae7   :  { %v6791_v18 = vpop.f32.mrf.mxu1 }
 0xae9   :  { %v6793_v41 = vpop.f32.mrf.mxu1 }
 0xaef   :  { %v6795_v47 = vpop.f32.mrf.mxu1 }
 0xaf1   :  { %v6797_v20 = vpop.f32.mrf.mxu1 }
 0xaf7   :  { %v6799_v58 = vpop.f32.mrf.mxu1 }
 0xaf9   :  { %v6801_v32 = vpop.f32.mrf.mxu1 }
 0xaff   :  { %v5600_v38 = vpop.f32.mrf.mxu1 }
 0xb01   :  { %v3796_v25 = vpop.f32.mrf.mxu1 }
 0xb02   :  { %v3797_v7 = vadd.f32 %v6806_v0, %v3796_v25  ;;  %v3712_v25 = vadd.f32 %v6781_v53, %v6806_v0  ;;  %v3782_v53 = vadd.f32 %v6795_v47, %v6806_v0  ;;  %v3697_v47 = vadd.f32 %v6806_v0, %v6779_v37 }
 0xb03   :  { %v3767_v37 = vadd.f32 %v6806_v0, %v6793_v41 }
 0xb05   :  { %v3861_v41 = vmax.f32 %v3767_v37, 0.0 }
 0xb07   :  { %v5603_v40 = vpop.f32.mrf.mxu1 }
 0xb08   :  { %v3812_v21 = vadd.f32 %v5603_v40, %v6806_v0  ;;  %v3802_v40 = vadd.f32 %v5600_v38, %v6806_v0  ;;  %v3717_v38 = vadd.f32 %v6806_v0, %v6787_v56  ;;  %v3787_v56 = vadd.f32 %v6806_v0, %v6801_v32 }
 0xb09   :  { %v3806_v44 = vpop.f32.mrf.mxu1  ;;  %v3702_v32 = vadd.f32 %v6777_v11, %v6806_v0  ;;  %v3772_v11 = vadd.f32 %v6791_v18, %v6806_v0  ;;  %v3687_v18 = vadd.f32 %v6806_v0, %v6775_v36 }
 0xb0a   :  { %v3807_v46 = vadd.f32 %v6806_v0, %v3806_v44  ;;  %v3870_v51 = vmax.f32 %v3812_v21, 0.0  ;;  %v3722_v44 = vadd.f32 %v6785_v52, %v6806_v0  ;;  %v3792_v52 = vadd.f32 %v6799_v58, %v6806_v0 }
 0xb0b   :  { %v3707_v58 = vadd.f32 %v6806_v0, %v6783_v35  ;;  %v3777_v35 = vadd.f32 %v6806_v0, %v6797_v20  ;;  %v3692_v20 = vadd.f32 %v6773_v16, %v6806_v0 }
 0xb0c   :  { %v3869_v3 = vmax.f32 %v3807_v46, 0.0  ;;  %v3852_v13 = vmax.f32 %v3722_v44, 0.0  ;;  %v3866_v10 = vmax.f32 %v3792_v52, 0.0  ;;  %v4072_v44 = vld [vmem:[#allocation12 + $0x60] sm:$0xff]  ;;  %v4062_v52 = vld [vmem:[#allocation12 + $0x10] sm:$0xff] }
 0xb0d   :  { %v3849_v27 = vmax.f32 %v3707_v58, 0.0  ;;  %v3863_v26 = vmax.f32 %v3777_v35, 0.0  ;;  %v4356_v58 = vld [vmem:[%s6905_s7] ss:$0 sm:$0xff] }
 0xb0f   :  { %v5606_v5 = vpop.f32.mrf.mxu1  ;;  %v3889_v21 = vadd.f32 %v6815_v54, %v3849_v27 }
 0xb10   :  { %v3822_v19 = vadd.f32 %v5606_v5, %v6806_v0 }
 0xb11   :  { %v3816_v30 = vpop.f32.mrf.mxu1 }
 0xb12   :  { %v3817_v61 = vadd.f32 %v6806_v0, %v3816_v30  ;;  %v3872_v31 = vmax.f32 %v3822_v19, 0.0  ;;  %v3854_v30 = vmax.f32 %v3732_v4, 0.0  ;;  %v3850_v19 = vmax.f32 %v3712_v25, 0.0 }
 0xb14   :  { %v3871_v50 = vmax.f32 %v3817_v61, 0.0  ;;  %v3912_v5 = vadd.f32 %v6815_v54, %v3872_v31  ;;  %v3894_v22 = vadd.f32 %v6815_v54, %v3854_v30  ;;  %v3906_v61 = vadd.f32 %v6815_v54, %v3866_v10  ;;  %v4070_v30 = vld [vmem:[#allocation12 + $0x50] sm:$0xff] }
 0xb15   :  { %v3862_v31 = vmax.f32 %v3772_v11, 0.0 }
 0xb17   :  { %v5609_v57 = vpop.f32.mrf.mxu1  ;;  %v3902_v36 = vadd.f32 %v6815_v54, %v3862_v31 }
 0xb18   :  { %v3832_v17 = vadd.f32 %v5609_v57, %v6806_v0  ;;  %v3896_v57 = vadd.f32 %v6815_v54, %v3856_v24  ;;  %v3903_v24 = vadd.f32 %v6815_v54, %v3863_v26 }
 0xb19   :  { %v3826_v60 = vpop.f32.mrf.mxu1 }
 0xb1a   :  { %v3827_v14 = vadd.f32 %v6806_v0, %v3826_v60  ;;  %v3874_v62 = vmax.f32 %v3832_v17, 0.0  ;;  %v3911_v60 = vadd.f32 %v6815_v54, %v3871_v50  ;;  %v3868_v17 = vmax.f32 %v3802_v40, 0.0  ;;  %v4074_v40 = vld [vmem:[#allocation12 + $0x70] sm:$0xff] }
 0xb1b   :  { %v3901_v50 = vadd.f32 %v6815_v54, %v3861_v41 }
 0xb1c   :  { %v3873_v15 = vmax.f32 %v3827_v14, 0.0  ;;  %v3914_v39 = vadd.f32 %v6815_v54, %v3874_v62  ;;  %v3909_v14 = vadd.f32 %v6815_v54, %v3869_v3  ;;  %v3908_v12 = vadd.f32 %v6815_v54, %v3868_v17  ;;  %v4067_v3 = vld [vmem:[#allocation12 + $0x38] sm:$0xff]  ;;  %v4061_v17 = vld [vmem:[#allocation12 + $0x8] sm:$0xff] }
 0xb1d   :  { %v3892_v62 = vadd.f32 %v6815_v54, %v3852_v13 }
 0xb1e   :  { %v3913_v29 = vadd.f32 %v6815_v54, %v3873_v15  ;;  %v3848_v15 = vmax.f32 %v3702_v32, 0.0 }
 0xb1f   :  { %v5612_v2 = vpop.f32.mrf.mxu1 }
 0xb20   :  { %v3842_v9 = vadd.f32 %v5612_v2, %v6806_v0  ;;  %v3895_v2 = vadd.f32 %v6815_v54, %v3855_v8  ;;  %v3888_v4 = vadd.f32 %v6815_v54, %v3848_v15  ;;  %v4075_v8 = vld [vmem:[#allocation12 + $0x78] sm:$0xff] }
 0xb21   :  { %v3836_v42 = vpop.f32.mrf.mxu1 }
 0xb22   :  { %v3876_v28 = vmax.f32 %v3842_v9, 0.0  ;;  %v3837_v23 = vadd.f32 %v6806_v0, %v3836_v42  ;;  %v3910_v9 = vadd.f32 %v6815_v54, %v3870_v51  ;;  %v3867_v42 = vmax.f32 %v3797_v7, 0.0  ;;  %v3951_v51 = vld [vmem:[#allocation11 + $0x10] sm:$0xff]  ;;  %v4068_v7 = vld [vmem:[#allocation12 + $0x40] sm:$0xff] }
 0xb24   :  { %v3916_v43 = vadd.f32 %v6815_v54, %v3876_v28  ;;  %v3875_v49 = vmax.f32 %v3837_v23, 0.0  ;;  %v3851_v28 = vmax.f32 %v3717_v38, 0.0  ;;  %v3893_v23 = vadd.f32 %v6815_v54, %v3853_v33  ;;  %v4065_v38 = vld [vmem:[#allocation12 + $0x28] sm:$0xff]  ;;  %v4064_v33 = vld [vmem:[#allocation12 + $0x20] sm:$0xff] }
 0xb26   :  { %v3915_v55 = vadd.f32 %v6815_v54, %v3875_v49  ;;  %5157 = vmatprep.subr.mxu1 %v3916_v43  ;;  %v3865_v43 = vmax.f32 %v3787_v56, 0.0  ;;  %v3907_v49 = vadd.f32 %v6815_v54, %v3867_v42  ;;  %v3891_v59 = vadd.f32 %v6815_v54, %v3851_v28 }
 0xb27   :  { %5158 = vmatpush3.msra.mxu1 %v3900_v48  ;;  %v3864_v48 = vmax.f32 %v3782_v53, 0.0 }
 0xb28   :  { %5159 = vmatprep.subr.mxu1 %v3915_v55  ;;  %v3890_v55 = vadd.f32 %v6815_v54, %v3850_v19  ;;  %v3905_v6 = vadd.f32 %v6815_v54, %v3865_v43 }
 0xb29   :  { %5160 = vmatpush3.msra.mxu1 %v3899_v34  ;;  %v3847_v34 = vmax.f32 %v3697_v47, 0.0  ;;  %v3904_v16 = vadd.f32 %v6815_v54, %v3864_v48 }
 0xb2a   :  { %5161 = vmatprep.subr.mxu1 %v3914_v39  ;;  %v3846_v39 = vmax.f32 %v3692_v20, 0.0 }
 0xb2b   :  { %5162 = vmatpush3.msra.mxu1 %v3898_v63  ;;  %v3845_v63 = vmax.f32 %v3687_v18, 0.0  ;;  %v3887_v46 = vadd.f32 %v6815_v54, %v3847_v34 }
 0xb2c   :  { %5163 = vmatprep.subr.mxu1 %v3913_v29  ;;  %v3886_v0 = vadd.f32 %v6815_v54, %v3846_v39 }
 0xb2d   :  { %5164 = vmatpush3.msra.mxu1 %v3897_v1  ;;  %v3885_v29 = vadd.f32 %v6815_v54, %v3845_v63  ;;  %v3952_v1 = vld [vmem:[#allocation11 + $0x18] sm:$0xff] }
 0xb2e   :  { %5165 = vmatprep.subr.mxu1 %v3912_v5  ;;  %v4073_v5 = vld [vmem:[#allocation12 + $0x68] sm:$0xff]  ;;  %v4071_v54 = vld [vmem:[#allocation12 + $0x58] sm:$0xff] }
 0xb2f   :  { %5166 = vmatpush3.msra.mxu1 %v3896_v57  ;;  %v4069_v57 = vld [vmem:[#allocation12 + $0x48] sm:$0xff] }
 0xb30   :  { %5167 = vmatprep.subr.mxu1 %v3911_v60  ;;  %v4066_v60 = vld [vmem:[#allocation12 + $0x30] sm:$0xff] }
 0xb31   :  { %5168 = vmatpush3.msra.mxu1 %v3895_v2  ;;  %v4063_v2 = vld [vmem:[#allocation12 + $0x18] sm:$0xff] }
 0xb32   :  { %5169 = vmatprep.subr.mxu1 %v3910_v9  ;;  %v4060_v9 = vld [vmem:[#allocation12] sm:$0xff] }
 0xb33   :  { %5170 = vmatpush3.msra.mxu1 %v3894_v22 }
 0xb34   :  { %5171 = vmatprep.subr.mxu1 %v3909_v14 }
 0xb35   :  { %5172 = vmatpush3.msra.mxu1 %v3893_v23 }
 0xb36   :  { %5173 = vmatprep.subr.mxu1 %v3908_v12 }
 0xb37   :  { %5174 = vmatpush3.msra.mxu1 %v3892_v62 }
 0xb38   :  { %5175 = vmatprep.subr.mxu1 %v3907_v49 }
 0xb39   :  { %5176 = vmatpush3.msra.mxu1 %v3891_v59 }
 0xb3a   :  { %5177 = vmatprep.subr.mxu1 %v3906_v61 }
 0xb3b   :  { %5178 = vmatpush3.msra.mxu1 %v3890_v55 }
 0xb3c   :  { %5179 = vmatprep.subr.mxu1 %v3905_v6 }
 0xb3d   :  { %5180 = vmatpush3.msra.mxu1 %v3889_v21 }
 0xb3e   :  { %5181 = vmatprep.subr.mxu1 %v3904_v16 }
 0xb3f   :  { %5182 = vmatpush3.msra.mxu1 %v3888_v4 }
 0xb40   :  { %5183 = vmatprep.subr.mxu1 %v3903_v24 }
 0xb41   :  { %5184 = vmatpush3.msra.mxu1 %v3887_v46 }
 0xb42   :  { %5185 = vmatprep.subr.mxu1 %v3902_v36 }
 0xb43   :  { %5186 = vmatpush3.msra.mxu1 %v3886_v0 }
 0xb44   :  { %5187 = vmatprep.subr.mxu1 %v3901_v50 }
 0xb45   :  { %5188 = vmatpush3.msra.mxu1 %v3885_v29 }
 0xb46   :  { %4050 = vmatmul.mubr.f32.vlgmr.msra.gmra.mxu1 %v3949_v45  ;;  %5613 = vmatprep.subr.mxu1 %v4075_v8 }
 0xb47   :  { %4054 = vmatprep.mubr.f32.mxu1 %v3952_v1  ;;  %5614 = vmatpush3.msra.mxu1 %v4075_v8 }
 0xb48   :  { %5615 = vmatprep.subr.mxu1 %v4074_v40 }
 0xb49   :  { %5616 = vmatpush3.msra.mxu1 %v4074_v40 }
 0xb4a   :  { %4055 = vmatmul.mubr.f32.gmra.mxu1 %v3951_v51  ;;  %5617 = vmatprep.subr.mxu1 %v4073_v5 }
 0xb4b   :  { %5618 = vmatpush3.msra.mxu1 %v4073_v5 }
 0xb4c   :  { %5619 = vmatprep.subr.mxu1 %v4072_v44 }
 0xb4d   :  { %5620 = vmatpush3.msra.mxu1 %v4072_v44 }
 0xb4e   :  { %5621 = vmatprep.subr.mxu1 %v4071_v54 }
 0xb4f   :  { %5622 = vmatpush3.msra.mxu1 %v4071_v54 }
 0xb50   :  { %5623 = vmatprep.subr.mxu1 %v4070_v30 }
 0xb51   :  { %5624 = vmatpush3.msra.mxu1 %v4070_v30 }
 0xb52   :  { %5625 = vmatprep.subr.mxu1 %v4069_v57 }
 0xb53   :  { %5626 = vmatpush3.msra.mxu1 %v4069_v57 }
 0xb54   :  { %5627 = vmatprep.subr.mxu1 %v4068_v7 }
 0xb55   :  { %5628 = vmatpush3.msra.mxu1 %v4068_v7 }
 0xb56   :  { %5629 = vmatprep.subr.mxu1 %v4067_v3 }
 0xb57   :  { %5630 = vmatpush3.msra.mxu1 %v4067_v3 }
 0xb58   :  { %5631 = vmatprep.subr.mxu1 %v4066_v60 }
 0xb59   :  { %5632 = vmatpush3.msra.mxu1 %v4066_v60 }
 0xb5a   :  { %5633 = vmatprep.subr.mxu1 %v4065_v38 }
 0xb5b   :  { %5634 = vmatpush3.msra.mxu1 %v4065_v38 }
 0xb5c   :  { %5635 = vmatprep.subr.mxu1 %v4064_v33 }
 0xb5d   :  { %5636 = vmatpush3.msra.mxu1 %v4064_v33 }
 0xb5e   :  { %5637 = vmatprep.subr.mxu1 %v4063_v2 }
 0xb5f   :  { %5638 = vmatpush3.msra.mxu1 %v4063_v2 }
 0xb60   :  { %5639 = vmatprep.subr.mxu1 %v4062_v52 }
 0xb61   :  { %5640 = vmatpush3.msra.mxu1 %v4062_v52 }
 0xb62   :  { %5641 = vmatprep.subr.mxu1 %v4061_v17 }
 0xb63   :  { %5642 = vmatpush3.msra.mxu1 %v4061_v17 }
 0xb64   :  { %5643 = vmatprep.subr.mxu1 %v4060_v9 }
 0xb65   :  { %5644 = vmatpush3.msra.mxu1 %v4060_v9 }
 0xc06   :  { %v5189_v25 = vpop.f32.mrf.mxu1 }
 0xc08   :  { %v5190_v13 = vpop.f32.mrf.mxu1 }
 0xc09   :  { %v5191_v22 = vadd.f32 %v5190_v13, %v5189_v25 }
 0xc0a   :  { %v5192_v56 = vpop.f32.mrf.mxu1 }
 0xc0b   :  { %5645 = vmatprep.mubr.f32.mxu1 %v5191_v22 }
 0xc0c   :  { %v5193_v42 = vpop.f32.mrf.mxu1 }
 0xc0d   :  { %v5194_v14 = vadd.f32 %v5193_v42, %v5192_v56 }
 0xc0f   :  { %5646 = vmatmul.mubr.f32.vlgmr.msra.gmra.mxu1 %v5194_v14 }
 0xccf   :  { %v5647_v28 = vpop.f32.mrf.mxu1 }
 0xcd0   :  { %v4155_v23 = vadd.f32 %v5647_v28, %v4356_v58 }
 0xcd1   :  { %v4149_v53 = vpop.f32.mrf.mxu1 }
 0xcd2   :  { %v4159_v10 = vmax.f32 %v4155_v23, 0.0  ;;  %v4150_v12 = vadd.f32 %v4356_v58, %v4149_v53 }
 0xcd4   :  { %4161 = vst [vmem:[#allocation14 + $0x8] sm:$0xff] %v4159_v10  ;;  %v4158_v32 = vmax.f32 %v4150_v12, 0.0 }
 0xcd6   :  { %4160 = vst [vmem:[#allocation14] sm:$0xff] %v4158_v32 }
 0xcd7   :  { %5935 = shalt.err (!%p5932_p6)
}
 0xcd8   :  { %4173 = dma.vmem_to_hbm [thread:$0]  %s4168_s4, 256, %s6906_s8, [#allocation5], %s5956_s10, %s5956_s10, %s5957_s11  }
 0xcd9   :  { %5952 = dma.done.wait [#allocation5], 256  }
 0xcda   :  { %5953 = vsyncadd [#allocation5], 4294967040 }
 0xcdb   :  { %4177 = vsyncpa [#allocation4], 1 }
 0xcdc   :  { %4178 = vsyncpa [#allocation7], 1 }
 0xcdd   :  { %4179 = vsyncpa [#allocation10], 1 }
 0xcde   :  { %4180 = vsyncpa [#allocation13], 1 }
 0xcdf   :  { %4181 = vsyncpa [#allocation5], 1 }

</bundles_post_ra>
